<compile_context>
chip_gen: v7x
topology: tpu7x:2x2x1
jax: 0.10.0
libtpu: 0.0.40
codegen_flags: <defaults>
</compile_context>

<pallas_src>
import functools

import numpy as np
import jax
import jax.numpy as jnp
from jax import lax
from jax.experimental import pallas as pl
from jax.experimental.pallas import tpu as pltpu

EPS = 1e-5            # nn.BatchNorm1d default eps
LANES = 128
VMEM_LIMIT_BYTES = 32 * 1024 * 1024


# ----------------------------------------------------------------------------
# Pass 1: sparse conv (as 27 shifted-window matmuls) + per-tile BN partial sums.
# ----------------------------------------------------------------------------
def _conv_stats_kernel(x_ref, w_ref, z_ref, stats_ref, *, td, spatial, radius, dilation):
    H, W = spatial
    i = pl.program_id(0)
    tm = td * H * W
    cout = w_ref.shape[-1]

    acc = jnp.zeros((tm, cout), jnp.float32)
    k = 0
    for dz in range(-radius, radius + 1):
        for dy in range(-radius, radius + 1):
            for dx in range(-radius, radius + 1):
                zs = i * td + (dz + radius) * dilation      # dynamic (grid) + static
                ys = (dy + radius) * dilation
                xs = (dx + radius) * dilation
                win = x_ref[pl.ds(zs, td), pl.ds(ys, H), pl.ds(xs, W), :]
                xk = win.reshape(tm, win.shape[-1])          # [tm, cin_pad] bf16
                acc = acc + jnp.dot(xk, w_ref[k],
                                    preferred_element_type=jnp.float32)
                k += 1

    z_ref[...] = acc
    s = jnp.sum(acc, axis=0, keepdims=True)                  # [1, cout]
    ss = jnp.sum(acc * acc, axis=0, keepdims=True)           # [1, cout]
    stats_ref[...] = jnp.concatenate([s, ss], axis=0).reshape(1, 2, cout)


# ----------------------------------------------------------------------------
# Pass 2: finalize training-mode BN (biased variance) + ReLU, scale/shift folded.
# ----------------------------------------------------------------------------
def _bn_relu_kernel(z_ref, stats_ref, g_ref, b_ref, o_ref, *, n_points):
    stats = jnp.sum(stats_ref[...], axis=0)                  # [2, cout] global sums
    inv_n = 1.0 / float(n_points)
    mean = stats[0:1, :] * inv_n
    ex2 = stats[1:2, :] * inv_n
    var = ex2 - mean * mean
    scale = g_ref[...] * lax.rsqrt(var + EPS)                # EUP rsqrt
    shift = b_ref[...] - mean * scale
    o_ref[...] = jnp.maximum(z_ref[...] * scale + shift, 0.0)


# ----------------------------------------------------------------------------
# Wrapper: BasicConvolutionBlock forward on a dense occupancy lattice.
#   x_vol  : [D, H, W, cin]  voxel features (channels-last)
#   weight : [K=ks^3, cin, outc]   (MinkowskiConvolution kernel, bias-free)
#   gamma, beta : [outc]           (BatchNorm affine params)
# ----------------------------------------------------------------------------
@functools.partial(jax.jit, static_argnames=("dilation", "depth_tile"))
def basic_convolution_block(x_vol, weight, gamma, beta, *, dilation=1, depth_tile=2):
    D, H, W, cin = x_vol.shape
    K, wc_in, outc = weight.shape
    assert wc_in == cin
    ks = round(K ** (1.0 / 3.0))
    assert ks ** 3 == K and ks % 2 == 1, "only odd cubic kernels supported"
    radius = ks // 2
    assert D % depth_tile == 0, "depth must divide into depth tiles"

    n_tiles = D // depth_tile
    tm = depth_tile * H * W
    n_points = D * H * W

    cin_pad = ((cin + LANES - 1) // LANES) * LANES
    cout_pad = ((outc + LANES - 1) // LANES) * LANES

    pad = radius * dilation
    x_pad = jnp.pad(
        x_vol, ((pad, pad), (pad, pad), (pad, pad), (0, cin_pad - cin))
    ).astype(jnp.bfloat16)
    w_pad = jnp.zeros((K, cin_pad, cout_pad), jnp.bfloat16)
    w_pad = w_pad.at[:, :cin, :outc].set(weight.astype(jnp.bfloat16))
    g_pad = jnp.zeros((1, cout_pad), jnp.float32).at[0, :outc].set(gamma)
    b_pad = jnp.zeros((1, cout_pad), jnp.float32).at[0, :outc].set(beta)

    cparams = pltpu.CompilerParams(
        dimension_semantics=("parallel",),
        vmem_limit_bytes=VMEM_LIMIT_BYTES,
    )

    conv_kernel = functools.partial(
        _conv_stats_kernel, td=depth_tile, spatial=(H, W),
        radius=radius, dilation=dilation)

    z, stats = pl.pallas_call(
        conv_kernel,
        out_shape=(
            jax.ShapeDtypeStruct((n_points, cout_pad), jnp.float32),
            jax.ShapeDtypeStruct((n_tiles, 2, cout_pad), jnp.float32),
        ),
        grid=(n_tiles,),
        in_specs=[
            pl.BlockSpec(x_pad.shape, lambda i: (0, 0, 0, 0)),   # resident volume
            pl.BlockSpec(w_pad.shape, lambda i: (0, 0, 0)),      # resident weights
        ],
        out_specs=(
            pl.BlockSpec((tm, cout_pad), lambda i: (i, 0)),
            pl.BlockSpec((1, 2, cout_pad), lambda i: (i, 0, 0)),
        ),
        compiler_params=cparams,
    )(x_pad, w_pad)

    bn_kernel = functools.partial(_bn_relu_kernel, n_points=n_points)
    y = pl.pallas_call(
        bn_kernel,
        out_shape=jax.ShapeDtypeStruct((n_points, cout_pad), jnp.float32),
        grid=(n_tiles,),
        in_specs=[
            pl.BlockSpec((tm, cout_pad), lambda i: (i, 0)),
            pl.BlockSpec(stats.shape, lambda i: (0, 0, 0)),      # resident partial sums
            pl.BlockSpec((1, cout_pad), lambda i: (0, 0)),
            pl.BlockSpec((1, cout_pad), lambda i: (0, 0)),
        ],
        out_specs=pl.BlockSpec((tm, cout_pad), lambda i: (i, 0)),
        compiler_params=cparams,
    )(z, stats, g_pad, b_pad)

    return y[:, :outc]                                           # drop lane padding


# ----------------------------------------------------------------------------
# Pure-JAX reference (same semantics; bf16-rounded conv inputs to match the MXU).
# ----------------------------------------------------------------------------
def ref_basic_convolution_block(x_vol, weight, gamma, beta, dilation=1):
    D, H, W, cin = x_vol.shape
    K, _, outc = weight.shape
    ks = round(K ** (1.0 / 3.0))
    radius = ks // 2
    pad = radius * dilation

    xp = jnp.pad(x_vol, ((pad, pad), (pad, pad), (pad, pad), (0, 0)))
    xp = xp.astype(jnp.bfloat16).astype(jnp.float32)
    wf = weight.astype(jnp.bfloat16).astype(jnp.float32)

    n = D * H * W
    z = jnp.zeros((n, outc), jnp.float32)
    k = 0
    for dz in range(-radius, radius + 1):
        for dy in range(-radius, radius + 1):
            for dx in range(-radius, radius + 1):
                win = xp[pad + dz * dilation: pad + dz * dilation + D,
                         pad + dy * dilation: pad + dy * dilation + H,
                         pad + dx * dilation: pad + dx * dilation + W, :]
                z = z + jnp.dot(win.reshape(n, cin), wf[k],
                                precision=lax.Precision.HIGHEST)
                k += 1

    mean = z.mean(0, keepdims=True)
    var = ((z - mean) ** 2).mean(0, keepdims=True)
    zn = (z - mean) / jnp.sqrt(var + EPS) * gamma + beta
    return jnp.maximum(zn, 0.0)


if __name__ == "__main__":
    key = jax.random.PRNGKey(0)
    side, inc, outc, ks, dilation = 8, 8, 16, 3, 1   # dense 8^3 lattice, 512 points
    K = ks ** 3

    kx, kw, kg, kb = jax.random.split(key, 4)
    x_vol = jax.random.normal(kx, (side, side, side, inc), jnp.float32)
    weight = 0.1 * jax.random.normal(kw, (K, inc, outc), jnp.float32)
    gamma = 1.0 + 0.1 * jax.random.normal(kg, (outc,), jnp.float32)
    beta = 0.1 * jax.random.normal(kb, (outc,), jnp.float32)

    out = jax.block_until_ready(
        basic_convolution_block(x_vol, weight, gamma, beta, dilation=dilation))
    ref = ref_basic_convolution_block(x_vol, weight, gamma, beta, dilation)
    np.testing.assert_allclose(np.asarray(out), np.asarray(ref), rtol=1e-3, atol=1e-3)

    print("KERNEL_OK")
</pallas_src>

<mosaic_0001>
module attributes {stable_mosaic.version = 11 : i64} {
  func.func @_conv_stats_kernel(%arg0: i32, %arg1: memref<10x10x10x128xbf16, #tpu.memory_space<vmem>>, %arg2: memref<27x128x128xbf16, #tpu.memory_space<vmem>>, %arg3: memref<128x128xf32, #tpu.memory_space<vmem>>, %arg4: memref<1x2x128xf32, #tpu.memory_space<vmem>>) attributes {dimension_semantics = [#tpu.dimension_semantics<parallel>], iteration_bounds = array<i64: 4>, scalar_prefetch = 0 : i64, scratch_operands = 0 : i64, tpu.core_type = #tpu.core_type<tc>, window_params = [{pipeline_mode = #tpu.pipeline_mode<synchronous>, transform_indices = @transform_0, window_bounds = array<i64: 10, 10, 10, 128>}, {pipeline_mode = #tpu.pipeline_mode<synchronous>, transform_indices = @transform_1, window_bounds = array<i64: 27, 128, 128>}, {transform_indices = @transform_2, window_bounds = array<i64: 128, 128>}, {transform_indices = @transform_3, window_bounds = array<i64: 1, 2, 128>}]} {
    %cst = arith.constant 0.000000e+00 : f32
    %0 = vector.broadcast %cst : f32 to vector<128x128xf32>
    %c2_i32 = arith.constant 2 : i32
    %1 = arith.muli %arg0, %c2_i32 : i32
    %c0_i32 = arith.constant 0 : i32
    %2 = arith.addi %1, %c0_i32 : i32
    %3 = arith.index_cast %2 : i32 to index
    %c0 = arith.constant 0 : index
    %c0_0 = arith.constant 0 : index
    %c0_1 = arith.constant 0 : index
    %4 = vector.load %arg1[%3, %c0, %c0_0, %c0_1] : memref<10x10x10x128xbf16, #tpu.memory_space<vmem>>, vector<2x8x8x128xbf16>
    %5 = vector.shape_cast %4 : vector<2x8x8x128xbf16> to vector<128x128xbf16>
    %c0_2 = arith.constant 0 : index
    %c0_3 = arith.constant 0 : index
    %c0_4 = arith.constant 0 : index
    %6 = vector.load %arg2[%c0_2, %c0_3, %c0_4] : memref<27x128x128xbf16, #tpu.memory_space<vmem>>, vector<1x128x128xbf16>
    %7 = vector.shape_cast %6 : vector<1x128x128xbf16> to vector<128x128xbf16>
    %cst_5 = arith.constant dense<0.000000e+00> : vector<128x128xf32>
    %8 = tpu.matmul %5, %7, %cst_5 {dimension_numbers = #tpu.dot_dimension_numbers<[1], [0], [0], [1], [0, 0, 1, 1], [], []>} : vector<128x128xbf16>, vector<128x128xbf16>, vector<128x128xf32> -> vector<128x128xf32>
    %9 = arith.addf %0, %8 : vector<128x128xf32>
    %c2_i32_6 = arith.constant 2 : i32
    %10 = arith.muli %arg0, %c2_i32_6 : i32
    %c0_i32_7 = arith.constant 0 : i32
    %11 = arith.addi %10, %c0_i32_7 : i32
    %12 = arith.index_cast %11 : i32 to index
    %c0_8 = arith.constant 0 : index
    %c1 = arith.constant 1 : index
    %c0_9 = arith.constant 0 : index
    %13 = vector.load %arg1[%12, %c0_8, %c1, %c0_9] : memref<10x10x10x128xbf16, #tpu.memory_space<vmem>>, vector<2x8x8x128xbf16>
    %14 = vector.shape_cast %13 : vector<2x8x8x128xbf16> to vector<128x128xbf16>
    %c1_10 = arith.constant 1 : index
    %c0_11 = arith.constant 0 : index
    %c0_12 = arith.constant 0 : index
    %15 = vector.load %arg2[%c1_10, %c0_11, %c0_12] : memref<27x128x128xbf16, #tpu.memory_space<vmem>>, vector<1x128x128xbf16>
    %16 = vector.shape_cast %15 : vector<1x128x128xbf16> to vector<128x128xbf16>
    %cst_13 = arith.constant dense<0.000000e+00> : vector<128x128xf32>
    %17 = tpu.matmul %14, %16, %cst_13 {dimension_numbers = #tpu.dot_dimension_numbers<[1], [0], [0], [1], [0, 0, 1, 1], [], []>} : vector<128x128xbf16>, vector<128x128xbf16>, vector<128x128xf32> -> vector<128x128xf32>
    %18 = arith.addf %9, %17 : vector<128x128xf32>
    %c2_i32_14 = arith.constant 2 : i32
    %19 = arith.muli %arg0, %c2_i32_14 : i32
    %c0_i32_15 = arith.constant 0 : i32
    %20 = arith.addi %19, %c0_i32_15 : i32
    %21 = arith.index_cast %20 : i32 to index
    %c0_16 = arith.constant 0 : index
    %c2 = arith.constant 2 : index
    %c0_17 = arith.constant 0 : index
    %22 = vector.load %arg1[%21, %c0_16, %c2, %c0_17] : memref<10x10x10x128xbf16, #tpu.memory_space<vmem>>, vector<2x8x8x128xbf16>
    %23 = vector.shape_cast %22 : vector<2x8x8x128xbf16> to vector<128x128xbf16>
    %c2_18 = arith.constant 2 : index
    %c0_19 = arith.constant 0 : index
    %c0_20 = arith.constant 0 : index
    %24 = vector.load %arg2[%c2_18, %c0_19, %c0_20] : memref<27x128x128xbf16, #tpu.memory_space<vmem>>, vector<1x128x128xbf16>
    %25 = vector.shape_cast %24 : vector<1x128x128xbf16> to vector<128x128xbf16>
    %cst_21 = arith.constant dense<0.000000e+00> : vector<128x128xf32>
    %26 = tpu.matmul %23, %25, %cst_21 {dimension_numbers = #tpu.dot_dimension_numbers<[1], [0], [0], [1], [0, 0, 1, 1], [], []>} : vector<128x128xbf16>, vector<128x128xbf16>, vector<128x128xf32> -> vector<128x128xf32>
    %27 = arith.addf %18, %26 : vector<128x128xf32>
    %c2_i32_22 = arith.constant 2 : i32
    %28 = arith.muli %arg0, %c2_i32_22 : i32
    %c0_i32_23 = arith.constant 0 : i32
    %29 = arith.addi %28, %c0_i32_23 : i32
    %30 = arith.index_cast %29 : i32 to index
    %c1_24 = arith.constant 1 : index
    %c0_25 = arith.constant 0 : index
    %c0_26 = arith.constant 0 : index
    %31 = vector.load %arg1[%30, %c1_24, %c0_25, %c0_26] : memref<10x10x10x128xbf16, #tpu.memory_space<vmem>>, vector<2x8x8x128xbf16>
    %32 = vector.shape_cast %31 : vector<2x8x8x128xbf16> to vector<128x128xbf16>
    %c3 = arith.constant 3 : index
    %c0_27 = arith.constant 0 : index
    %c0_28 = arith.constant 0 : index
    %33 = vector.load %arg2[%c3, %c0_27, %c0_28] : memref<27x128x128xbf16, #tpu.memory_space<vmem>>, vector<1x128x128xbf16>
    %34 = vector.shape_cast %33 : vector<1x128x128xbf16> to vector<128x128xbf16>
    %cst_29 = arith.constant dense<0.000000e+00> : vector<128x128xf32>
    %35 = tpu.matmul %32, %34, %cst_29 {dimension_numbers = #tpu.dot_dimension_numbers<[1], [0], [0], [1], [0, 0, 1, 1], [], []>} : vector<128x128xbf16>, vector<128x128xbf16>, vector<128x128xf32> -> vector<128x128xf32>
    %36 = arith.addf %27, %35 : vector<128x128xf32>
    %c2_i32_30 = arith.constant 2 : i32
    %37 = arith.muli %arg0, %c2_i32_30 : i32
    %c0_i32_31 = arith.constant 0 : i32
    %38 = arith.addi %37, %c0_i32_31 : i32
    %39 = arith.index_cast %38 : i32 to index
    %c1_32 = arith.constant 1 : index
    %c1_33 = arith.constant 1 : index
    %c0_34 = arith.constant 0 : index
    %40 = vector.load %arg1[%39, %c1_32, %c1_33, %c0_34] : memref<10x10x10x128xbf16, #tpu.memory_space<vmem>>, vector<2x8x8x128xbf16>
    %41 = vector.shape_cast %40 : vector<2x8x8x128xbf16> to vector<128x128xbf16>
    %c4 = arith.constant 4 : index
    %c0_35 = arith.constant 0 : index
    %c0_36 = arith.constant 0 : index
    %42 = vector.load %arg2[%c4, %c0_35, %c0_36] : memref<27x128x128xbf16, #tpu.memory_space<vmem>>, vector<1x128x128xbf16>
    %43 = vector.shape_cast %42 : vector<1x128x128xbf16> to vector<128x128xbf16>
    %cst_37 = arith.constant dense<0.000000e+00> : vector<128x128xf32>
    %44 = tpu.matmul %41, %43, %cst_37 {dimension_numbers = #tpu.dot_dimension_numbers<[1], [0], [0], [1], [0, 0, 1, 1], [], []>} : vector<128x128xbf16>, vector<128x128xbf16>, vector<128x128xf32> -> vector<128x128xf32>
    %45 = arith.addf %36, %44 : vector<128x128xf32>
    %c2_i32_38 = arith.constant 2 : i32
    %46 = arith.muli %arg0, %c2_i32_38 : i32
    %c0_i32_39 = arith.constant 0 : i32
    %47 = arith.addi %46, %c0_i32_39 : i32
    %48 = arith.index_cast %47 : i32 to index
    %c1_40 = arith.constant 1 : index
    %c2_41 = arith.constant 2 : index
    %c0_42 = arith.constant 0 : index
    %49 = vector.load %arg1[%48, %c1_40, %c2_41, %c0_42] : memref<10x10x10x128xbf16, #tpu.memory_space<vmem>>, vector<2x8x8x128xbf16>
    %50 = vector.shape_cast %49 : vector<2x8x8x128xbf16> to vector<128x128xbf16>
    %c5 = arith.constant 5 : index
    %c0_43 = arith.constant 0 : index
    %c0_44 = arith.constant 0 : index
    %51 = vector.load %arg2[%c5, %c0_43, %c0_44] : memref<27x128x128xbf16, #tpu.memory_space<vmem>>, vector<1x128x128xbf16>
    %52 = vector.shape_cast %51 : vector<1x128x128xbf16> to vector<128x128xbf16>
    %cst_45 = arith.constant dense<0.000000e+00> : vector<128x128xf32>
    %53 = tpu.matmul %50, %52, %cst_45 {dimension_numbers = #tpu.dot_dimension_numbers<[1], [0], [0], [1], [0, 0, 1, 1], [], []>} : vector<128x128xbf16>, vector<128x128xbf16>, vector<128x128xf32> -> vector<128x128xf32>
    %54 = arith.addf %45, %53 : vector<128x128xf32>
    %c2_i32_46 = arith.constant 2 : i32
    %55 = arith.muli %arg0, %c2_i32_46 : i32
    %c0_i32_47 = arith.constant 0 : i32
    %56 = arith.addi %55, %c0_i32_47 : i32
    %57 = arith.index_cast %56 : i32 to index
    %c2_48 = arith.constant 2 : index
    %c0_49 = arith.constant 0 : index
    %c0_50 = arith.constant 0 : index
    %58 = vector.load %arg1[%57, %c2_48, %c0_49, %c0_50] : memref<10x10x10x128xbf16, #tpu.memory_space<vmem>>, vector<2x8x8x128xbf16>
    %59 = vector.shape_cast %58 : vector<2x8x8x128xbf16> to vector<128x128xbf16>
    %c6 = arith.constant 6 : index
    %c0_51 = arith.constant 0 : index
    %c0_52 = arith.constant 0 : index
    %60 = vector.load %arg2[%c6, %c0_51, %c0_52] : memref<27x128x128xbf16, #tpu.memory_space<vmem>>, vector<1x128x128xbf16>
    %61 = vector.shape_cast %60 : vector<1x128x128xbf16> to vector<128x128xbf16>
    %cst_53 = arith.constant dense<0.000000e+00> : vector<128x128xf32>
    %62 = tpu.matmul %59, %61, %cst_53 {dimension_numbers = #tpu.dot_dimension_numbers<[1], [0], [0], [1], [0, 0, 1, 1], [], []>} : vector<128x128xbf16>, vector<128x128xbf16>, vector<128x128xf32> -> vector<128x128xf32>
    %63 = arith.addf %54, %62 : vector<128x128xf32>
    %c2_i32_54 = arith.constant 2 : i32
    %64 = arith.muli %arg0, %c2_i32_54 : i32
    %c0_i32_55 = arith.constant 0 : i32
    %65 = arith.addi %64, %c0_i32_55 : i32
    %66 = arith.index_cast %65 : i32 to index
    %c2_56 = arith.constant 2 : index
    %c1_57 = arith.constant 1 : index
    %c0_58 = arith.constant 0 : index
    %67 = vector.load %arg1[%66, %c2_56, %c1_57, %c0_58] : memref<10x10x10x128xbf16, #tpu.memory_space<vmem>>, vector<2x8x8x128xbf16>
    %68 = vector.shape_cast %67 : vector<2x8x8x128xbf16> to vector<128x128xbf16>
    %c7 = arith.constant 7 : index
    %c0_59 = arith.constant 0 : index
    %c0_60 = arith.constant 0 : index
    %69 = vector.load %arg2[%c7, %c0_59, %c0_60] : memref<27x128x128xbf16, #tpu.memory_space<vmem>>, vector<1x128x128xbf16>
    %70 = vector.shape_cast %69 : vector<1x128x128xbf16> to vector<128x128xbf16>
    %cst_61 = arith.constant dense<0.000000e+00> : vector<128x128xf32>
    %71 = tpu.matmul %68, %70, %cst_61 {dimension_numbers = #tpu.dot_dimension_numbers<[1], [0], [0], [1], [0, 0, 1, 1], [], []>} : vector<128x128xbf16>, vector<128x128xbf16>, vector<128x128xf32> -> vector<128x128xf32>
    %72 = arith.addf %63, %71 : vector<128x128xf32>
    %c2_i32_62 = arith.constant 2 : i32
    %73 = arith.muli %arg0, %c2_i32_62 : i32
    %c0_i32_63 = arith.constant 0 : i32
    %74 = arith.addi %73, %c0_i32_63 : i32
    %75 = arith.index_cast %74 : i32 to index
    %c2_64 = arith.constant 2 : index
    %c2_65 = arith.constant 2 : index
    %c0_66 = arith.constant 0 : index
    %76 = vector.load %arg1[%75, %c2_64, %c2_65, %c0_66] : memref<10x10x10x128xbf16, #tpu.memory_space<vmem>>, vector<2x8x8x128xbf16>
    %77 = vector.shape_cast %76 : vector<2x8x8x128xbf16> to vector<128x128xbf16>
    %c8 = arith.constant 8 : index
    %c0_67 = arith.constant 0 : index
    %c0_68 = arith.constant 0 : index
    %78 = vector.load %arg2[%c8, %c0_67, %c0_68] : memref<27x128x128xbf16, #tpu.memory_space<vmem>>, vector<1x128x128xbf16>
    %79 = vector.shape_cast %78 : vector<1x128x128xbf16> to vector<128x128xbf16>
    %cst_69 = arith.constant dense<0.000000e+00> : vector<128x128xf32>
    %80 = tpu.matmul %77, %79, %cst_69 {dimension_numbers = #tpu.dot_dimension_numbers<[1], [0], [0], [1], [0, 0, 1, 1], [], []>} : vector<128x128xbf16>, vector<128x128xbf16>, vector<128x128xf32> -> vector<128x128xf32>
    %81 = arith.addf %72, %80 : vector<128x128xf32>
    %c2_i32_70 = arith.constant 2 : i32
    %82 = arith.muli %arg0, %c2_i32_70 : i32
    %c1_i32 = arith.constant 1 : i32
    %83 = arith.addi %82, %c1_i32 : i32
    %84 = arith.index_cast %83 : i32 to index
    %c0_71 = arith.constant 0 : index
    %c0_72 = arith.constant 0 : index
    %c0_73 = arith.constant 0 : index
    %85 = vector.load %arg1[%84, %c0_71, %c0_72, %c0_73] : memref<10x10x10x128xbf16, #tpu.memory_space<vmem>>, vector<2x8x8x128xbf16>
    %86 = vector.shape_cast %85 : vector<2x8x8x128xbf16> to vector<128x128xbf16>
    %c9 = arith.constant 9 : index
    %c0_74 = arith.constant 0 : index
    %c0_75 = arith.constant 0 : index
    %87 = vector.load %arg2[%c9, %c0_74, %c0_75] : memref<27x128x128xbf16, #tpu.memory_space<vmem>>, vector<1x128x128xbf16>
    %88 = vector.shape_cast %87 : vector<1x128x128xbf16> to vector<128x128xbf16>
    %cst_76 = arith.constant dense<0.000000e+00> : vector<128x128xf32>
    %89 = tpu.matmul %86, %88, %cst_76 {dimension_numbers = #tpu.dot_dimension_numbers<[1], [0], [0], [1], [0, 0, 1, 1], [], []>} : vector<128x128xbf16>, vector<128x128xbf16>, vector<128x128xf32> -> vector<128x128xf32>
    %90 = arith.addf %81, %89 : vector<128x128xf32>
    %c2_i32_77 = arith.constant 2 : i32
    %91 = arith.muli %arg0, %c2_i32_77 : i32
    %c1_i32_78 = arith.constant 1 : i32
    %92 = arith.addi %91, %c1_i32_78 : i32
    %93 = arith.index_cast %92 : i32 to index
    %c0_79 = arith.constant 0 : index
    %c1_80 = arith.constant 1 : index
    %c0_81 = arith.constant 0 : index
    %94 = vector.load %arg1[%93, %c0_79, %c1_80, %c0_81] : memref<10x10x10x128xbf16, #tpu.memory_space<vmem>>, vector<2x8x8x128xbf16>
    %95 = vector.shape_cast %94 : vector<2x8x8x128xbf16> to vector<128x128xbf16>
    %c10 = arith.constant 10 : index
    %c0_82 = arith.constant 0 : index
    %c0_83 = arith.constant 0 : index
    %96 = vector.load %arg2[%c10, %c0_82, %c0_83] : memref<27x128x128xbf16, #tpu.memory_space<vmem>>, vector<1x128x128xbf16>
    %97 = vector.shape_cast %96 : vector<1x128x128xbf16> to vector<128x128xbf16>
    %cst_84 = arith.constant dense<0.000000e+00> : vector<128x128xf32>
    %98 = tpu.matmul %95, %97, %cst_84 {dimension_numbers = #tpu.dot_dimension_numbers<[1], [0], [0], [1], [0, 0, 1, 1], [], []>} : vector<128x128xbf16>, vector<128x128xbf16>, vector<128x128xf32> -> vector<128x128xf32>
    %99 = arith.addf %90, %98 : vector<128x128xf32>
    %c2_i32_85 = arith.constant 2 : i32
    %100 = arith.muli %arg0, %c2_i32_85 : i32
    %c1_i32_86 = arith.constant 1 : i32
    %101 = arith.addi %100, %c1_i32_86 : i32
    %102 = arith.index_cast %101 : i32 to index
    %c0_87 = arith.constant 0 : index
    %c2_88 = arith.constant 2 : index
    %c0_89 = arith.constant 0 : index
    %103 = vector.load %arg1[%102, %c0_87, %c2_88, %c0_89] : memref<10x10x10x128xbf16, #tpu.memory_space<vmem>>, vector<2x8x8x128xbf16>
    %104 = vector.shape_cast %103 : vector<2x8x8x128xbf16> to vector<128x128xbf16>
    %c11 = arith.constant 11 : index
    %c0_90 = arith.constant 0 : index
    %c0_91 = arith.constant 0 : index
    %105 = vector.load %arg2[%c11, %c0_90, %c0_91] : memref<27x128x128xbf16, #tpu.memory_space<vmem>>, vector<1x128x128xbf16>
    %106 = vector.shape_cast %105 : vector<1x128x128xbf16> to vector<128x128xbf16>
    %cst_92 = arith.constant dense<0.000000e+00> : vector<128x128xf32>
    %107 = tpu.matmul %104, %106, %cst_92 {dimension_numbers = #tpu.dot_dimension_numbers<[1], [0], [0], [1], [0, 0, 1, 1], [], []>} : vector<128x128xbf16>, vector<128x128xbf16>, vector<128x128xf32> -> vector<128x128xf32>
    %108 = arith.addf %99, %107 : vector<128x128xf32>
    %c2_i32_93 = arith.constant 2 : i32
    %109 = arith.muli %arg0, %c2_i32_93 : i32
    %c1_i32_94 = arith.constant 1 : i32
    %110 = arith.addi %109, %c1_i32_94 : i32
    %111 = arith.index_cast %110 : i32 to index
    %c1_95 = arith.constant 1 : index
    %c0_96 = arith.constant 0 : index
    %c0_97 = arith.constant 0 : index
    %112 = vector.load %arg1[%111, %c1_95, %c0_96, %c0_97] : memref<10x10x10x128xbf16, #tpu.memory_space<vmem>>, vector<2x8x8x128xbf16>
    %113 = vector.shape_cast %112 : vector<2x8x8x128xbf16> to vector<128x128xbf16>
    %c12 = arith.constant 12 : index
    %c0_98 = arith.constant 0 : index
    %c0_99 = arith.constant 0 : index
    %114 = vector.load %arg2[%c12, %c0_98, %c0_99] : memref<27x128x128xbf16, #tpu.memory_space<vmem>>, vector<1x128x128xbf16>
    %115 = vector.shape_cast %114 : vector<1x128x128xbf16> to vector<128x128xbf16>
    %cst_100 = arith.constant dense<0.000000e+00> : vector<128x128xf32>
    %116 = tpu.matmul %113, %115, %cst_100 {dimension_numbers = #tpu.dot_dimension_numbers<[1], [0], [0], [1], [0, 0, 1, 1], [], []>} : vector<128x128xbf16>, vector<128x128xbf16>, vector<128x128xf32> -> vector<128x128xf32>
    %117 = arith.addf %108, %116 : vector<128x128xf32>
    %c2_i32_101 = arith.constant 2 : i32
    %118 = arith.muli %arg0, %c2_i32_101 : i32
    %c1_i32_102 = arith.constant 1 : i32
    %119 = arith.addi %118, %c1_i32_102 : i32
    %120 = arith.index_cast %119 : i32 to index
    %c1_103 = arith.constant 1 : index
    %c1_104 = arith.constant 1 : index
    %c0_105 = arith.constant 0 : index
    %121 = vector.load %arg1[%120, %c1_103, %c1_104, %c0_105] : memref<10x10x10x128xbf16, #tpu.memory_space<vmem>>, vector<2x8x8x128xbf16>
    %122 = vector.shape_cast %121 : vector<2x8x8x128xbf16> to vector<128x128xbf16>
    %c13 = arith.constant 13 : index
    %c0_106 = arith.constant 0 : index
    %c0_107 = arith.constant 0 : index
    %123 = vector.load %arg2[%c13, %c0_106, %c0_107] : memref<27x128x128xbf16, #tpu.memory_space<vmem>>, vector<1x128x128xbf16>
    %124 = vector.shape_cast %123 : vector<1x128x128xbf16> to vector<128x128xbf16>
    %cst_108 = arith.constant dense<0.000000e+00> : vector<128x128xf32>
    %125 = tpu.matmul %122, %124, %cst_108 {dimension_numbers = #tpu.dot_dimension_numbers<[1], [0], [0], [1], [0, 0, 1, 1], [], []>} : vector<128x128xbf16>, vector<128x128xbf16>, vector<128x128xf32> -> vector<128x128xf32>
    %126 = arith.addf %117, %125 : vector<128x128xf32>
    %c2_i32_109 = arith.constant 2 : i32
    %127 = arith.muli %arg0, %c2_i32_109 : i32
    %c1_i32_110 = arith.constant 1 : i32
    %128 = arith.addi %127, %c1_i32_110 : i32
    %129 = arith.index_cast %128 : i32 to index
    %c1_111 = arith.constant 1 : index
    %c2_112 = arith.constant 2 : index
    %c0_113 = arith.constant 0 : index
    %130 = vector.load %arg1[%129, %c1_111, %c2_112, %c0_113] : memref<10x10x10x128xbf16, #tpu.memory_space<vmem>>, vector<2x8x8x128xbf16>
    %131 = vector.shape_cast %130 : vector<2x8x8x128xbf16> to vector<128x128xbf16>
    %c14 = arith.constant 14 : index
    %c0_114 = arith.constant 0 : index
    %c0_115 = arith.constant 0 : index
    %132 = vector.load %arg2[%c14, %c0_114, %c0_115] : memref<27x128x128xbf16, #tpu.memory_space<vmem>>, vector<1x128x128xbf16>
    %133 = vector.shape_cast %132 : vector<1x128x128xbf16> to vector<128x128xbf16>
    %cst_116 = arith.constant dense<0.000000e+00> : vector<128x128xf32>
    %134 = tpu.matmul %131, %133, %cst_116 {dimension_numbers = #tpu.dot_dimension_numbers<[1], [0], [0], [1], [0, 0, 1, 1], [], []>} : vector<128x128xbf16>, vector<128x128xbf16>, vector<128x128xf32> -> vector<128x128xf32>
    %135 = arith.addf %126, %134 : vector<128x128xf32>
    %c2_i32_117 = arith.constant 2 : i32
    %136 = arith.muli %arg0, %c2_i32_117 : i32
    %c1_i32_118 = arith.constant 1 : i32
    %137 = arith.addi %136, %c1_i32_118 : i32
    %138 = arith.index_cast %137 : i32 to index
    %c2_119 = arith.constant 2 : index
    %c0_120 = arith.constant 0 : index
    %c0_121 = arith.constant 0 : index
    %139 = vector.load %arg1[%138, %c2_119, %c0_120, %c0_121] : memref<10x10x10x128xbf16, #tpu.memory_space<vmem>>, vector<2x8x8x128xbf16>
    %140 = vector.shape_cast %139 : vector<2x8x8x128xbf16> to vector<128x128xbf16>
    %c15 = arith.constant 15 : index
    %c0_122 = arith.constant 0 : index
    %c0_123 = arith.constant 0 : index
    %141 = vector.load %arg2[%c15, %c0_122, %c0_123] : memref<27x128x128xbf16, #tpu.memory_space<vmem>>, vector<1x128x128xbf16>
    %142 = vector.shape_cast %141 : vector<1x128x128xbf16> to vector<128x128xbf16>
    %cst_124 = arith.constant dense<0.000000e+00> : vector<128x128xf32>
    %143 = tpu.matmul %140, %142, %cst_124 {dimension_numbers = #tpu.dot_dimension_numbers<[1], [0], [0], [1], [0, 0, 1, 1], [], []>} : vector<128x128xbf16>, vector<128x128xbf16>, vector<128x128xf32> -> vector<128x128xf32>
    %144 = arith.addf %135, %143 : vector<128x128xf32>
    %c2_i32_125 = arith.constant 2 : i32
    %145 = arith.muli %arg0, %c2_i32_125 : i32
    %c1_i32_126 = arith.constant 1 : i32
    %146 = arith.addi %145, %c1_i32_126 : i32
    %147 = arith.index_cast %146 : i32 to index
    %c2_127 = arith.constant 2 : index
    %c1_128 = arith.constant 1 : index
    %c0_129 = arith.constant 0 : index
    %148 = vector.load %arg1[%147, %c2_127, %c1_128, %c0_129] : memref<10x10x10x128xbf16, #tpu.memory_space<vmem>>, vector<2x8x8x128xbf16>
    %149 = vector.shape_cast %148 : vector<2x8x8x128xbf16> to vector<128x128xbf16>
    %c16 = arith.constant 16 : index
    %c0_130 = arith.constant 0 : index
    %c0_131 = arith.constant 0 : index
    %150 = vector.load %arg2[%c16, %c0_130, %c0_131] : memref<27x128x128xbf16, #tpu.memory_space<vmem>>, vector<1x128x128xbf16>
    %151 = vector.shape_cast %150 : vector<1x128x128xbf16> to vector<128x128xbf16>
    %cst_132 = arith.constant dense<0.000000e+00> : vector<128x128xf32>
    %152 = tpu.matmul %149, %151, %cst_132 {dimension_numbers = #tpu.dot_dimension_numbers<[1], [0], [0], [1], [0, 0, 1, 1], [], []>} : vector<128x128xbf16>, vector<128x128xbf16>, vector<128x128xf32> -> vector<128x128xf32>
    %153 = arith.addf %144, %152 : vector<128x128xf32>
    %c2_i32_133 = arith.constant 2 : i32
    %154 = arith.muli %arg0, %c2_i32_133 : i32
    %c1_i32_134 = arith.constant 1 : i32
    %155 = arith.addi %154, %c1_i32_134 : i32
    %156 = arith.index_cast %155 : i32 to index
    %c2_135 = arith.constant 2 : index
    %c2_136 = arith.constant 2 : index
    %c0_137 = arith.constant 0 : index
    %157 = vector.load %arg1[%156, %c2_135, %c2_136, %c0_137] : memref<10x10x10x128xbf16, #tpu.memory_space<vmem>>, vector<2x8x8x128xbf16>
    %158 = vector.shape_cast %157 : vector<2x8x8x128xbf16> to vector<128x128xbf16>
    %c17 = arith.constant 17 : index
    %c0_138 = arith.constant 0 : index
    %c0_139 = arith.constant 0 : index
    %159 = vector.load %arg2[%c17, %c0_138, %c0_139] : memref<27x128x128xbf16, #tpu.memory_space<vmem>>, vector<1x128x128xbf16>
    %160 = vector.shape_cast %159 : vector<1x128x128xbf16> to vector<128x128xbf16>
    %cst_140 = arith.constant dense<0.000000e+00> : vector<128x128xf32>
    %161 = tpu.matmul %158, %160, %cst_140 {dimension_numbers = #tpu.dot_dimension_numbers<[1], [0], [0], [1], [0, 0, 1, 1], [], []>} : vector<128x128xbf16>, vector<128x128xbf16>, vector<128x128xf32> -> vector<128x128xf32>
    %162 = arith.addf %153, %161 : vector<128x128xf32>
    %c2_i32_141 = arith.constant 2 : i32
    %163 = arith.muli %arg0, %c2_i32_141 : i32
    %c2_i32_142 = arith.constant 2 : i32
    %164 = arith.addi %163, %c2_i32_142 : i32
    %165 = arith.index_cast %164 : i32 to index
    %c0_143 = arith.constant 0 : index
    %c0_144 = arith.constant 0 : index
    %c0_145 = arith.constant 0 : index
    %166 = vector.load %arg1[%165, %c0_143, %c0_144, %c0_145] : memref<10x10x10x128xbf16, #tpu.memory_space<vmem>>, vector<2x8x8x128xbf16>
    %167 = vector.shape_cast %166 : vector<2x8x8x128xbf16> to vector<128x128xbf16>
    %c18 = arith.constant 18 : index
    %c0_146 = arith.constant 0 : index
    %c0_147 = arith.constant 0 : index
    %168 = vector.load %arg2[%c18, %c0_146, %c0_147] : memref<27x128x128xbf16, #tpu.memory_space<vmem>>, vector<1x128x128xbf16>
    %169 = vector.shape_cast %168 : vector<1x128x128xbf16> to vector<128x128xbf16>
    %cst_148 = arith.constant dense<0.000000e+00> : vector<128x128xf32>
    %170 = tpu.matmul %167, %169, %cst_148 {dimension_numbers = #tpu.dot_dimension_numbers<[1], [0], [0], [1], [0, 0, 1, 1], [], []>} : vector<128x128xbf16>, vector<128x128xbf16>, vector<128x128xf32> -> vector<128x128xf32>
    %171 = arith.addf %162, %170 : vector<128x128xf32>
    %c2_i32_149 = arith.constant 2 : i32
    %172 = arith.muli %arg0, %c2_i32_149 : i32
    %c2_i32_150 = arith.constant 2 : i32
    %173 = arith.addi %172, %c2_i32_150 : i32
    %174 = arith.index_cast %173 : i32 to index
    %c0_151 = arith.constant 0 : index
    %c1_152 = arith.constant 1 : index
    %c0_153 = arith.constant 0 : index
    %175 = vector.load %arg1[%174, %c0_151, %c1_152, %c0_153] : memref<10x10x10x128xbf16, #tpu.memory_space<vmem>>, vector<2x8x8x128xbf16>
    %176 = vector.shape_cast %175 : vector<2x8x8x128xbf16> to vector<128x128xbf16>
    %c19 = arith.constant 19 : index
    %c0_154 = arith.constant 0 : index
    %c0_155 = arith.constant 0 : index
    %177 = vector.load %arg2[%c19, %c0_154, %c0_155] : memref<27x128x128xbf16, #tpu.memory_space<vmem>>, vector<1x128x128xbf16>
    %178 = vector.shape_cast %177 : vector<1x128x128xbf16> to vector<128x128xbf16>
    %cst_156 = arith.constant dense<0.000000e+00> : vector<128x128xf32>
    %179 = tpu.matmul %176, %178, %cst_156 {dimension_numbers = #tpu.dot_dimension_numbers<[1], [0], [0], [1], [0, 0, 1, 1], [], []>} : vector<128x128xbf16>, vector<128x128xbf16>, vector<128x128xf32> -> vector<128x128xf32>
    %180 = arith.addf %171, %179 : vector<128x128xf32>
    %c2_i32_157 = arith.constant 2 : i32
    %181 = arith.muli %arg0, %c2_i32_157 : i32
    %c2_i32_158 = arith.constant 2 : i32
    %182 = arith.addi %181, %c2_i32_158 : i32
    %183 = arith.index_cast %182 : i32 to index
    %c0_159 = arith.constant 0 : index
    %c2_160 = arith.constant 2 : index
    %c0_161 = arith.constant 0 : index
    %184 = vector.load %arg1[%183, %c0_159, %c2_160, %c0_161] : memref<10x10x10x128xbf16, #tpu.memory_space<vmem>>, vector<2x8x8x128xbf16>
    %185 = vector.shape_cast %184 : vector<2x8x8x128xbf16> to vector<128x128xbf16>
    %c20 = arith.constant 20 : index
    %c0_162 = arith.constant 0 : index
    %c0_163 = arith.constant 0 : index
    %186 = vector.load %arg2[%c20, %c0_162, %c0_163] : memref<27x128x128xbf16, #tpu.memory_space<vmem>>, vector<1x128x128xbf16>
    %187 = vector.shape_cast %186 : vector<1x128x128xbf16> to vector<128x128xbf16>
    %cst_164 = arith.constant dense<0.000000e+00> : vector<128x128xf32>
    %188 = tpu.matmul %185, %187, %cst_164 {dimension_numbers = #tpu.dot_dimension_numbers<[1], [0], [0], [1], [0, 0, 1, 1], [], []>} : vector<128x128xbf16>, vector<128x128xbf16>, vector<128x128xf32> -> vector<128x128xf32>
    %189 = arith.addf %180, %188 : vector<128x128xf32>
    %c2_i32_165 = arith.constant 2 : i32
    %190 = arith.muli %arg0, %c2_i32_165 : i32
    %c2_i32_166 = arith.constant 2 : i32
    %191 = arith.addi %190, %c2_i32_166 : i32
    %192 = arith.index_cast %191 : i32 to index
    %c1_167 = arith.constant 1 : index
    %c0_168 = arith.constant 0 : index
    %c0_169 = arith.constant 0 : index
    %193 = vector.load %arg1[%192, %c1_167, %c0_168, %c0_169] : memref<10x10x10x128xbf16, #tpu.memory_space<vmem>>, vector<2x8x8x128xbf16>
    %194 = vector.shape_cast %193 : vector<2x8x8x128xbf16> to vector<128x128xbf16>
    %c21 = arith.constant 21 : index
    %c0_170 = arith.constant 0 : index
    %c0_171 = arith.constant 0 : index
    %195 = vector.load %arg2[%c21, %c0_170, %c0_171] : memref<27x128x128xbf16, #tpu.memory_space<vmem>>, vector<1x128x128xbf16>
    %196 = vector.shape_cast %195 : vector<1x128x128xbf16> to vector<128x128xbf16>
    %cst_172 = arith.constant dense<0.000000e+00> : vector<128x128xf32>
    %197 = tpu.matmul %194, %196, %cst_172 {dimension_numbers = #tpu.dot_dimension_numbers<[1], [0], [0], [1], [0, 0, 1, 1], [], []>} : vector<128x128xbf16>, vector<128x128xbf16>, vector<128x128xf32> -> vector<128x128xf32>
    %198 = arith.addf %189, %197 : vector<128x128xf32>
    %c2_i32_173 = arith.constant 2 : i32
    %199 = arith.muli %arg0, %c2_i32_173 : i32
    %c2_i32_174 = arith.constant 2 : i32
    %200 = arith.addi %199, %c2_i32_174 : i32
    %201 = arith.index_cast %200 : i32 to index
    %c1_175 = arith.constant 1 : index
    %c1_176 = arith.constant 1 : index
    %c0_177 = arith.constant 0 : index
    %202 = vector.load %arg1[%201, %c1_175, %c1_176, %c0_177] : memref<10x10x10x128xbf16, #tpu.memory_space<vmem>>, vector<2x8x8x128xbf16>
    %203 = vector.shape_cast %202 : vector<2x8x8x128xbf16> to vector<128x128xbf16>
    %c22 = arith.constant 22 : index
    %c0_178 = arith.constant 0 : index
    %c0_179 = arith.constant 0 : index
    %204 = vector.load %arg2[%c22, %c0_178, %c0_179] : memref<27x128x128xbf16, #tpu.memory_space<vmem>>, vector<1x128x128xbf16>
    %205 = vector.shape_cast %204 : vector<1x128x128xbf16> to vector<128x128xbf16>
    %cst_180 = arith.constant dense<0.000000e+00> : vector<128x128xf32>
    %206 = tpu.matmul %203, %205, %cst_180 {dimension_numbers = #tpu.dot_dimension_numbers<[1], [0], [0], [1], [0, 0, 1, 1], [], []>} : vector<128x128xbf16>, vector<128x128xbf16>, vector<128x128xf32> -> vector<128x128xf32>
    %207 = arith.addf %198, %206 : vector<128x128xf32>
    %c2_i32_181 = arith.constant 2 : i32
    %208 = arith.muli %arg0, %c2_i32_181 : i32
    %c2_i32_182 = arith.constant 2 : i32
    %209 = arith.addi %208, %c2_i32_182 : i32
    %210 = arith.index_cast %209 : i32 to index
    %c1_183 = arith.constant 1 : index
    %c2_184 = arith.constant 2 : index
    %c0_185 = arith.constant 0 : index
    %211 = vector.load %arg1[%210, %c1_183, %c2_184, %c0_185] : memref<10x10x10x128xbf16, #tpu.memory_space<vmem>>, vector<2x8x8x128xbf16>
    %212 = vector.shape_cast %211 : vector<2x8x8x128xbf16> to vector<128x128xbf16>
    %c23 = arith.constant 23 : index
    %c0_186 = arith.constant 0 : index
    %c0_187 = arith.constant 0 : index
    %213 = vector.load %arg2[%c23, %c0_186, %c0_187] : memref<27x128x128xbf16, #tpu.memory_space<vmem>>, vector<1x128x128xbf16>
    %214 = vector.shape_cast %213 : vector<1x128x128xbf16> to vector<128x128xbf16>
    %cst_188 = arith.constant dense<0.000000e+00> : vector<128x128xf32>
    %215 = tpu.matmul %212, %214, %cst_188 {dimension_numbers = #tpu.dot_dimension_numbers<[1], [0], [0], [1], [0, 0, 1, 1], [], []>} : vector<128x128xbf16>, vector<128x128xbf16>, vector<128x128xf32> -> vector<128x128xf32>
    %216 = arith.addf %207, %215 : vector<128x128xf32>
    %c2_i32_189 = arith.constant 2 : i32
    %217 = arith.muli %arg0, %c2_i32_189 : i32
    %c2_i32_190 = arith.constant 2 : i32
    %218 = arith.addi %217, %c2_i32_190 : i32
    %219 = arith.index_cast %218 : i32 to index
    %c2_191 = arith.constant 2 : index
    %c0_192 = arith.constant 0 : index
    %c0_193 = arith.constant 0 : index
    %220 = vector.load %arg1[%219, %c2_191, %c0_192, %c0_193] : memref<10x10x10x128xbf16, #tpu.memory_space<vmem>>, vector<2x8x8x128xbf16>
    %221 = vector.shape_cast %220 : vector<2x8x8x128xbf16> to vector<128x128xbf16>
    %c24 = arith.constant 24 : index
    %c0_194 = arith.constant 0 : index
    %c0_195 = arith.constant 0 : index
    %222 = vector.load %arg2[%c24, %c0_194, %c0_195] : memref<27x128x128xbf16, #tpu.memory_space<vmem>>, vector<1x128x128xbf16>
    %223 = vector.shape_cast %222 : vector<1x128x128xbf16> to vector<128x128xbf16>
    %cst_196 = arith.constant dense<0.000000e+00> : vector<128x128xf32>
    %224 = tpu.matmul %221, %223, %cst_196 {dimension_numbers = #tpu.dot_dimension_numbers<[1], [0], [0], [1], [0, 0, 1, 1], [], []>} : vector<128x128xbf16>, vector<128x128xbf16>, vector<128x128xf32> -> vector<128x128xf32>
    %225 = arith.addf %216, %224 : vector<128x128xf32>
    %c2_i32_197 = arith.constant 2 : i32
    %226 = arith.muli %arg0, %c2_i32_197 : i32
    %c2_i32_198 = arith.constant 2 : i32
    %227 = arith.addi %226, %c2_i32_198 : i32
    %228 = arith.index_cast %227 : i32 to index
    %c2_199 = arith.constant 2 : index
    %c1_200 = arith.constant 1 : index
    %c0_201 = arith.constant 0 : index
    %229 = vector.load %arg1[%228, %c2_199, %c1_200, %c0_201] : memref<10x10x10x128xbf16, #tpu.memory_space<vmem>>, vector<2x8x8x128xbf16>
    %230 = vector.shape_cast %229 : vector<2x8x8x128xbf16> to vector<128x128xbf16>
    %c25 = arith.constant 25 : index
    %c0_202 = arith.constant 0 : index
    %c0_203 = arith.constant 0 : index
    %231 = vector.load %arg2[%c25, %c0_202, %c0_203] : memref<27x128x128xbf16, #tpu.memory_space<vmem>>, vector<1x128x128xbf16>
    %232 = vector.shape_cast %231 : vector<1x128x128xbf16> to vector<128x128xbf16>
    %cst_204 = arith.constant dense<0.000000e+00> : vector<128x128xf32>
    %233 = tpu.matmul %230, %232, %cst_204 {dimension_numbers = #tpu.dot_dimension_numbers<[1], [0], [0], [1], [0, 0, 1, 1], [], []>} : vector<128x128xbf16>, vector<128x128xbf16>, vector<128x128xf32> -> vector<128x128xf32>
    %234 = arith.addf %225, %233 : vector<128x128xf32>
    %c2_i32_205 = arith.constant 2 : i32
    %235 = arith.muli %arg0, %c2_i32_205 : i32
    %c2_i32_206 = arith.constant 2 : i32
    %236 = arith.addi %235, %c2_i32_206 : i32
    %237 = arith.index_cast %236 : i32 to index
    %c2_207 = arith.constant 2 : index
    %c2_208 = arith.constant 2 : index
    %c0_209 = arith.constant 0 : index
    %238 = vector.load %arg1[%237, %c2_207, %c2_208, %c0_209] : memref<10x10x10x128xbf16, #tpu.memory_space<vmem>>, vector<2x8x8x128xbf16>
    %239 = vector.shape_cast %238 : vector<2x8x8x128xbf16> to vector<128x128xbf16>
    %c26 = arith.constant 26 : index
    %c0_210 = arith.constant 0 : index
    %c0_211 = arith.constant 0 : index
    %240 = vector.load %arg2[%c26, %c0_210, %c0_211] : memref<27x128x128xbf16, #tpu.memory_space<vmem>>, vector<1x128x128xbf16>
    %241 = vector.shape_cast %240 : vector<1x128x128xbf16> to vector<128x128xbf16>
    %cst_212 = arith.constant dense<0.000000e+00> : vector<128x128xf32>
    %242 = tpu.matmul %239, %241, %cst_212 {dimension_numbers = #tpu.dot_dimension_numbers<[1], [0], [0], [1], [0, 0, 1, 1], [], []>} : vector<128x128xbf16>, vector<128x128xbf16>, vector<128x128xf32> -> vector<128x128xf32>
    %243 = arith.addf %234, %242 : vector<128x128xf32>
    %c0_213 = arith.constant 0 : index
    %c0_214 = arith.constant 0 : index
    %244 = vector.load %arg3[%c0_213, %c0_214] : memref<128x128xf32, #tpu.memory_space<vmem>>, vector<128x128xf32>
    tpu.vector_store %arg3[%c0_213, %c0_214], %243 {strides = array<i32>} : memref<128x128xf32, #tpu.memory_space<vmem>>, vector<128x128xf32>,
    %cst_215 = arith.constant dense<0.000000e+00> : vector<128xf32>
    %245 = vector.multi_reduction <add>, %243, %cst_215 [0] : vector<128x128xf32> to vector<128xf32>
    %246 = vector.shape_cast %245 : vector<128xf32> to vector<1x128xf32>
    %247 = arith.mulf %243, %243 : vector<128x128xf32>
    %cst_216 = arith.constant dense<0.000000e+00> : vector<128xf32>
    %248 = vector.multi_reduction <add>, %247, %cst_216 [0] : vector<128x128xf32> to vector<128xf32>
    %249 = vector.shape_cast %248 : vector<128xf32> to vector<1x128xf32>
    %250 = tpu.concatenate %246, %249 in 0 : vector<1x128xf32>, vector<1x128xf32> -> vector<2x128xf32>
    %251 = vector.shape_cast %250 : vector<2x128xf32> to vector<1x2x128xf32>
    %c0_217 = arith.constant 0 : index
    %c0_218 = arith.constant 0 : index
    %c0_219 = arith.constant 0 : index
    %252 = vector.load %arg4[%c0_217, %c0_218, %c0_219] : memref<1x2x128xf32, #tpu.memory_space<vmem>>, vector<1x2x128xf32>
    tpu.vector_store %arg4[%c0_217, %c0_218, %c0_219], %251 {strides = array<i32>} : memref<1x2x128xf32, #tpu.memory_space<vmem>>, vector<1x2x128xf32>,
    return
  }
  func.func @transform_0(%arg0: i32) -> (i32, i32, i32, i32) {
    %c0_i32 = arith.constant 0 : i32
    %c0_i32_0 = arith.constant 0 : i32
    %c0_i32_1 = arith.constant 0 : i32
    %c0_i32_2 = arith.constant 0 : i32
    %c0_i32_3 = arith.constant 0 : i32
    return %c0_i32, %c0_i32_0, %c0_i32_1, %c0_i32_2 : i32, i32, i32, i32
  }
  func.func @transform_1(%arg0: i32) -> (i32, i32, i32) {
    %c0_i32 = arith.constant 0 : i32
    %c0_i32_0 = arith.constant 0 : i32
    %c0_i32_1 = arith.constant 0 : i32
    %c0_i32_2 = arith.constant 0 : i32
    return %c0_i32, %c0_i32_0, %c0_i32_1 : i32, i32, i32
  }
  func.func @transform_2(%arg0: i32) -> (i32, i32) {
    %c0_i32 = arith.constant 0 : i32
    %c0_i32_0 = arith.constant 0 : i32
    return %arg0, %c0_i32 : i32, i32
  }
  func.func @transform_3(%arg0: i32) -> (i32, i32, i32) {
    %c0_i32 = arith.constant 0 : i32
    %c0_i32_0 = arith.constant 0 : i32
    %c0_i32_1 = arith.constant 0 : i32
    return %arg0, %c0_i32, %c0_i32_0 : i32, i32, i32
  }
}

module attributes {stable_mosaic.version = 11 : i64} {
  func.func @_bn_relu_kernel(%arg0: i32, %arg1: memref<128x128xf32, #tpu.memory_space<vmem>>, %arg2: memref<4x2x128xf32, #tpu.memory_space<vmem>>, %arg3: memref<1x128xf32, #tpu.memory_space<vmem>>, %arg4: memref<1x128xf32, #tpu.memory_space<vmem>>, %arg5: memref<128x128xf32, #tpu.memory_space<vmem>>) attributes {dimension_semantics = [#tpu.dimension_semantics<parallel>], iteration_bounds = array<i64: 4>, scalar_prefetch = 0 : i64, scratch_operands = 0 : i64, tpu.core_type = #tpu.core_type<tc>, window_params = [{transform_indices = @transform_0, window_bounds = array<i64: 128, 128>}, {pipeline_mode = #tpu.pipeline_mode<synchronous>, transform_indices = @transform_1, window_bounds = array<i64: 4, 2, 128>}, {pipeline_mode = #tpu.pipeline_mode<synchronous>, transform_indices = @transform_2, window_bounds = array<i64: 1, 128>}, {pipeline_mode = #tpu.pipeline_mode<synchronous>, transform_indices = @transform_3, window_bounds = array<i64: 1, 128>}, {transform_indices = @transform_4, window_bounds = array<i64: 128, 128>}]} {
    %c0 = arith.constant 0 : index
    %c0_0 = arith.constant 0 : index
    %c0_1 = arith.constant 0 : index
    %0 = vector.load %arg2[%c0, %c0_0, %c0_1] : memref<4x2x128xf32, #tpu.memory_space<vmem>>, vector<4x2x128xf32>
    %cst = arith.constant dense<0.000000e+00> : vector<2x128xf32>
    %1 = vector.multi_reduction <add>, %0, %cst [0] : vector<4x2x128xf32> to vector<2x128xf32>
    %2 = vector.extract_strided_slice %1 {offsets = [0, 0], sizes = [1, 128], strides = [1, 1]} : vector<2x128xf32> to vector<1x128xf32>
    %cst_2 = arith.constant 0.001953125 : f32
    %3 = vector.broadcast %cst_2 : f32 to vector<1x128xf32>
    %4 = arith.mulf %2, %3 : vector<1x128xf32>
    %5 = vector.extract_strided_slice %1 {offsets = [1, 0], sizes = [1, 128], strides = [1, 1]} : vector<2x128xf32> to vector<1x128xf32>
    %cst_3 = arith.constant 0.001953125 : f32
    %6 = vector.broadcast %cst_3 : f32 to vector<1x128xf32>
    %7 = arith.mulf %5, %6 : vector<1x128xf32>
    %8 = arith.mulf %4, %4 : vector<1x128xf32>
    %9 = arith.subf %7, %8 : vector<1x128xf32>
    %c0_4 = arith.constant 0 : index
    %c0_5 = arith.constant 0 : index
    %10 = vector.load %arg3[%c0_4, %c0_5] : memref<1x128xf32, #tpu.memory_space<vmem>>, vector<1x128xf32>
    %cst_6 = arith.constant 9.99999974E-6 : f32
    %11 = vector.broadcast %cst_6 : f32 to vector<1x128xf32>
    %12 = arith.addf %9, %11 : vector<1x128xf32>
    %13 = math.rsqrt %12 : vector<1x128xf32>
    %14 = arith.mulf %10, %13 : vector<1x128xf32>
    %c0_7 = arith.constant 0 : index
    %c0_8 = arith.constant 0 : index
    %15 = vector.load %arg4[%c0_7, %c0_8] : memref<1x128xf32, #tpu.memory_space<vmem>>, vector<1x128xf32>
    %16 = arith.mulf %4, %14 : vector<1x128xf32>
    %17 = arith.subf %15, %16 : vector<1x128xf32>
    %c0_9 = arith.constant 0 : index
    %c0_10 = arith.constant 0 : index
    %18 = vector.load %arg1[%c0_9, %c0_10] : memref<128x128xf32, #tpu.memory_space<vmem>>, vector<128x128xf32>
    %19 = vector.broadcast %14 : vector<1x128xf32> to vector<128x128xf32>
    %20 = arith.mulf %18, %19 : vector<128x128xf32>
    %21 = vector.broadcast %17 : vector<1x128xf32> to vector<128x128xf32>
    %22 = arith.addf %20, %21 : vector<128x128xf32>
    %cst_11 = arith.constant 0.000000e+00 : f32
    %23 = vector.broadcast %cst_11 : f32 to vector<128x128xf32>
    %24 = arith.maximumf %22, %23 : vector<128x128xf32>
    %c0_12 = arith.constant 0 : index
    %c0_13 = arith.constant 0 : index
    %25 = vector.load %arg5[%c0_12, %c0_13] : memref<128x128xf32, #tpu.memory_space<vmem>>, vector<128x128xf32>
    tpu.vector_store %arg5[%c0_12, %c0_13], %24 {strides = array<i32>} : memref<128x128xf32, #tpu.memory_space<vmem>>, vector<128x128xf32>,
    return
  }
  func.func @transform_0(%arg0: i32) -> (i32, i32) {
    %c0_i32 = arith.constant 0 : i32
    %c0_i32_0 = arith.constant 0 : i32
    return %arg0, %c0_i32 : i32, i32
  }
  func.func @transform_1(%arg0: i32) -> (i32, i32, i32) {
    %c0_i32 = arith.constant 0 : i32
    %c0_i32_0 = arith.constant 0 : i32
    %c0_i32_1 = arith.constant 0 : i32
    %c0_i32_2 = arith.constant 0 : i32
    return %c0_i32, %c0_i32_0, %c0_i32_1 : i32, i32, i32
  }
  func.func @transform_2(%arg0: i32) -> (i32, i32) {
    %c0_i32 = arith.constant 0 : i32
    %c0_i32_0 = arith.constant 0 : i32
    %c0_i32_1 = arith.constant 0 : i32
    return %c0_i32, %c0_i32_0 : i32, i32
  }
  func.func @transform_3(%arg0: i32) -> (i32, i32) {
    %c0_i32 = arith.constant 0 : i32
    %c0_i32_0 = arith.constant 0 : i32
    %c0_i32_1 = arith.constant 0 : i32
    return %c0_i32, %c0_i32_0 : i32, i32
  }
  func.func @transform_4(%arg0: i32) -> (i32, i32) {
    %c0_i32 = arith.constant 0 : i32
    %c0_i32_0 = arith.constant 0 : i32
    return %arg0, %c0_i32 : i32, i32
  }
}

</mosaic_0001>

<bundles_post_ra>
// kernel: basic_convolution_block.3
= control target key start
LH: loop header
LB: loop body
LE: loop exit
PB: predicated region body
PF: predicated region fallthrough
CT: control target
= control target key end

     0   :  { %s447_s15 = smov 0   ;;  %s525_s0 = inlined_call_operand.vmem [shape: f32[512,128], index: 0, kind: input, shape index: {}]   ;;  %s526_s1 = inlined_call_operand.vmem [shape: f32[4,2,128], index: 1, kind: input, shape index: {}]   ;;  %s527_s2 = inlined_call_operand.vmem [shape: f32[1,128], index: 2, kind: input, shape index: {}]   ;;  %s528_s3 = inlined_call_operand.vmem [shape: f32[1,128], index: 3, kind: input, shape index: {}]   ;;  %s529_s4 = inlined_call_operand.vmem [shape: f32[512,128], index: 4, kind: output, shape index: {}]  }
   0x1 LB: > { %s391_s16 = sadd.s32 4294967295, %s419_s15   ;;  %p395_p0 = scmp.ge.s32.totalorder %s419_s15, 1  ;;  %s419_s15 = sphi %s447_s15, %s14_s15  }
   0x2   : > { %p163_p1 = scmp.lt.s32.totalorder %s419_s15, 5 }
   0x4   : > { %p164_p2 = pnand %p395_p0, %p163_p1 }
   0x5   : > { %v201_v0 = vld [vmem:[%s526_s1] sm:$0x3] (!%p164_p2)  ;;  %v202_v1 = vld [vmem:[%s526_s1 + $0x2] sm:$0x3] (!%p164_p2)  ;;  %vm205_vm0 = vcmask (!%p164_p2), 1041408   ;;  %v226_v18 = vlaneseq (!%p164_p2)  ;;  %s396_s25 = sshll.u32 (!%p164_p2), %s391_s16, 4 }
   0x6   : > { %167 = sbr.rel (%p164_p2) target bundleno = 62 (0x3e), region = 36  ;;  %v203_v2 = vld [vmem:[%s526_s1 + $0x4] sm:$0x3] (!%p164_p2)  ;;  %v204_v3 = vld [vmem:[%s526_s1 + $0x6] sm:$0x3] (!%p164_p2)  ;;  %v206_v4 = vsel (!%p164_p2), %vm205_vm0, %v201_v0, 0.0 }
   0x7   : > { %v207_v5 = vsel (!%p164_p2), %vm205_vm0, %v202_v1, 0.0  ;;  %v209_v6 = vsel (!%p164_p2), %vm205_vm0, %v203_v2, 0.0  ;;  %v211_v8 = vsel (!%p164_p2), %vm205_vm0, %v204_v3, 0.0  ;;  %v421_v16 = vmov (!%p164_p2), 1966171168   ;;  %p190_p3 = scmp.lt.s32.totalorder (!%p164_p2), %s396_s25, 63 }
   0x8   : > { %v208_v7 = vadd.f32 (!%p164_p2), %v207_v5, %v206_v4  ;;  %v224_v17 = vunpack.c.l.s4 (!%p164_p2), %v421_v16  ;;  %v227_v20 = vshrl.u32 (!%p164_p2), %v226_v18, 7  ;;  %v219_v25 = vld [vmem:[%s527_s2] sm:$0x1] (!%p164_p2) }
   0x9   : > { %v240_v29 = vld [vmem:[%s528_s3] sm:$0x1] (!%p164_p2) }
   0xa   : > { %v210_v9 = vadd.f32 (!%p164_p2), %v209_v6, %v208_v7  ;;  %v225_v19 = vunpack.c.0.s8 (!%p164_p2), %v224_v17  ;;  %v262_v27 = vsub.s32 (!%p164_p2), 0, %v227_v20 }
   0xc   : > { %v212_v10 = vadd.f32 (!%p164_p2), %v211_v8, %v210_v9  ;;  %v228_v21 = vsub.s32 (!%p164_p2), %v225_v19, %v227_v20 }
   0xd   : > { %s531_s25 = smov (!%p190_p3, %s396_s25), 63 }
   0xe   : > { %v213_v11 = vmul.f32 0.001953125, %v212_v10  ;;  %s397_s26 = sshll.u32 %s531_s25, 3 }
   0xf   : > { %s475_s29 = scalar_lea.vmem %s525_s0, %s397_s26  ;;  %s502_s10 = scalar_lea.vmem %s529_s4, %s397_s26 }
  0x10   : > { %v214_v12 = vmul.f32 %v213_v11, %v213_v11  ;;  %v243_v30 = vld [vmem:[%s475_s29] sm:$0xff]  ;;  %v244_v31 = vld [vmem:[%s475_s29 + $0x8] sm:$0xff]  ;;  %v245_v32 = vld [vmem:[%s475_s29 + $0x10] sm:$0xff] }
  0x11   : > { %v246_v33 = vld [vmem:[%s475_s29 + $0x18] sm:$0xff]  ;;  %v247_v34 = vld [vmem:[%s475_s29 + $0x20] sm:$0xff]  ;;  %v248_v37 = vld [vmem:[%s475_s29 + $0x28] sm:$0xff] }
  0x12   : > { %v216_v13 = vrot.slane %v214_v12, 7  ;;  %v249_v38 = vld [vmem:[%s475_s29 + $0x30] sm:$0xff]  ;;  %v250_v39 = vld [vmem:[%s475_s29 + $0x38] sm:$0xff]  ;;  %v251_v40 = vld [vmem:[%s475_s29 + $0x40] sm:$0xff] }
  0x13   : > { %v252_v41 = vld [vmem:[%s475_s29 + $0x48] sm:$0xff]  ;;  %v253_v42 = vld [vmem:[%s475_s29 + $0x50] sm:$0xff]  ;;  %v254_v47 = vld [vmem:[%s475_s29 + $0x58] sm:$0xff] }
  0x14   : > { %v218_v14 = vsub.f32 %v213_v11, %v216_v13  ;;  %v255_v48 = vld [vmem:[%s475_s29 + $0x60] sm:$0xff]  ;;  %v256_v49 = vld [vmem:[%s475_s29 + $0x68] sm:$0xff]  ;;  %v257_v10 = vld [vmem:[%s475_s29 + $0x70] sm:$0xff] }
  0x16   : > { %v220_v15 = vadd.f32 1e-05, %v218_v14 }
  0x18   : > { %411 = vrsqrt.f32 %v220_v15 }
  0x22   : > { %v412_v22 = vpop.eup %411 }
  0x23   : > { %v229_v23 = vrot.slane %v412_v22, %v228_v21 }
  0x25   : > { %v230_v24 = vcombine.high %v229_v23, %v229_v23 }
  0x27   : > { %v237_v26 = vrot.slane %v230_v24, %v228_v21 }
  0x29   : > { %v239_v28 = vmul.f32 %v237_v26, %v219_v25 }
  0x2b   : > { %v241_v35 = vmul.f32 %v239_v28, %v213_v11  ;;  %v263_v36 = vrot.slane %v239_v28, %v262_v27  ;;  %v258_v11 = vld [vmem:[%s475_s29 + $0x78] sm:$0xff] }
  0x2d   : > { %v242_v43 = vsub.f32 %v240_v29, %v241_v35  ;;  %v265_v44 = vmul.f32 %v263_v36, %v243_v30  ;;  %v266_v45 = vmul.f32 %v263_v36, %v244_v31  ;;  %v267_v46 = vmul.f32 %v263_v36, %v245_v32 }
  0x2e   : > { %v268_v50 = vmul.f32 %v263_v36, %v246_v33  ;;  %v269_v51 = vmul.f32 %v263_v36, %v247_v34  ;;  %v270_v52 = vmul.f32 %v263_v36, %v248_v37  ;;  %v271_v53 = vmul.f32 %v263_v36, %v249_v38 }
  0x2f   : > { %v285_v54 = vrot.slane %v242_v43, %v262_v27  ;;  %v272_v55 = vmul.f32 %v263_v36, %v250_v39  ;;  %v273_v56 = vmul.f32 %v263_v36, %v251_v40  ;;  %v274_v57 = vmul.f32 %v263_v36, %v252_v41 }
  0x30   : > { %v275_v58 = vmul.f32 %v263_v36, %v253_v42  ;;  %v276_v59 = vmul.f32 %v263_v36, %v254_v47  ;;  %v277_v60 = vmul.f32 %v263_v36, %v255_v48  ;;  %v278_v61 = vmul.f32 %v263_v36, %v256_v49 }
  0x31   : > { %v287_v62 = vadd.f32 %v285_v54, %v265_v44  ;;  %v288_v63 = vadd.f32 %v285_v54, %v266_v45  ;;  %v289_v0 = vadd.f32 %v285_v54, %v267_v46  ;;  %v290_v1 = vadd.f32 %v285_v54, %v268_v50 }
  0x32   : > { %v291_v2 = vadd.f32 %v285_v54, %v269_v51  ;;  %v292_v3 = vadd.f32 %v285_v54, %v270_v52  ;;  %v293_v4 = vadd.f32 %v285_v54, %v271_v53  ;;  %v294_v5 = vadd.f32 %v285_v54, %v272_v55 }
  0x33   : > { %v303_v6 = vmax.f32 %v287_v62, 0.0  ;;  %v304_v7 = vmax.f32 %v288_v63, 0.0  ;;  %v305_v8 = vmax.f32 %v289_v0, 0.0  ;;  %v306_v9 = vmax.f32 %v290_v1, 0.0 }
  0x34   : > { %v307_v12 = vmax.f32 %v291_v2, 0.0  ;;  %v308_v13 = vmax.f32 %v292_v3, 0.0  ;;  %v309_v14 = vmax.f32 %v293_v4, 0.0  ;;  %v310_v15 = vmax.f32 %v294_v5, 0.0 }
  0x35   : > { %319 = vst [vmem:[%s502_s10] sm:$0xff] %v303_v6  ;;  %320 = vst [vmem:[%s502_s10 + $0x8] sm:$0xff] %v304_v7  ;;  %v295_v16 = vadd.f32 %v285_v54, %v273_v56  ;;  %v296_v17 = vadd.f32 %v285_v54, %v274_v57  ;;  %v297_v18 = vadd.f32 %v285_v54, %v275_v58 }
  0x36   : > { %321 = vst [vmem:[%s502_s10 + $0x10] sm:$0xff] %v305_v8  ;;  %322 = vst [vmem:[%s502_s10 + $0x18] sm:$0xff] %v306_v9  ;;  %v298_v19 = vadd.f32 %v285_v54, %v276_v59  ;;  %v299_v20 = vadd.f32 %v285_v54, %v277_v60  ;;  %v300_v21 = vadd.f32 %v285_v54, %v278_v61 }
  0x37   : > { %323 = vst [vmem:[%s502_s10 + $0x20] sm:$0xff] %v307_v12  ;;  %324 = vst [vmem:[%s502_s10 + $0x28] sm:$0xff] %v308_v13  ;;  %v279_v22 = vmul.f32 %v263_v36, %v257_v10  ;;  %v280_v23 = vmul.f32 %v263_v36, %v258_v11  ;;  %v311_v24 = vmax.f32 %v295_v16, 0.0  ;;  %v312_v25 = vmax.f32 %v296_v17, 0.0 }
  0x38   : > { %325 = vst [vmem:[%s502_s10 + $0x30] sm:$0xff] %v309_v14  ;;  %326 = vst [vmem:[%s502_s10 + $0x38] sm:$0xff] %v310_v15  ;;  %v313_v26 = vmax.f32 %v297_v18, 0.0  ;;  %v314_v27 = vmax.f32 %v298_v19, 0.0  ;;  %v315_v28 = vmax.f32 %v299_v20, 0.0  ;;  %v316_v29 = vmax.f32 %v300_v21, 0.0 }
  0x39   : > { %v301_v30 = vadd.f32 %v285_v54, %v279_v22  ;;  %v302_v31 = vadd.f32 %v285_v54, %v280_v23  ;;  %327 = vst [vmem:[%s502_s10 + $0x40] sm:$0xff] %v311_v24  ;;  %328 = vst [vmem:[%s502_s10 + $0x48] sm:$0xff] %v312_v25 }
  0x3a   : > { %329 = vst [vmem:[%s502_s10 + $0x50] sm:$0xff] %v313_v26  ;;  %330 = vst [vmem:[%s502_s10 + $0x58] sm:$0xff] %v314_v27 }
  0x3b   : > { %331 = vst [vmem:[%s502_s10 + $0x60] sm:$0xff] %v315_v28  ;;  %332 = vst [vmem:[%s502_s10 + $0x68] sm:$0xff] %v316_v29  ;;  %v317_v32 = vmax.f32 %v301_v30, 0.0  ;;  %v318_v33 = vmax.f32 %v302_v31, 0.0 }
  0x3d   : > { %333 = vst [vmem:[%s502_s10 + $0x70] sm:$0xff] %v317_v32  ;;  %334 = vst [vmem:[%s502_s10 + $0x78] sm:$0xff] %v318_v33 }
  0x3e PF: > { %s14_s15 = sadd.s32 1, %s419_s15  }
  0x3f   : > { %p11_p4 = scmp.ge.s32.totalorder %s14_s15, 6  }
  0x41   :  { %13 = sbr.rel (!%p11_p4) target bundleno = 1 (0x1), region = 66 }

// kernel: basic_convolution_block.2
= control target key start
LH: loop header
LB: loop body
LE: loop exit
PB: predicated region body
PF: predicated region fallthrough
CT: control target
= control target key end

     0   :  { %s13202_s12 = smov 0   ;;  %s15862_s0 = inlined_call_operand.vmem [shape: bf16[10,10,10,128], index: 0, kind: input, shape index: {}]   ;;  %s15863_s1 = inlined_call_operand.vmem [shape: bf16[27,128,128], index: 1, kind: input, shape index: {}]   ;;  %s15864_s2 = inlined_call_operand.vmem [shape: f32[512,128], index: 2, kind: output, shape index: {0}]   ;;  %s15865_s3 = inlined_call_operand.vmem [shape: f32[4,2,128], index: 3, kind: output, shape index: {1}]  }
   0x1 LB: > { %s13208_s13 = sadd.s32 4294967295, %s13180_s12   ;;  %p9614_p0 = scmp.ge.s32.totalorder %s13180_s12, 1  ;;  %s13180_s12 = sphi %s13202_s12, %s14_s12  }
   0x2   : > { %p130_p1 = scmp.lt.s32.totalorder %s13180_s12, 5 }
   0x4   : > { %p131_p2 = pnand %p9614_p0, %p130_p1 }
   0x6   : > { %134 = sbr.rel (%p131_p2) target bundleno = 834 (0x342), region = 28 }
   0xd   : > { %v12882_v0 = vld [vmem:[%s15863_s1 + $0x40] sm:$0xff]   ;;  %v12884_v2 = vld [vmem:[%s15863_s1 + $0x48] sm:$0xff]   ;;  %v12886_v4 = vld [vmem:[%s15863_s1 + $0x50] sm:$0xff]   ;;  %s11145_s30 = smul.u32 160, %s13208_s13  ;;  %vm216_vm0 = vsmask.f32 3328 }
   0xe   : > { %v12883_v1 = vld [vmem:[%s15863_s1 + $0x340] sm:$0xff]   ;;  %11578 = vmatprep.subr.bf16.mxu1 %v12882_v0  ;;  %v12885_v3 = vld [vmem:[%s15863_s1 + $0x348] sm:$0xff]   ;;  %v12887_v5 = vld [vmem:[%s15863_s1 + $0x350] sm:$0xff]   ;;  %vm217_vm1 = vsmask.f32 7440  ;;  %vm878_vm3 = vcmask 1042432  }
   0xf   : > { %11994 = vmatprep.subr.bf16.mxu0 %v12883_v1  ;;  %11579 = vmatpush3.bf16.msra.mxu1 %v12882_v0  ;;  %v12888_v6 = vld [vmem:[%s15863_s1 + $0x58] sm:$0xff]   ;;  %v12890_v8 = vld [vmem:[%s15863_s1 + $0x60] sm:$0xff]   ;;  %s13246_s10 = scalar_lea.vmem %s15862_s0, %s11145_s30  ;;  %v12892_v10 = vld [vmem:[%s15863_s1 + $0x68] sm:$0xff]   ;;  %vm879_vm4 = vcmask 1046532   ;;  %p159_p4 = scmp.lt.s32.totalorder %s13208_s13, 3  ;;  %vm9495_vm6 = vcmask 1040384  }
  0x10   : > { %11995 = vmatpush3.bf16.msra.mxu0 %v12883_v1  ;;  %11580 = vmatprep.subr.bf16.mxu1 %v12884_v2  ;;  %v12889_v7 = vld [vmem:[%s15863_s1 + $0x358] sm:$0xff]   ;;  %v12891_v9 = vld [vmem:[%s15863_s1 + $0x360] sm:$0xff]   ;;  %v13255_v12 = vld [vmem:[%s13246_s10 + $0x8] sm:$0xf] }
  0x11   : > { %11996 = vmatprep.subr.bf16.mxu0 %v12885_v3  ;;  %v13252_v11 = vld [vmem:[%s13246_s10] sm:$0xf]  ;;  %v200_v13 = vld [vmem:[%s13246_s10 + $0x4] sm:$0x1]  ;;  %v12893_v14 = vld [vmem:[%s15863_s1 + $0x368] sm:$0xff]   ;;  %v234_v21 = vshrl.u32 %v13255_v12, 16 }
  0x12   : > { %v201_v15 = vld [vmem:[%s13246_s10 + $0xc] sm:$0x1]  ;;  %v12894_v17 = vld [vmem:[%s15863_s1 + $0x70] sm:$0xff]   ;;  %v220_v18 = vshrl.u32 %v13252_v11, 16  ;;  %v223_v19 = vshll.u32 %v13252_v11, 16  ;;  %v229_v20 = vshll.u32 %v200_v13, 16  ;;  %vm13288_vm2 = vmor %vm216_vm0, %vm217_vm1 }
  0x13   : > { %11581 = vmatpush3.bf16.msra.mxu1 %v12884_v2  ;;  %v10300_v22 = vld [vmem:[%s13246_s10 + $0x58] sm:$0xf]  ;;  %v12895_v23 = vld [vmem:[%s15863_s1 + $0x370] sm:$0xff]   ;;  %v237_v24 = vshll.u32 %v13255_v12, 16  ;;  %v243_v25 = vshll.u32 %v201_v15, 16  ;;  %v236_v30 = vrot.slane %v234_v21, 4  ;;  %vm13627_vm5 = vmor %vm878_vm3, %vm879_vm4 }
  0x14   : > { %11997 = vmatpush3.bf16.msra.mxu0 %v12885_v3  ;;  %11582 = vmatprep.subr.bf16.mxu1 %v12886_v4  ;;  %v13276_v26 = vld [vmem:[%s13246_s10 + $0x5c] sm:$0x1]  ;;  %v222_v27 = vrot.slane %v220_v18, 4  ;;  %v225_v28 = vrot.slane %v223_v19, 5  ;;  %v231_v29 = vrot.slane %v229_v20, 5  ;;  %v4533_v35 = vshrl.u32 %v10300_v22, 16 }
  0x15   : > { %11998 = vmatprep.subr.bf16.mxu0 %v12887_v5  ;;  %v10302_v31 = vld [vmem:[%s13246_s10 + $0x60] sm:$0xf]  ;;  %v239_v32 = vrot.slane %v237_v24, 5  ;;  %v245_v33 = vrot.slane %v243_v25, 5  ;;  %v13280_v34 = vld [vmem:[%s13246_s10 + $0x64] sm:$0x1] }
  0x16   : > { %v4536_v36 = vshll.u32 %v10300_v22, 16  ;;  %v226_v37 = vor.u32 %v225_v28, %v222_v27  ;;  %v4542_v38 = vshll.u32 %v13276_v26, 16  ;;  %v4547_v39 = vshrl.u32 %v10302_v31, 16  ;;  %v12896_v41 = vld [vmem:[%s15863_s1 + $0x78] sm:$0xff]   ;;  %v13294_v47 = vld [vmem:[%s13246_s10 + $0x10] sm:$0xf] }
  0x17   : > { %11583 = vmatpush3.bf16.msra.mxu1 %v12886_v4  ;;  %v4550_v40 = vshll.u32 %v10302_v31, 16  ;;  %v240_v43 = vor.u32 %v239_v32, %v236_v30  ;;  %v4535_v44 = vrot.slane %v4533_v35, 4  ;;  %v4556_v46 = vshll.u32 %v13280_v34, 16  ;;  %v13297_v52 = vld [vmem:[%s13246_s10 + $0x14] sm:$0x1]  ;;  %v12897_v53 = vld [vmem:[%s15863_s1 + $0x378] sm:$0xff]  }
  0x18   : > { %11999 = vmatpush3.bf16.msra.mxu0 %v12887_v5  ;;  %11584 = vmatprep.subr.bf16.mxu1 %v12888_v6  ;;  %v4538_v45 = vrot.slane %v4536_v36, 5  ;;  %v227_v48 = vrot.slane %v226_v37, 4  ;;  %v4544_v49 = vrot.slane %v4542_v38, 5  ;;  %v4549_v50 = vrot.slane %v4547_v39, 4  ;;  %v13304_v58 = vld [vmem:[%s13246_s10 + $0x18] sm:$0xf] }
  0x19   : > { %12000 = vmatprep.subr.bf16.mxu0 %v12889_v7  ;;  %v4552_v51 = vrot.slane %v4550_v40, 5  ;;  %v241_v54 = vrot.slane %v240_v43, 4  ;;  %v4558_v56 = vrot.slane %v4556_v46, 5  ;;  %v248_v62 = vshrl.u32 %v13294_v47, 16  ;;  %v13313_v1 = vld [vmem:[%s13246_s10 + $0x1c] sm:$0x1] }
  0x1a   : > { %v4539_v55 = vor.u32 %v4538_v45, %v4535_v44  ;;  %v232_v59 = vsel %vm13288_vm2, %v227_v48, %v231_v29  ;;  %v251_v2 = vshll.u32 %v13294_v47, 16  ;;  %v257_v3 = vshll.u32 %v13297_v52, 16  ;;  %v10304_v15 = vld [vmem:[%s13246_s10 + $0x68] sm:$0xf]  ;;  %v10306_v21 = vld [vmem:[%s13246_s10 + $0x70] sm:$0xf] }
  0x1b   : > { %11585 = vmatpush3.bf16.msra.mxu1 %v12888_v6  ;;  %v4553_v60 = vor.u32 %v4552_v51, %v4549_v50  ;;  %v246_v63 = vsel %vm13288_vm2, %v241_v54, %v245_v33  ;;  %v250_v6 = vrot.slane %v248_v62, 4  ;;  %v271_v20 = vshll.u32 %v13313_v1, 16  ;;  %v13340_v22 = vld [vmem:[%s13246_s10 + $0x74] sm:$0x1]  ;;  %v13351_v51 = vld [vmem:[%s13246_s10 + $0x20] sm:$0xf] }
  0x1c   : > { %12001 = vmatpush3.bf16.msra.mxu0 %v12889_v7  ;;  %11586 = vmatprep.subr.bf16.mxu1 %v12890_v8  ;;  %v4540_v0 = vrot.slane %v4539_v55, 4  ;;  %v9637_v4 = vcombine.low %v232_v59, %v246_v63  ;;  %v262_v7 = vshrl.u32 %v13304_v58, 16  ;;  %v253_v13 = vrot.slane %v251_v2, 5  ;;  %v13356_v55 = vld [vmem:[%s13246_s10 + $0x28] sm:$0xf] }
  0x1d   : > { %12002 = vmatprep.subr.bf16.mxu0 %v12891_v9  ;;  %v4554_v5 = vrot.slane %v4553_v60, 4  ;;  %v259_v25 = vrot.slane %v257_v3, 5  ;;  %v273_v28 = vrot.slane %v271_v20, 5  ;;  %v4561_v29 = vshrl.u32 %v10304_v15, 16  ;;  %v205_v59 = vld [vmem:[%s13246_s10 + $0x2c] sm:$0x1] }
  0x1e   : > { %11594 = vmatprep.mubr.bf16.mxu1 %v9637_v4  ;;  %v264_v19 = vrot.slane %v262_v7, 4  ;;  %v254_v24 = vor.u32 %v253_v13, %v250_v6  ;;  %v4564_v30 = vshll.u32 %v10304_v15, 16  ;;  %v4575_v35 = vshrl.u32 %v10306_v21, 16  ;;  %v10308_v4 = vld [vmem:[%s13246_s10 + $0x78] sm:$0xf] }
  0x1f   : > { %11587 = vmatpush3.bf16.msra.mxu1 %v12890_v8  ;;  %v13321_v8 = vld [vmem:[%s15863_s1] sm:$0xff]   ;;  %v4559_v18 = vsel %vm13288_vm2, %v4554_v5, %v4558_v56  ;;  %v4578_v36 = vshll.u32 %v10306_v21, 16  ;;  %v4563_v37 = vrot.slane %v4561_v29, 4  ;;  %v4584_v40 = vshll.u32 %v13340_v22, 16  ;;  %v13371_v13 = vld [vmem:[%s13246_s10 + $0x7c] sm:$0x1] }
  0x20   : > { %12003 = vmatpush3.bf16.msra.mxu0 %v12891_v9  ;;  %11588 = vmatprep.subr.bf16.mxu1 %v12892_v10  ;;  %v13326_v9 = vld [vmem:[%s15863_s1 + $0x380] sm:$0xff]   ;;  %v255_v32 = vrot.slane %v254_v24, 4  ;;  %v4566_v38 = vrot.slane %v4564_v30, 5  ;;  %v4577_v44 = vrot.slane %v4575_v35, 4  ;;  %v276_v2 = vshrl.u32 %v13351_v51, 16  ;;  %v12901_v29 = vld [vmem:[%s15863_s1 + $0x388] sm:$0xff]  }
  0x21   : > { %12004 = vmatprep.subr.bf16.mxu0 %v12893_v14  ;;  %v4580_v45 = vrot.slane %v4578_v36, 5  ;;  %v4586_v48 = vrot.slane %v4584_v40, 5  ;;  %v204_v56 = vld [vmem:[%s13246_s10 + $0x24] sm:$0x1]  ;;  %v279_v3 = vshll.u32 %v13351_v51, 16  ;;  %v290_v7 = vshrl.u32 %v13356_v55, 16 }
  0x22   : > { %v4567_v46 = vor.u32 %v4566_v38, %v4563_v37  ;;  %v285_v6 = vshll.u32 %v204_v56, 16  ;;  %v278_v15 = vrot.slane %v276_v2, 4  ;;  %v10310_v20 = vld [vmem:[%s13246_s10 + $0x80] sm:$0xf]  ;;  %v4592_v36 = vshll.u32 %v10308_v4, 16 }
  0x23   : > { %11589 = vmatpush3.bf16.msra.mxu1 %v12892_v10  ;;  %v4545_v10 = vsel %vm13288_vm2, %v4540_v0, %v4544_v49  ;;  %v4581_v54 = vor.u32 %v4580_v45, %v4577_v44  ;;  %v12900_v0 = vld [vmem:[%s15863_s1 + $0x8] sm:$0xff]   ;;  %v292_v24 = vrot.slane %v290_v7, 4  ;;  %v4598_v37 = vshll.u32 %v13371_v13, 16  ;;  %v13397_v45 = vld [vmem:[%s13246_s10 + $0x34] sm:$0x1] }
  0x24   : > { %12005 = vmatpush3.bf16.msra.mxu0 %v12893_v14  ;;  %11590 = vmatprep.subr.bf16.mxu1 %v12894_v17  ;;  %v265_v14 = vshll.u32 %v13304_v58, 16  ;;  %v4568_v63 = vrot.slane %v4567_v46, 4  ;;  %v4603_v38 = vshrl.u32 %v10310_v20, 16  ;;  %v12903_v46 = vld [vmem:[%s15863_s1 + $0x390] sm:$0xff]   ;;  %v10312_v7 = vld [vmem:[%s13246_s10 + $0x88] sm:$0xf] }
  0x25   : > { %12006 = vmatprep.subr.bf16.mxu0 %v12895_v23  ;;  %v4582_v5 = vrot.slane %v4581_v54, 4  ;;  %v4600_v54 = vrot.slane %v4598_v37, 5  ;;  %v4617_v37 = vshrl.u32 %v10312_v7, 16 }
  0x26   : > { %v267_v27 = vrot.slane %v265_v14, 5  ;;  %v4605_v56 = vrot.slane %v4603_v38, 4 }
  0x27   : > { %11591 = vmatpush3.bf16.msra.mxu1 %v12894_v17  ;;  %v13333_v17 = vld [vmem:[%s13246_s10 + $0x6c] sm:$0x1]  ;;  %v4587_v21 = vsel %vm13288_vm2, %v4582_v5, %v4586_v48 }
  0x28   : > { %12007 = vmatpush3.bf16.msra.mxu0 %v12895_v23  ;;  %11592 = vmatprep.subr.bf16.mxu1 %v12896_v41  ;;  %v10348_v23 = vcombine.low %v4545_v10, %v4559_v18  ;;  %v4570_v31 = vshll.u32 %v13333_v17, 16  ;;  %v268_v33 = vor.u32 %v267_v27, %v264_v19  ;;  %v293_v10 = vshll.u32 %v13356_v55, 16  ;;  %v13380_v27 = vld [vmem:[%s13246_s10 + $0x84] sm:$0x1] }
  0x29   : > { %12008 = vmatprep.subr.bf16.mxu0 %v12897_v53  ;;  %v281_v18 = vrot.slane %v279_v3, 5  ;;  %v299_v19 = vshll.u32 %v205_v59, 16  ;;  %v4612_v44 = vshll.u32 %v13380_v27, 16 }
  0x2a   : > { %12010 = vmatprep.mubr.bf16.mxu0 %v10348_v23  ;;  %v4572_v39 = vrot.slane %v4570_v31, 5  ;;  %v269_v43 = vrot.slane %v268_v33, 4  ;;  %v287_v23 = vrot.slane %v285_v6, 5  ;;  %v13386_v33 = vld [vmem:[%s13246_s10 + $0x30] sm:$0xf]  ;;  %v313_v6 = vshll.u32 %v13397_v45, 16 }
  0x2b   : > { %11593 = vmatpush3.bf16.msra.mxu1 %v12896_v41  ;;  %v260_v41 = vsel %vm13288_vm2, %v255_v32, %v259_v25  ;;  %v295_v25 = vrot.slane %v293_v10, 5  ;;  %v282_v30 = vor.u32 %v281_v18, %v278_v15  ;;  %v301_v31 = vrot.slane %v299_v19, 5  ;;  %v13419_v19 = vld [vmem:[%s13246_s10 + $0x8c] sm:$0x1] }
  0x2c   : > { %12009 = vmatpush3.bf16.msra.mxu0 %v12897_v53  ;;  %11610 = vmatprep.subr.bf16.mxu1 %v13321_v8  ;;  %v274_v53 = vsel %vm13288_vm2, %v269_v43, %v273_v28  ;;  %v4573_v14 = vsel %vm13288_vm2, %v4568_v63, %v4572_v39  ;;  %v4589_v32 = vshrl.u32 %v10308_v4, 16  ;;  %v13393_v39 = vld [vmem:[%s13246_s10 + $0x38] sm:$0xf]  ;;  %v4606_v43 = vshll.u32 %v10310_v20, 16  ;;  %v13412_v4 = vld [vmem:[%s13246_s10 + $0x3c] sm:$0x1] }
  0x2d   : > { %12026 = vmatprep.subr.bf16.mxu0 %v13326_v9  ;;  %v9638_v62 = vcombine.low %v260_v41, %v274_v53  ;;  %v10349_v28 = vcombine.low %v4573_v14, %v4587_v21  ;;  %v296_v35 = vor.u32 %v295_v25, %v292_v24  ;;  %v283_v40 = vrot.slane %v282_v30, 4  ;;  %15877 = vst [vmem:[#allocation2_spill] sm:$0xff] %v13412_v4  ;;  %v12905_v20 = vld [vmem:[%s15863_s1 + $0x398] sm:$0xff]   ;;  %v12906_v21 = vld [vmem:[%s15863_s1 + $0x20] sm:$0xff]   ;;  %v10314_v30 = vld [vmem:[%s13246_s10 + $0x90] sm:$0xf] }
  0x2e   : > { %v4591_v41 = vrot.slane %v4589_v32, 4  ;;  %v4594_v53 = vrot.slane %v4592_v36, 5  ;;  %v4614_v63 = vrot.slane %v4612_v44, 5  ;;  %v304_v2 = vshrl.u32 %v13386_v33, 16 }
  0x2f   : > { %11595 = vmatmul.mubr.bf16.vlgmr.msra.gmra.mrb[0].mxu1 %v9638_v62  ;;  %12011 = vmatmul.mubr.bf16.vlgmr.msra.gmra.mrb[0].mxu0 %v10349_v28  ;;  %v297_v48 = vrot.slane %v296_v35, 4  ;;  %v288_v59 = vsel %vm13288_vm2, %v283_v40, %v287_v23  ;;  %v4608_v62 = vrot.slane %v4606_v43, 5  ;;  %v307_v5 = vshll.u32 %v13386_v33, 16 }
  0x30   : > { %11611 = vmatpush3.bf16.msra.mxu1 %v13321_v8  ;;  %v12902_v8 = vld [vmem:[%s15863_s1 + $0x10] sm:$0xff]   ;;  %12027 = vmatpush3.bf16.msra.mxu0 %v13326_v9  ;;  %v12904_v9 = vld [vmem:[%s15863_s1 + $0x18] sm:$0xff]   ;;  %v4595_v3 = vor.u32 %v4594_v53, %v4591_v41  ;;  %v306_v15 = vrot.slane %v304_v2, 4  ;;  %v318_v18 = vshrl.u32 %v13393_v39, 16  ;;  %v315_v25 = vrot.slane %v313_v6, 5 }
  0x31   : > { %11612 = vmatprep.subr.bf16.mxu1 %v12900_v0  ;;  %12028 = vmatprep.subr.bf16.mxu0 %v12901_v29  ;;  %v4609_v14 = vor.u32 %v4608_v62, %v4605_v56  ;;  %v309_v24 = vrot.slane %v307_v5, 5  ;;  %v321_v28 = vshll.u32 %v13393_v39, 16  ;;  %v327_v36 = vshll.u32 %v13412_v4, 16  ;;  %v12907_v5 = vld [vmem:[%s15863_s1 + $0x3a0] sm:$0xff]  }
  0x32   : > { %v4596_v23 = vrot.slane %v4595_v3, 4  ;;  %v320_v35 = vrot.slane %v318_v18, 4  ;;  %v4620_v41 = vshll.u32 %v10312_v7, 16  ;;  %v4634_v3 = vshll.u32 %v10314_v30, 16 }
  0x33   : > { %v4610_v32 = vrot.slane %v4609_v14, 4  ;;  %v310_v38 = vor.u32 %v309_v24, %v306_v15  ;;  %v323_v40 = vrot.slane %v321_v28, 5  ;;  %v329_v44 = vrot.slane %v327_v36, 5  ;;  %v13456_v14 = vld [vmem:[%s13246_s10 + $0x54] sm:$0x1] }
  0x34   : > { %11613 = vmatpush3.bf16.msra.mxu1 %v12900_v0  ;;  %v302_v0 = vsel %vm13288_vm2, %v297_v48, %v301_v31  ;;  %12029 = vmatpush3.bf16.msra.mxu0 %v12901_v29  ;;  %v13430_v31 = vld [vmem:[%s13246_s10 + $0x94] sm:$0x1]  ;;  %v4601_v29 = vsel %vm13288_vm2, %v4596_v23, %v4600_v54  ;;  %v4626_v48 = vshll.u32 %v13419_v19, 16  ;;  %v4622_v62 = vrot.slane %v4620_v41, 5  ;;  %v13439_v54 = vld [vmem:[%s13246_s10 + $0x50] sm:$0xf] }
  0x35   : > { %11614 = vmatprep.subr.bf16.mxu1 %v12902_v8  ;;  %v9639_v10 = vcombine.low %v288_v59, %v302_v0  ;;  %12030 = vmatprep.subr.bf16.mxu0 %v12903_v46  ;;  %v4615_v43 = vsel %vm13288_vm2, %v4610_v32, %v4614_v63  ;;  %v311_v56 = vrot.slane %v310_v38, 4  ;;  %v324_v59 = vor.u32 %v323_v40, %v320_v35  ;;  %v13460_v28 = vld [vmem:[%s13246_s10 + $0x5c] sm:$0x1]  ;;  %v12910_v38 = vld [vmem:[%s15863_s1 + $0x30] sm:$0xff]  }
  0x36   : > { %v10350_v53 = vcombine.low %v4601_v29, %v4615_v43  ;;  %v13441_v2 = vrot.slane %v4626_v48, 5  ;;  %v4631_v0 = vshrl.u32 %v10314_v30, 16  ;;  %v4640_v63 = vshll.u32 %v13430_v31, 16  ;;  %15878 = vst [vmem:[#allocation3_spill] sm:$0xff] %v13456_v14  ;;  %15879 = vst [vmem:[#allocation4_spill] sm:$0xff] %v13460_v28 }
  0x37   : > { %11598 = vmatprep.mubr.bf16.mxu1 %v9639_v10  ;;  %v325_v6 = vrot.slane %v324_v59, 4  ;;  %v13453_v10 = vld [vmem:[%s13246_s10 + $0x58] sm:$0xf]  ;;  %v332_v15 = vshrl.u32 %v13439_v54, 16  ;;  %v4636_v23 = vrot.slane %v4634_v3, 5  ;;  %v335_v30 = vshll.u32 %v13439_v54, 16 }
  0x38   : > { %11615 = vmatpush3.bf16.msra.mxu1 %v12902_v8  ;;  %v4619_v8 = vrot.slane %v4617_v37, 4  ;;  %12031 = vmatpush3.bf16.msra.mxu0 %v12903_v46  ;;  %v12908_v46 = vld [vmem:[%s15863_s1 + $0x28] sm:$0xff]   ;;  %v4633_v18 = vrot.slane %v4631_v0, 4  ;;  %v4642_v24 = vrot.slane %v4640_v63, 5  ;;  %v341_v37 = vshll.u32 %v13456_v14, 16 }
  0x39   : > { %11616 = vmatprep.subr.bf16.mxu1 %v12904_v9  ;;  %12032 = vmatprep.subr.bf16.mxu0 %v12905_v20  ;;  %v330_v32 = vsel %vm13288_vm2, %v325_v6, %v329_v44  ;;  %v334_v36 = vrot.slane %v332_v15, 4  ;;  %v10316_v29 = vld [vmem:[%s13246_s10 + $0xa8] sm:$0xf]  ;;  %v337_v43 = vrot.slane %v335_v30, 5  ;;  %v13477_v48 = vld [vmem:[%s13246_s10 + $0xac] sm:$0x1] }
  0x3a   : > { %12014 = vmatprep.mubr.bf16.mxu0 %v10350_v53  ;;  %v4623_v7 = vor.u32 %v4622_v62, %v4619_v8  ;;  %v4637_v41 = vor.u32 %v4636_v23, %v4633_v18  ;;  %v346_v8 = vshrl.u32 %v13453_v10, 16  ;;  %v10318_v44 = vld [vmem:[%s13246_s10 + $0xb0] sm:$0xf]  ;;  %v349_v53 = vshll.u32 %v13453_v10, 16  ;;  %v13486_v59 = vld [vmem:[%s13246_s10 + $0xb4] sm:$0x1] }
  0x3b   : > { %v338_v0 = vor.u32 %v337_v43, %v334_v36  ;;  %v4645_v63 = vshrl.u32 %v10316_v29, 16  ;;  %v4648_v15 = vshll.u32 %v10316_v29, 16  ;;  %v13493_v18 = vld [vmem:[%s13246_s10 + $0x68] sm:$0xf]  ;;  %v12911_v23 = vld [vmem:[%s15863_s1 + $0x3b0] sm:$0xff]   ;;  %v4659_v36 = vshrl.u32 %v10318_v44, 16 }
  0x3c   : > { %11617 = vmatpush3.bf16.msra.mxu1 %v12904_v9  ;;  %v316_v9 = vsel %vm13288_vm2, %v311_v56, %v315_v25  ;;  %v13466_v25 = vld [vmem:[%s15863_s1 + $0x3a8] sm:$0xff]   ;;  %v4624_v35 = vrot.slane %v4623_v7, 4  ;;  %12033 = vmatpush3.bf16.msra.mxu0 %v12905_v20  ;;  %v355_v56 = vshll.u32 %v13460_v28, 16  ;;  %v4638_v62 = vrot.slane %v4637_v41, 4 }
  0x3d   : > { %11618 = vmatprep.subr.bf16.mxu1 %v12906_v21  ;;  %v9640_v40 = vcombine.low %v316_v9, %v330_v32  ;;  %12034 = vmatprep.subr.bf16.mxu0 %v12907_v5  ;;  %v348_v3 = vrot.slane %v346_v8, 4  ;;  %v13489_v9 = vld [vmem:[%s13246_s10 + $0x60] sm:$0xf]  ;;  %v351_v6 = vrot.slane %v349_v53, 5  ;;  %v339_v32 = vrot.slane %v338_v0, 4 }
  0x3e   : > { %v4629_v20 = vsel %vm13288_vm2, %v4624_v35, %v13441_v2  ;;  %v357_v7 = vrot.slane %v355_v56, 5  ;;  %v4654_v2 = vshll.u32 %v13477_v48, 16  ;;  %v4643_v30 = vsel %vm13288_vm2, %v4638_v62, %v4642_v24  ;;  %v13511_v56 = vld [vmem:[%s13246_s10 + $0x6c] sm:$0x1] }
  0x3f   : > { %11599 = vmatmul.mubr.bf16.gmra.mrb[4].mxu1 %v9640_v40  ;;  %v4647_v35 = vrot.slane %v4645_v63, 4  ;;  %v352_v29 = vor.u32 %v351_v6, %v348_v3  ;;  %v4650_v40 = vrot.slane %v4648_v15, 5  ;;  %v4661_v43 = vrot.slane %v4659_v36, 4  ;;  %15881 = vst [vmem:[#allocation6_spill] sm:$0xff] %v13511_v56  ;;  %v10320_v3 = vld [vmem:[%s13246_s10 + $0xb8] sm:$0xf] }
  0x40   : > { %11619 = vmatpush3.bf16.msra.mxu1 %v12906_v21  ;;  %v343_v21 = vrot.slane %v341_v37, 5  ;;  %12035 = vmatpush3.bf16.msra.mxu0 %v12907_v5  ;;  %v13501_v37 = vld [vmem:[%s13246_s10 + $0x64] sm:$0x1]  ;;  %v12912_v5 = vld [vmem:[%s15863_s1 + $0x38] sm:$0xff]   ;;  %v4656_v41 = vrot.slane %v4654_v2, 5  ;;  %v4662_v8 = vshll.u32 %v10318_v44, 16 }
  0x41   : > { %11620 = vmatprep.subr.bf16.mxu1 %v12908_v46  ;;  %15880 = vst [vmem:[#allocation5_spill] sm:$0xff] %v13501_v37  ;;  %12036 = vmatprep.subr.bf16.mxu0 %v13466_v25  ;;  %v4668_v53 = vshll.u32 %v13486_v59, 16  ;;  %v353_v62 = vrot.slane %v352_v29, 4  ;;  %v4651_v0 = vor.u32 %v4650_v40, %v4647_v35  ;;  %v360_v63 = vshrl.u32 %v13489_v9, 16  ;;  %v13531_v29 = vld [vmem:[%s15863_s1 + $0x80] sm:$0xff]  }
  0x42   : > { %v344_v24 = vsel %vm13288_vm2, %v339_v32, %v343_v21  ;;  %v12913_v21 = vld [vmem:[%s15863_s1 + $0x3b8] sm:$0xff]   ;;  %v4664_v6 = vrot.slane %v4662_v8, 5  ;;  %v369_v15 = vshll.u32 %v13501_v37, 16  ;;  %v374_v2 = vshrl.u32 %v13493_v18, 16 }
  0x43   : > { %v4670_v44 = vrot.slane %v4668_v53, 5  ;;  %v358_v32 = vsel %vm13288_vm2, %v353_v62, %v357_v7  ;;  %v362_v35 = vrot.slane %v360_v63, 4  ;;  %v377_v7 = vshll.u32 %v13493_v18, 16  ;;  %v13543_v63 = vld [vmem:[%s15863_s1 + $0x3c0] sm:$0xff]  }
  0x44   : > { %11621 = vmatpush3.bf16.msra.mxu1 %v12908_v46  ;;  %v10351_v46 = vcombine.low %v4629_v20, %v4643_v30  ;;  %v363_v20 = vshll.u32 %v13489_v9, 16  ;;  %v13522_v30 = vld [vmem:[%s13246_s10 + $0xbc] sm:$0x1]  ;;  %12037 = vmatpush3.bf16.msra.mxu0 %v13466_v25  ;;  %v9641_v40 = vcombine.low %v344_v24, %v358_v32  ;;  %v4665_v8 = vor.u32 %v4664_v6, %v4661_v43 }
  0x45   : > { %11622 = vmatprep.subr.bf16.mxu1 %v12910_v38  ;;  %12038 = vmatprep.subr.bf16.mxu0 %v12911_v23  ;;  %v371_v53 = vrot.slane %v369_v15, 5  ;;  %v376_v60 = vrot.slane %v374_v2, 4  ;;  %v383_v62 = vshll.u32 %v13511_v56, 16  ;;  %v4673_v43 = vshrl.u32 %v10320_v3, 16 }
  0x46   : > { %12015 = vmatmul.mubr.bf16.gmra.mrb[4].mxu0 %v10351_v46  ;;  %v365_v36 = vrot.slane %v363_v20, 5  ;;  %v10322_v46 = vld [vmem:[%s13246_s10 + $0xc0] sm:$0xf]  ;;  %11602 = vmatprep.mubr.bf16.mxu1 %v9641_v40  ;;  %v4666_v24 = vrot.slane %v4665_v8, 4  ;;  %v4676_v20 = vshll.u32 %v10320_v3, 16  ;;  %v379_v15 = vrot.slane %v377_v7, 5 }
  0x47   : > { %v385_v2 = vrot.slane %v383_v62, 5  ;;  %v4687_v32 = vshrl.u32 %v10322_v46, 16  ;;  %v13550_v3 = vld [vmem:[%s13246_s10 + $0x70] sm:$0xf]  ;;  %v13555_v7 = vld [vmem:[%s13246_s10 + $0x78] sm:$0xf] }
  0x48   : > { %11623 = vmatpush3.bf16.msra.mxu1 %v12910_v38  ;;  %v4652_v38 = vrot.slane %v4651_v0, 4  ;;  %v366_v16 = vor.u32 %v365_v36, %v362_v35  ;;  %v13538_v0 = vld [vmem:[%s13246_s10 + $0xc4] sm:$0x1]  ;;  %12039 = vmatpush3.bf16.msra.mxu0 %v12911_v23  ;;  %v4678_v35 = vrot.slane %v4676_v20, 5  ;;  %v380_v23 = vor.u32 %v379_v15, %v376_v60  ;;  %v13558_v62 = vld [vmem:[%s13246_s10 + $0x74] sm:$0x1] }
  0x49   : > { %11624 = vmatprep.subr.bf16.mxu1 %v12912_v5  ;;  %12040 = vmatprep.subr.bf16.mxu0 %v12913_v21  ;;  %v4689_v8 = vrot.slane %v4687_v32, 4  ;;  %15882 = vst [vmem:[#allocation7_spill] sm:$0xff] %v13558_v62  ;;  %v4690_v49 = vshll.u32 %v10322_v46, 16  ;;  %v391_v60 = vshll.u32 %v13550_v3, 16  ;;  %v402_v20 = vshrl.u32 %v13555_v7, 16 }
  0x4a   : > { %v4657_v25 = vsel %vm13288_vm2, %v4652_v38, %v4656_v41  ;;  %v4682_v41 = vshll.u32 %v13522_v30, 16  ;;  %v367_v6 = vrot.slane %v366_v16, 4  ;;  %v4675_v38 = vrot.slane %v4673_v43, 4 }
  0x4b   : > { %v388_v43 = vshrl.u32 %v13550_v3, 16 }
  0x4c   : > { %11625 = vmatpush3.bf16.msra.mxu1 %v12912_v5  ;;  %v4671_v5 = vsel %vm13288_vm2, %v4666_v24, %v4670_v44  ;;  %v4684_v36 = vrot.slane %v4682_v41, 5  ;;  %v372_v16 = vsel %vm13288_vm2, %v367_v6, %v371_v53  ;;  %v4679_v50 = vor.u32 %v4678_v35, %v4675_v38  ;;  %v13562_v24 = vld [vmem:[%s13246_s10 + $0x7c] sm:$0x1]  ;;  %12041 = vmatpush3.bf16.msra.mxu0 %v12913_v21  ;;  %v10324_v41 = vld [vmem:[%s13246_s10 + $0xc8] sm:$0xf] }
  0x4d   : > { %11642 = vmatprep.subr.bf16.mxu1 %v13531_v29  ;;  %v10352_v40 = vcombine.low %v4657_v25, %v4671_v5  ;;  %v4696_v44 = vshll.u32 %v13538_v0, 16  ;;  %15883 = vst [vmem:[#allocation8_spill] sm:$0xff] %v13562_v24  ;;  %v381_v53 = vrot.slane %v380_v23, 4  ;;  %v397_v25 = vshll.u32 %v13558_v62, 16  ;;  %12058 = vmatprep.subr.bf16.mxu0 %v13543_v63  ;;  %v13571_v5 = vld [vmem:[%s13246_s10 + $0xcc] sm:$0x1] }
  0x4e   : > { %v4680_v46 = vrot.slane %v4679_v50, 4  ;;  %v4692_v6 = vrot.slane %v4690_v49, 5  ;;  %v390_v32 = vrot.slane %v388_v43, 4  ;;  %v393_v38 = vrot.slane %v391_v60, 5  ;;  %v10326_v23 = vld [vmem:[%s13246_s10 + $0xd0] sm:$0xf] }
  0x4f   : > { %12018 = vmatprep.mubr.bf16.mxu0 %v10352_v40  ;;  %v4698_v15 = vrot.slane %v4696_v44, 5  ;;  %v386_v21 = vsel %vm13288_vm2, %v381_v53, %v385_v2  ;;  %v399_v35 = vrot.slane %v397_v25, 5  ;;  %v404_v40 = vrot.slane %v402_v20, 4  ;;  %v13581_v62 = vld [vmem:[%s13246_s10 + $0xd4] sm:$0x1] }
  0x50   : > { %v9642_v61 = vcombine.low %v372_v16, %v386_v21  ;;  %v4685_v57 = vsel %vm13288_vm2, %v4680_v46, %v4684_v36  ;;  %v4693_v50 = vor.u32 %v4692_v6, %v4689_v8  ;;  %v405_v49 = vshll.u32 %v13555_v7, 16  ;;  %v13584_v53 = vld [vmem:[%s13246_s10 + $0x80] sm:$0xf]  ;;  %v13588_v36 = vld [vmem:[%s13246_s10 + $0x88] sm:$0xf] }
  0x51   : > { %v394_v44 = vor.u32 %v393_v38, %v390_v32  ;;  %v411_v43 = vshll.u32 %v13562_v24, 16  ;;  %v4701_v28 = vshrl.u32 %v10324_v41, 16  ;;  %v4704_v2 = vshll.u32 %v10324_v41, 16  ;;  %15884 = vst [vmem:[#allocation9_spill] sm:$0xff] %v13584_v53  ;;  %v13591_v21 = vld [vmem:[%s13246_s10 + $0x84] sm:$0x1] }
  0x52   : > { %11603 = vmatmul.mubr.bf16.gmra.mrb[8].mxu1 %v9642_v61  ;;  %v4694_v60 = vrot.slane %v4693_v50, 4  ;;  %v407_v25 = vrot.slane %v405_v49, 5  ;;  %v4710_v16 = vshll.u32 %v13571_v5, 16  ;;  %v4715_v20 = vshrl.u32 %v10326_v23, 16  ;;  %15885 = vst [vmem:[#allocation10_spill] sm:$0xff] %v13591_v21 }
  0x53   : > { %v395_v8 = vrot.slane %v394_v44, 4  ;;  %v413_v46 = vrot.slane %v411_v43, 5  ;;  %v4703_v6 = vrot.slane %v4701_v28, 4  ;;  %v4706_v32 = vrot.slane %v4704_v2, 5  ;;  %v13598_v2 = vld [vmem:[%s13246_s10 + $0x8c] sm:$0x1] }
  0x54   : > { %v4699_v61 = vsel %vm13288_vm2, %v4694_v60, %v4698_v15  ;;  %v408_v41 = vor.u32 %v407_v25, %v404_v40  ;;  %v4712_v38 = vrot.slane %v4710_v16, 5  ;;  %v4717_v50 = vrot.slane %v4715_v20, 4  ;;  %v10328_v15 = vld [vmem:[%s13246_s10 + $0xd8] sm:$0xf]  ;;  %v13605_v40 = vld [vmem:[%s13246_s10 + $0xdc] sm:$0x1] }
  0x55   : > { %v10353_v49 = vcombine.low %v4685_v57, %v4699_v61  ;;  %v400_v44 = vsel %vm13288_vm2, %v395_v8, %v399_v35  ;;  %v4707_v43 = vor.u32 %v4706_v32, %v4703_v6  ;;  %v4718_v28 = vshll.u32 %v10326_v23, 16  ;;  %v10330_v25 = vld [vmem:[%s13246_s10 + $0xe0] sm:$0xf] }
  0x56   : > { %v409_v24 = vrot.slane %v408_v41, 4  ;;  %v4724_v14 = vshll.u32 %v13581_v62, 16  ;;  %v416_v56 = vshrl.u32 %v13584_v53, 16  ;;  %v419_v37 = vshll.u32 %v13584_v53, 16  ;;  %v13617_v53 = vld [vmem:[%s13246_s10 + $0xe4] sm:$0x1] }
  0x57   : > { %12019 = vmatmul.mubr.bf16.gmra.mrb[8].mxu0 %v10353_v49  ;;  %v4708_v57 = vrot.slane %v4707_v43, 4  ;;  %v4720_v60 = vrot.slane %v4718_v28, 5  ;;  %v425_v35 = vshll.u32 %v13591_v21, 16  ;;  %v430_v23 = vshrl.u32 %v13588_v36, 16 }
  0x58   : > { %v414_v16 = vsel %vm13288_vm2, %v409_v24, %v413_v46  ;;  %v4726_v20 = vrot.slane %v4724_v14, 5  ;;  %v418_v8 = vrot.slane %v416_v56, 4  ;;  %v421_v6 = vrot.slane %v419_v37, 5 }
  0x59   : > { %v9643_v32 = vcombine.low %v400_v44, %v414_v16  ;;  %v4713_v61 = vsel %vm13288_vm2, %v4708_v57, %v4712_v38  ;;  %v4721_v41 = vor.u32 %v4720_v60, %v4717_v50  ;;  %v427_v49 = vrot.slane %v425_v35, 5  ;;  %v10364_v16 = vld [vmem:[%s13246_s10 + $0x58] sm:$0xe] }
  0x5a   : > { %v422_v43 = vor.u32 %v421_v6, %v418_v8  ;;  %v432_v28 = vrot.slane %v430_v23, 4  ;;  %v433_v4 = vshll.u32 %v13588_v36, 16  ;;  %v439_v21 = vshll.u32 %v13598_v2, 16 }
  0x5b   : > { %11606 = vmatprep.mubr.bf16.mxu1 %v9643_v32  ;;  %v4722_v24 = vrot.slane %v4721_v41, 4  ;;  %v4729_v14 = vshrl.u32 %v10328_v15, 16  ;;  %v4732_v56 = vshll.u32 %v10328_v15, 16  ;;  %v4738_v37 = vshll.u32 %v13605_v40, 16 }
  0x5c   : > { %v423_v46 = vrot.slane %v422_v43, 4  ;;  %v435_v38 = vrot.slane %v433_v4, 5  ;;  %v441_v50 = vrot.slane %v439_v21, 5  ;;  %v4743_v44 = vshrl.u32 %v10330_v25, 16  ;;  %v10365_v21 = vld [vmem:[%s13246_s10 + $0x60] sm:$0xe] }
  0x5d   : > { %v4727_v57 = vsel %vm13288_vm2, %v4722_v24, %v4726_v20  ;;  %v4731_v60 = vrot.slane %v4729_v14, 4  ;;  %v4734_v35 = vrot.slane %v4732_v56, 5  ;;  %v4740_v23 = vrot.slane %v4738_v37, 5  ;;  %v10366_v56 = vld [vmem:[%s13246_s10 + $0x68] sm:$0xe] }
  0x5e   : > { %v10354_v8 = vcombine.low %v4713_v61, %v4727_v57  ;;  %v428_v15 = vsel %vm13288_vm2, %v423_v46, %v427_v49  ;;  %v436_v6 = vor.u32 %v435_v38, %v432_v28  ;;  %v4745_v32 = vrot.slane %v4743_v44, 4  ;;  %v10367_v37 = vld [vmem:[%s13246_s10 + $0x70] sm:$0xe] }
  0x5f   : > { %v4735_v20 = vor.u32 %v4734_v35, %v4731_v60  ;;  %v4746_v41 = vshll.u32 %v10330_v25, 16  ;;  %v4752_v43 = vshll.u32 %v13617_v53, 16  ;;  %v10380_v24 = vrot.slane %v10364_v16, 9 }
  0x60   : > { %12022 = vmatprep.mubr.bf16.mxu0 %v10354_v8  ;;  %v437_v14 = vrot.slane %v436_v6, 4  ;;  %v10381_v61 = vrot.slane %v10365_v21, 9  ;;  %v9655_v49 = vcombine.low %v13351_v51, %v13356_v55  ;;  %v9656_v28 = vcombine.low %v13386_v33, %v13393_v39 }
  0x61   : > { %v4736_v46 = vrot.slane %v4735_v20, 4  ;;  %v4748_v38 = vrot.slane %v4746_v41, 5  ;;  %v4754_v44 = vrot.slane %v4752_v43, 5  ;;  %v15888_v25 = vrot.slane %v13276_v26, 5  ;;  %v10369_v43 = vld [vmem:[%s13246_s10 + $0x80] sm:$0xe] }
  0x62   : > { %v442_v60 = vsel %vm13288_vm2, %v437_v14, %v441_v50  ;;  %v15889_v35 = vrot.slane %v13280_v34, 5  ;;  %v10382_v55 = vrot.slane %v10366_v56, 9  ;;  %v10383_v16 = vrot.slane %v10367_v37, 9  ;;  %v10368_v50 = vld [vmem:[%s13246_s10 + $0x78] sm:$0xe] }
  0x63   : > { %v5017_v57 = vsel %vm13627_vm5, %v10380_v24, %v15888_v25  ;;  %v9644_v8 = vcombine.low %v428_v15, %v442_v60  ;;  %v4749_v6 = vor.u32 %v4748_v38, %v4745_v32  ;;  %v15890_v20 = vrot.slane %v13333_v17, 5  ;;  %v10370_v25 = vld [vmem:[%s13246_s10 + $0x88] sm:$0xe] }
  0x64   : > { %v5021_v51 = vsel %vm13627_vm5, %v10381_v61, %v15889_v35  ;;  %v15891_v41 = vrot.slane %v13340_v22, 5  ;;  %v4741_v15 = vsel %vm13288_vm2, %v4736_v46, %v4740_v23  ;;  %v15892_v24 = vcombine.low %v13252_v11, %v13255_v12  ;;  %v13671_v23 = vld [vmem:[%s13246_s10 + $0x4] sm:$0x1]  ;;  %v13675_v11 = vld [vmem:[%s13246_s10 + $0xc] sm:$0x1] }
  0x65   : > { %v10412_v21 = vcombine.low %v5017_v57, %v5021_v51  ;;  %v5025_v26 = vsel %vm13627_vm5, %v10382_v55, %v15890_v20  ;;  %11607 = vmatmul.mubr.bf16.gmra.mrb[12].mxu1 %v9644_v8  ;;  %v4750_v32 = vrot.slane %v4749_v6, 4  ;;  %v5032_v22 = vrot.slane %v13371_v13, 5  ;;  %v10371_v57 = vld [vmem:[%s13246_s10 + $0x90] sm:$0xe]  ;;  %v10372_v6 = vld [vmem:[%s13246_s10 + $0xa8] sm:$0xe] }
  0x66   : > { %v5029_v34 = vsel %vm13627_vm5, %v10383_v16, %v15891_v41  ;;  %11626 = vmatprep.mubr.bf16.mxu1 %v15892_v24  ;;  %v5036_v14 = vrot.slane %v13380_v27, 5  ;;  %v10384_v56 = vrot.slane %v10368_v50, 9  ;;  %v10385_v37 = vrot.slane %v10369_v43, 9  ;;  %v10373_v20 = vld [vmem:[%s13246_s10 + $0xb0] sm:$0xe] }
  0x67   : > { %v10413_v17 = vcombine.low %v5025_v26, %v5029_v34  ;;  %v4755_v61 = vsel %vm13288_vm2, %v4750_v32, %v4754_v44  ;;  %v883_v46 = vrot.slane %v13671_v23, 5  ;;  %v887_v12 = vrot.slane %v13675_v11, 5  ;;  %v12918_v44 = vld [vmem:[%s15863_s1 + $0x88] sm:$0xff]  }
  0x68   : > { %v10355_v38 = vcombine.low %v4741_v15, %v4755_v61  ;;  %v891_v13 = vrot.slane %v13297_v52, 5  ;;  %v895_v27 = vrot.slane %v13313_v1, 5  ;;  %v10386_v60 = vrot.slane %v10370_v25, 9  ;;  %v830_v61 = vld [vmem:[%s13246_s10] sm:$0xe] }
  0x69   : > { %v5040_v35 = vrot.slane %v13419_v19, 5  ;;  %v5033_v51 = vsel %vm13627_vm5, %v10384_v56, %v5032_v22  ;;  %v5037_v55 = vsel %vm13627_vm5, %v10385_v37, %v5036_v14  ;;  %v10387_v16 = vrot.slane %v10371_v57, 9  ;;  %v12919_v19 = vld [vmem:[%s15863_s1 + $0x3c8] sm:$0xff]   ;;  %v12923_v22 = vld [vmem:[%s15863_s1 + $0x3d0] sm:$0xff]   ;;  %v12925_v37 = vld [vmem:[%s15863_s1 + $0x3d8] sm:$0xff]  }
  0x6a   : > { %12023 = vmatmul.mubr.bf16.gmra.mrb[12].mxu0 %v10355_v38  ;;  %v5044_v8 = vrot.slane %v13430_v31, 5  ;;  %v15893_v26 = vcombine.low %v13294_v47, %v13304_v58  ;;  %v10414_v41 = vcombine.low %v5033_v51, %v5037_v55  ;;  %v12922_v31 = vld [vmem:[%s15863_s1 + $0x90] sm:$0xff]   ;;  %v5048_v34 = vrot.slane %v13477_v48, 5  ;;  %v12928_v38 = vld [vmem:[%s15863_s1 + $0xa0] sm:$0xff]  }
  0x6b   : > { %12042 = vmatprep.mubr.bf16.mxu0 %v10412_v21  ;;  %v10374_v21 = vld [vmem:[%s13246_s10 + $0xb8] sm:$0xe]  ;;  %v5052_v47 = vrot.slane %v13486_v59, 5  ;;  %v10388_v58 = vrot.slane %v10372_v6, 9  ;;  %v10389_v50 = vrot.slane %v10373_v20, 9  ;;  %v5056_v15 = vrot.slane %v13522_v30, 5 }
  0x6c   : > { %v10390_v43 = vrot.slane %v10374_v21, 9  ;;  %v5060_v32 = vrot.slane %v13538_v0, 5  ;;  %v5064_v24 = vrot.slane %v13571_v5, 5  ;;  %v5041_v48 = vsel %vm13627_vm5, %v10386_v60, %v5040_v35  ;;  %v10376_v0 = vld [vmem:[%s13246_s10 + $0xc8] sm:$0xe]  ;;  %v12929_v52 = vld [vmem:[%s15863_s1 + $0x3e0] sm:$0xff]  }
  0x6d   : > { %11627 = vmatmul.mubr.bf16.vlgmr.msra.gmra.mrb[0].mxu1 %v15893_v26  ;;  %v5045_v59 = vsel %vm13627_vm5, %v10387_v16, %v5044_v8  ;;  %v9657_v30 = vcombine.low %v13439_v54, %v13453_v10  ;;  %v10377_v5 = vld [vmem:[%s13246_s10 + $0xd0] sm:$0xe]  ;;  %v5053_v14 = vsel %vm13627_vm5, %v10389_v50, %v5052_v47  ;;  %v831_v10 = vld [vmem:[%s13246_s10 + $0x8] sm:$0xe]  ;;  %v10392_v25 = vrot.slane %v10376_v0, 9 }
  0x6e   : > { %11643 = vmatpush3.bf16.msra.mxu1 %v13531_v29  ;;  %11630 = vmatprep.mubr.bf16.mxu1 %v9655_v49  ;;  %v10375_v29 = vld [vmem:[%s13246_s10 + $0xc0] sm:$0xe]  ;;  %v12924_v49 = vld [vmem:[%s15863_s1 + $0x98] sm:$0xff]   ;;  %v10415_v56 = vcombine.low %v5041_v48, %v5045_v59  ;;  %v10393_v57 = vrot.slane %v10377_v5, 9  ;;  %v5068_v33 = vrot.slane %v13581_v62, 5  ;;  %v9670_v39 = vrot.slane %v831_v10, 9 }
  0x6f   : > { %11644 = vmatprep.subr.bf16.mxu1 %v12918_v44  ;;  %v10391_v54 = vrot.slane %v10375_v29, 9  ;;  %v832_v60 = vld [vmem:[%s13246_s10 + $0x10] sm:$0xe]  ;;  %v833_v35 = vld [vmem:[%s13246_s10 + $0x18] sm:$0xe]  ;;  %v9658_v16 = vcombine.low %v13489_v9, %v13493_v18  ;;  %v5057_v23 = vsel %vm13627_vm5, %v10390_v43, %v5056_v15  ;;  %v9659_v11 = vcombine.low %v13550_v3, %v13555_v7 }
  0x70   : > { %v13751_v51 = vsel %vm13627_vm5, %v9670_v39, %v887_v12  ;;  %v9671_v62 = vrot.slane %v832_v60, 9  ;;  %v9672_v55 = vrot.slane %v833_v35, 9  ;;  %v10378_v8 = vld [vmem:[%s13246_s10 + $0xd8] sm:$0xe]  ;;  %v10379_v3 = vld [vmem:[%s13246_s10 + $0xe0] sm:$0xe]  ;;  %v5065_v1 = vsel %vm13627_vm5, %v10392_v25, %v5064_v24 }
  0x71   : > { %v5061_v6 = vsel %vm13627_vm5, %v10391_v54, %v5060_v32  ;;  %v10394_v20 = vrot.slane %v10378_v8, 9  ;;  %v5072_v26 = vrot.slane %v13605_v40, 5  ;;  %v834_v21 = vld [vmem:[%s13246_s10 + $0x20] sm:$0xe]  ;;  %v13172_v47 = vld [vmem:[%s13246_s10 + $0x24] sm:$0x1] }
  0x72   : > { %12043 = vmatmul.mubr.bf16.vlgmr.msra.gmra.mrb[0].mxu0 %v10413_v17  ;;  %11645 = vmatpush3.bf16.msra.mxu1 %v12918_v44  ;;  %v5049_v17 = vsel %vm13627_vm5, %v10388_v58, %v5048_v34  ;;  %v13771_v9 = vsel %vm13627_vm5, %v9671_v62, %v891_v13  ;;  %v13777_v18 = vsel %vm13627_vm5, %v9672_v55, %v895_v27  ;;  %v5076_v34 = vrot.slane %v13617_v53, 5  ;;  %v13173_v50 = vld [vmem:[%s13246_s10 + $0x2c] sm:$0x1]  ;;  %v15894_v32 = vld [vmem:[#allocation9_spill] sm:$0xff]  ;;  %v12935_v48 = vld [vmem:[%s15863_s1 + $0x3f0] sm:$0xff]  }
  0x73   : > { %12059 = vmatpush3.bf16.msra.mxu0 %v13543_v63  ;;  %12046 = vmatprep.mubr.bf16.mxu0 %v10414_v41  ;;  %v9669_v63 = vrot.slane %v830_v61, 9  ;;  %v9702_v7 = vcombine.low %v13771_v9, %v13777_v18  ;;  %v5069_v13 = vsel %vm13627_vm5, %v10393_v57, %v5068_v33  ;;  %v10417_v27 = vcombine.low %v5057_v23, %v5061_v6  ;;  %v12934_v41 = vld [vmem:[%s15863_s1 + $0xb0] sm:$0xff]   ;;  %v12936_v53 = vld [vmem:[%s15863_s1 + $0xb8] sm:$0xff]   ;;  %v15897_v54 = vld [vmem:[#allocation6_spill] sm:$0xff] }
  0x74   : > { %12060 = vmatprep.subr.bf16.mxu0 %v12919_v19  ;;  %11646 = vmatprep.subr.bf16.mxu1 %v12922_v31  ;;  %v899_v58 = vrot.slane %v13172_v47, 5  ;;  %v903_v29 = vrot.slane %v13173_v50, 5  ;;  %v10418_v40 = vcombine.low %v5065_v1, %v5069_v13  ;;  %v9673_v43 = vrot.slane %v834_v21, 9  ;;  %v836_v5 = vld [vmem:[%s13246_s10 + $0x30] sm:$0xe]  ;;  %v15896_v61 = vld [vmem:[#allocation5_spill] sm:$0xff] }
  0x75   : > { %11631 = vmatmul.mubr.bf16.gmra.mrb[4].mxu1 %v9656_v28  ;;  %v10416_v28 = vcombine.low %v5049_v17, %v5053_v14  ;;  %v13743_v44 = vsel %vm13627_vm5, %v9669_v63, %v883_v46  ;;  %v12930_v46 = vld [vmem:[%s15863_s1 + $0xa8] sm:$0xff]   ;;  %v907_v15 = vrot.slane %v13397_v45, 5  ;;  %v9660_v24 = vcombine.low %v15894_v32, %v13588_v36  ;;  %v837_v17 = vld [vmem:[%s13246_s10 + $0x38] sm:$0xe]  ;;  %v13818_v14 = vld [vmem:[%s13246_s10 + $0x50] sm:$0xe] }
  0x76   : > { %11647 = vmatpush3.bf16.msra.mxu1 %v12922_v31  ;;  %11634 = vmatprep.mubr.bf16.mxu1 %v9657_v30  ;;  %v9701_v12 = vcombine.low %v13743_v44, %v13751_v51  ;;  %v10395_v31 = vrot.slane %v10379_v3, 9  ;;  %v5073_v36 = vsel %vm13627_vm5, %v10394_v20, %v5072_v26  ;;  %v927_v10 = vrot.slane %v15897_v54, 5  ;;  %v12938_v63 = vld [vmem:[%s13246_s10 + $0x60] ss:$8 sps:$4 sm:$0xff]   ;;  %v12937_v33 = vld [vmem:[%s15863_s1 + $0x3f8] sm:$0xff]   ;;  %v15899_v6 = vld [vmem:[#allocation4_spill] sm:$0xff] }
  0x77   : > { %12061 = vmatpush3.bf16.msra.mxu0 %v12919_v19  ;;  %11648 = vmatprep.subr.bf16.mxu1 %v12924_v49  ;;  %v12931_v19 = vld [vmem:[%s15863_s1 + $0x3e8] sm:$0xff]   ;;  %v12939_v39 = vld [vmem:[%s15863_s1 + $0xc0] sm:$0xff]   ;;  %v900_v60 = vsel %vm13627_vm5, %v9673_v43, %v899_v58  ;;  %v9675_v51 = vrot.slane %v836_v5, 9  ;;  %v9676_v62 = vrot.slane %v837_v17, 9  ;;  %v9677_v55 = vrot.slane %v13818_v14, 9  ;;  %v15901_v26 = vld [vmem:[#allocation8_spill] sm:$0xff] }
  0x78   : > { %12062 = vmatprep.subr.bf16.mxu0 %v12923_v22  ;;  %v5077_v0 = vsel %vm13627_vm5, %v10395_v31, %v5076_v34  ;;  %v841_v25 = vld [vmem:[%s13246_s10 + $0x68] sm:$0xe]  ;;  %v919_v3 = vrot.slane %v15899_v6, 5  ;;  %v12941_v1 = vld [vmem:[%s15863_s1 + $0x400] sm:$0xff]   ;;  %v935_v21 = vrot.slane %v15901_v26, 5  ;;  %v943_v47 = vrot.slane %v13598_v2, 5 }
  0x79   : > { %v10419_v57 = vcombine.low %v5073_v36, %v5077_v0  ;;  %v9680_v44 = vrot.slane %v841_v25, 9  ;;  %v12942_v8 = vld [vmem:[%s15863_s1 + $0xc8] sm:$0xff]   ;;  %v15902_v31 = vld [vmem:[#allocation10_spill] sm:$0xff]  ;;  %v12947_v5 = vld [vmem:[%s15863_s1 + $0x410] sm:$0xff]  }
  0x7a   : > { %12047 = vmatmul.mubr.bf16.gmra.mrb[4].mxu0 %v10415_v56  ;;  %11649 = vmatpush3.bf16.msra.mxu1 %v12924_v49  ;;  %v835_v49 = vld [vmem:[%s13246_s10 + $0x28] sm:$0xe]  ;;  %v923_v56 = vrot.slane %v15896_v61, 5  ;;  %v939_v34 = vrot.slane %v15902_v31, 5  ;;  %v844_v43 = vld [vmem:[%s13246_s10 + $0x80] sm:$0xe] }
  0x7b   : > { %12063 = vmatpush3.bf16.msra.mxu0 %v12923_v22  ;;  %12050 = vmatprep.mubr.bf16.mxu0 %v10416_v28  ;;  %v9674_v59 = vrot.slane %v835_v49, 9  ;;  %v15895_v22 = vld [vmem:[#allocation2_spill] sm:$0xff]  ;;  %v845_v2 = vld [vmem:[%s13246_s10 + $0x88] sm:$0xe]  ;;  %v9683_v18 = vrot.slane %v844_v43, 9  ;;  %v12948_v14 = vld [vmem:[%s15863_s1 + $0xd8] sm:$0xff]  }
  0x7c   : > { %12064 = vmatprep.subr.bf16.mxu0 %v12925_v37  ;;  %11650 = vmatprep.subr.bf16.mxu1 %v12928_v38  ;;  %v911_v30 = vrot.slane %v15895_v22, 5  ;;  %v12943_v32 = vld [vmem:[%s15863_s1 + $0x408] sm:$0xff]   ;;  %v12946_v61 = vld [vmem:[%s13246_s10 + $0x90] ss:$8 sps:$4 sm:$0xff]   ;;  %v13913_v54 = vld [vmem:[%s13246_s10 + $0x64] sm:$0x1] }
  0x7d   : > { %11635 = vmatmul.mubr.bf16.gmra.mrb[8].mxu1 %v9658_v16  ;;  %v904_v35 = vsel %vm13627_vm5, %v9674_v59, %v903_v29  ;;  %v15898_v16 = vld [vmem:[#allocation3_spill] sm:$0xff]  ;;  %v12940_v29 = vld [vmem:[%s13246_s10 + $0x70] ss:$8 sps:$4 sm:$0xff]   ;;  %v13896_v22 = vsel %vm13627_vm5, %v9683_v18, %v939_v34  ;;  %v5575_v25 = vshll.u32 %v13913_v54, 16  ;;  %v10487_v18 = vld [vmem:[%s13246_s10 + $0x80] sm:$0xf] }
  0x7e   : > { %11651 = vmatpush3.bf16.msra.mxu1 %v12928_v38  ;;  %11638 = vmatprep.mubr.bf16.mxu1 %v9659_v11  ;;  %v840_v38 = vld [vmem:[%s13246_s10 + $0x60] sm:$0xe]  ;;  %v915_v23 = vrot.slane %v15898_v16, 5  ;;  %v13844_v11 = vsel %vm13627_vm5, %v9680_v44, %v927_v10  ;;  %v9703_v13 = vcombine.low %v900_v60, %v904_v35  ;;  %v912_v49 = vsel %vm13627_vm5, %v9676_v62, %v911_v30  ;;  %v12945_v59 = vld [vmem:[%s15863_s1 + $0xd0] sm:$0xff]   ;;  %v10481_v10 = vld [vmem:[%s13246_s10 + $0x68] sm:$0xf] }
  0x7f   : > { %12065 = vmatpush3.bf16.msra.mxu0 %v12925_v37  ;;  %11652 = vmatprep.subr.bf16.mxu1 %v12930_v46  ;;  %v839_v37 = vld [vmem:[%s13246_s10 + $0x58] sm:$0xe]  ;;  %v9679_v28 = vrot.slane %v840_v38, 9  ;;  %v12951_v35 = vld [vmem:[%s15863_s1 + $0xe0] sm:$0xff]   ;;  %v13935_v6 = vrot.slane %v5575_v25, 5 }
  0x80   : > { %12066 = vmatprep.subr.bf16.mxu0 %v12929_v52  ;;  %v12949_v60 = vld [vmem:[%s15863_s1 + $0x418] sm:$0xff]   ;;  %v12952_v26 = vld [vmem:[%s13246_s10 + $0xc0] ss:$8 sps:$4 sm:$0xff]  }
  0x81   : > { %v12956_v31 = vld [vmem:[%s13246_s10 + $0xd0] ss:$8 sps:$4 sm:$0xff]  }
  0x82   : > { %12051 = vmatmul.mubr.bf16.gmra.mrb[8].mxu0 %v10417_v27  ;;  %11653 = vmatpush3.bf16.msra.mxu1 %v12930_v46  ;;  %v13840_v46 = vsel %vm13627_vm5, %v9679_v28, %v923_v56  ;;  %v15900_v27 = vld [vmem:[#allocation7_spill] sm:$0xff]  ;;  %v10479_v56 = vld [vmem:[%s13246_s10 + $0x60] sm:$0xf] }
  0x83   : > { %12067 = vmatpush3.bf16.msra.mxu0 %v12929_v52  ;;  %12054 = vmatprep.mubr.bf16.mxu0 %v10418_v40  ;;  %v9706_v52 = vcombine.low %v13840_v46, %v13844_v11  ;;  %v931_v20 = vrot.slane %v15900_v27, 5  ;;  %v908_v40 = vsel %vm13627_vm5, %v9675_v51, %v907_v15  ;;  %v12944_v15 = vld [vmem:[%s13246_s10 + $0x80] ss:$8 sps:$4 sm:$0xff]   ;;  %v5569_v38 = vshll.u32 %v10479_v56, 16 }
  0x84   : > { %12068 = vmatprep.subr.bf16.mxu0 %v12931_v19  ;;  %11654 = vmatprep.subr.bf16.mxu1 %v12934_v41  ;;  %v9704_v36 = vcombine.low %v908_v40, %v912_v49  ;;  %v12955_v46 = vld [vmem:[%s15863_s1 + $0x428] sm:$0xff]  }
  0x85   : > { %11639 = vmatmul.mubr.bf16.gmra.mrb[12].mxu1 %v9660_v24  ;;  %v916_v24 = vsel %vm13627_vm5, %v9677_v55, %v915_v23  ;;  %v5571_v44 = vrot.slane %v5569_v38, 5  ;;  %v10483_v23 = vld [vmem:[%s13246_s10 + $0x70] sm:$0xf] }
  0x86   : > { %11655 = vmatpush3.bf16.msra.mxu1 %v12934_v41  ;;  %11658 = vmatprep.mubr.bf16.mxu1 %v9701_v12  ;;  %v9678_v12 = vrot.slane %v839_v37, 9  ;;  %v843_v41 = vld [vmem:[%s13246_s10 + $0x78] sm:$0xe]  ;;  %v5566_v37 = vshrl.u32 %v10479_v56, 16  ;;  %v5594_v27 = vshrl.u32 %v10483_v23, 16 }
  0x87   : > { %12069 = vmatpush3.bf16.msra.mxu0 %v12931_v19  ;;  %11656 = vmatprep.subr.bf16.mxu1 %v12936_v53  ;;  %v842_v19 = vld [vmem:[%s13246_s10 + $0x70] sm:$0xe]  ;;  %v9682_v50 = vrot.slane %v843_v41, 9 }
  0x88   : > { %12070 = vmatprep.subr.bf16.mxu0 %v12935_v48  ;;  %v9681_v58 = vrot.slane %v842_v19, 9  ;;  %v5568_v28 = vrot.slane %v5566_v37, 4 }
  0x89   : > { %v13882_v45 = vsel %vm13627_vm5, %v9682_v50, %v935_v21  ;;  %v13943_v21 = vld [vmem:[%s13246_s10 + $0x7c] sm:$0x1] }
  0x8a   : > { %12055 = vmatmul.mubr.bf16.gmra.mrb[12].mxu0 %v10419_v57  ;;  %11657 = vmatpush3.bf16.msra.mxu1 %v12936_v53  ;;  %v13878_v9 = vsel %vm13627_vm5, %v9681_v58, %v931_v20  ;;  %v920_v53 = vsel %vm13627_vm5, %v9678_v12, %v919_v3  ;;  %v5580_v57 = vshrl.u32 %v10481_v10, 16  ;;  %v5572_v55 = vor.u32 %v5571_v44, %v5568_v28  ;;  %v12954_v12 = vld [vmem:[%s15863_s1 + $0xe8] sm:$0xff]  }
  0x8b   : > { %12071 = vmatpush3.bf16.msra.mxu0 %v12935_v48  ;;  %12074 = vmatprep.mubr.bf16.mxu0 %v12938_v63  ;;  %v9707_v48 = vcombine.low %v13878_v9, %v13882_v45  ;;  %v9705_v17 = vcombine.low %v916_v24, %v920_v53  ;;  %v13917_v63 = vld [vmem:[%s13246_s10 + $0x6c] sm:$0x1]  ;;  %v5597_v20 = vshll.u32 %v10483_v23, 16  ;;  %v5596_v58 = vrot.slane %v5594_v27, 4  ;;  %v12962_v9 = vld [vmem:[%s13246_s10 + $0x8] ss:$8 sps:$4 sm:$0xff]  }
  0x8c   : > { %12072 = vmatprep.subr.bf16.mxu0 %v12937_v33  ;;  %11674 = vmatprep.subr.bf16.mxu1 %v12939_v39  ;;  %v5582_v51 = vrot.slane %v5580_v57, 4  ;;  %v5589_v16 = vshll.u32 %v13917_v63, 16  ;;  %v5573_v34 = vrot.slane %v5572_v55, 4  ;;  %v5617_v11 = vshll.u32 %v13943_v21, 16  ;;  %v12958_v57 = vld [vmem:[%s13246_s10 + $0xe0] ss:$8 sps:$4 sm:$0xff]  }
  0x8d   : > { %11659 = vmatmul.mubr.bf16.vlgmr.msra.gmra.mrb[0].mxu1 %v9702_v7  ;;  %v9684_v7 = vrot.slane %v845_v2, 9  ;;  %v5599_v50 = vrot.slane %v5597_v20, 5  ;;  %v13996_v55 = vld [vmem:[%s13246_s10 + $0x94] sm:$0x1]  ;;  %v12964_v23 = vld [vmem:[%s15863_s1 + $0x100] sm:$0xff]  }
  0x8e   : > { %11675 = vmatpush3.bf16.msra.mxu1 %v12939_v39  ;;  %11662 = vmatprep.mubr.bf16.mxu1 %v9703_v13  ;;  %v12950_v39 = vld [vmem:[%s13246_s10 + $0xb0] ss:$8 sps:$4 sm:$0xff]   ;;  %v13939_v13 = vld [vmem:[%s13246_s10 + $0x74] sm:$0x1]  ;;  %v5578_v24 = vsel %vm13288_vm2, %v5573_v34, %v13935_v6  ;;  %v14004_v6 = vld [vmem:[%s13246_s10 + $0x9c] sm:$0x1] }
  0x8f   : > { %12073 = vmatpush3.bf16.msra.mxu0 %v12937_v33  ;;  %11676 = vmatprep.subr.bf16.mxu1 %v12942_v8  ;;  %v13900_v30 = vsel %vm13627_vm5, %v9684_v7, %v943_v47  ;;  %v5583_v33 = vshll.u32 %v10481_v10, 16  ;;  %v5591_v47 = vrot.slane %v5589_v16, 5  ;;  %v5603_v40 = vshll.u32 %v13939_v13, 16  ;;  %v13966_v7 = vld [vmem:[%s13246_s10 + $0x84] sm:$0x1] }
  0x90   : > { %12090 = vmatprep.subr.bf16.mxu0 %v12941_v1  ;;  %v9708_v0 = vcombine.low %v13896_v22, %v13900_v30  ;;  %v5600_v2 = vor.u32 %v5599_v50, %v5596_v58  ;;  %v12963_v30 = vld [vmem:[%s13246_s10 + $0x18] ss:$8 sps:$4 sm:$0xff]   ;;  %v5659_v27 = vshll.u32 %v13996_v55, 16 }
  0x91   : > { %v5585_v62 = vrot.slane %v5583_v33, 5  ;;  %v10493_v16 = vld [vmem:[%s13246_s10 + $0x98] sm:$0xf]  ;;  %v12965_v34 = vld [vmem:[%s15863_s1 + $0x440] sm:$0xff]  }
  0x92   : > { %12075 = vmatmul.mubr.bf16.vlgmr.msra.gmra.mrb[0].mxu0 %v12940_v29  ;;  %11677 = vmatpush3.bf16.msra.mxu1 %v12942_v8  ;;  %v12953_v8 = vld [vmem:[%s15863_s1 + $0x420] sm:$0xff]   ;;  %v5601_v10 = vrot.slane %v5600_v2, 4 }
  0x93   : > { %12091 = vmatpush3.bf16.msra.mxu0 %v12941_v1  ;;  %12078 = vmatprep.mubr.bf16.mxu0 %v12944_v15  ;;  %v5586_v3 = vor.u32 %v5585_v62, %v5582_v51  ;;  %v10485_v1 = vld [vmem:[%s13246_s10 + $0x78] sm:$0xf]  ;;  %v12959_v15 = vld [vmem:[%s15863_s1 + $0x430] sm:$0xff]  }
  0x94   : > { %12092 = vmatprep.subr.bf16.mxu0 %v12943_v32  ;;  %11678 = vmatprep.subr.bf16.mxu1 %v12945_v59  ;;  %v5608_v19 = vshrl.u32 %v10485_v1, 16  ;;  %v5611_v41 = vshll.u32 %v10485_v1, 16  ;;  %v10491_v62 = vld [vmem:[%s13246_s10 + $0x90] sm:$0xf] }
  0x95   : > { %11663 = vmatmul.mubr.bf16.gmra.mrb[4].mxu1 %v9704_v36  ;;  %v5587_v29 = vrot.slane %v5586_v3, 4  ;;  %v13980_v36 = vld [vmem:[%s13246_s10 + $0x8c] sm:$0x1]  ;;  %v5650_v3 = vshrl.u32 %v10491_v62, 16  ;;  %v5653_v1 = vshll.u32 %v10491_v62, 16 }
  0x96   : > { %11679 = vmatpush3.bf16.msra.mxu1 %v12945_v59  ;;  %11666 = vmatprep.mubr.bf16.mxu1 %v9705_v17  ;;  %v5610_v49 = vrot.slane %v5608_v19, 4  ;;  %v5613_v43 = vrot.slane %v5611_v41, 5  ;;  %v10489_v59 = vld [vmem:[%s13246_s10 + $0x88] sm:$0xf]  ;;  %v13982_v17 = vrot.slane %v5617_v11, 5  ;;  %v5645_v25 = vshll.u32 %v13980_v36, 16 }
  0x97   : > { %12093 = vmatpush3.bf16.msra.mxu0 %v12943_v32  ;;  %11680 = vmatprep.subr.bf16.mxu1 %v12948_v14  ;;  %v12960_v32 = vld [vmem:[%s15863_s1 + $0xf8] sm:$0xff]   ;;  %v5592_v53 = vsel %vm13288_vm2, %v5587_v29, %v5591_v47  ;;  %v5636_v56 = vshrl.u32 %v10489_v59, 16  ;;  %v5639_v38 = vshll.u32 %v10489_v59, 16  ;;  %v5667_v19 = vshll.u32 %v10493_v16, 16 }
  0x98   : > { %12094 = vmatprep.subr.bf16.mxu0 %v12947_v5  ;;  %v5614_v45 = vor.u32 %v5613_v43, %v5610_v49  ;;  %v5647_v51 = vrot.slane %v5645_v25, 5  ;;  %v10527_v22 = vcombine.low %v5578_v24, %v5592_v53  ;;  %v5673_v41 = vshll.u32 %v14004_v6, 16  ;;  %v10495_v53 = vld [vmem:[%s13246_s10 + $0xb0] sm:$0xf] }
  0x99   : > { %v5638_v44 = vrot.slane %v5636_v56, 4  ;;  %v5652_v58 = vrot.slane %v5650_v3, 4  ;;  %v5655_v50 = vrot.slane %v5653_v1, 5  ;;  %v5661_v49 = vrot.slane %v5659_v27, 5  ;;  %v14036_v56 = vld [vmem:[%s13246_s10 + $0xbc] sm:$0x1] }
  0x9a   : > { %12079 = vmatmul.mubr.bf16.gmra.mrb[4].mxu0 %v12946_v61  ;;  %11681 = vmatpush3.bf16.msra.mxu1 %v12948_v14  ;;  %v5625_v14 = vshll.u32 %v10487_v18, 16  ;;  %v5631_v61 = vshll.u32 %v13966_v7, 16  ;;  %v5615_v33 = vrot.slane %v5614_v45, 4  ;;  %v6049_v45 = vrot.slane %v13913_v54, 5  ;;  %v10499_v3 = vld [vmem:[%s13246_s10 + $0xc0] sm:$0xf] }
  0x9b   : > { %12095 = vmatpush3.bf16.msra.mxu0 %v12947_v5  ;;  %12082 = vmatprep.mubr.bf16.mxu0 %v12950_v39  ;;  %v5622_v5 = vshrl.u32 %v10487_v18, 16  ;;  %v5656_v2 = vor.u32 %v5655_v50, %v5652_v58  ;;  %v6053_v59 = vrot.slane %v13917_v63, 5  ;;  %v5681_v25 = vshll.u32 %v10495_v53, 16  ;;  %v14056_v1 = vld [vmem:[%s13246_s10 + $0xc4] sm:$0x1] }
  0x9c   : > { %12096 = vmatprep.subr.bf16.mxu0 %v12949_v60  ;;  %11682 = vmatprep.subr.bf16.mxu1 %v12951_v35  ;;  %v5627_v39 = vrot.slane %v5625_v14, 5  ;;  %v5633_v28 = vrot.slane %v5631_v61, 5  ;;  %v5620_v29 = vsel %vm13288_vm2, %v5615_v33, %v13982_v17  ;;  %v12969_v17 = vld [vmem:[%s13246_s10 + $0x38] ss:$8 sps:$4 sm:$0xff]   ;;  %v10501_v27 = vld [vmem:[%s13246_s10 + $0xc8] sm:$0xf] }
  0x9d   : > { %11667 = vmatmul.mubr.bf16.gmra.mrb[8].mxu1 %v9706_v52  ;;  %v12957_v52 = vld [vmem:[%s15863_s1 + $0xf0] sm:$0xff]   ;;  %v5624_v37 = vrot.slane %v5622_v5, 4  ;;  %v5657_v24 = vrot.slane %v5656_v2, 4  ;;  %v10497_v61 = vld [vmem:[%s13246_s10 + $0xb8] sm:$0xf]  ;;  %v5720_v58 = vshrl.u32 %v10501_v27, 16 }
  0x9e   : > { %11683 = vmatpush3.bf16.msra.mxu1 %v12951_v35  ;;  %11670 = vmatprep.mubr.bf16.mxu1 %v9707_v48  ;;  %v13976_v48 = vrot.slane %v5603_v40, 5  ;;  %v5641_v35 = vrot.slane %v5639_v38, 5  ;;  %v12966_v40 = vld [vmem:[%s15863_s1 + $0x108] sm:$0xff]   ;;  %v5692_v33 = vshrl.u32 %v10497_v61, 16  ;;  %v5723_v50 = vshll.u32 %v10501_v27, 16  ;;  %v12982_v27 = vld [vmem:[%s15863_s1 + $0x130] sm:$0xff]  }
  0x9f   : > { %12097 = vmatpush3.bf16.msra.mxu0 %v12949_v60  ;;  %11684 = vmatprep.subr.bf16.mxu1 %v12954_v12  ;;  %v12961_v60 = vld [vmem:[%s15863_s1 + $0x438] sm:$0xff]   ;;  %v5662_v38 = vsel %vm13288_vm2, %v5657_v24, %v5661_v49  ;;  %v12975_v49 = vld [vmem:[%s13246_s10 + $0x68] ss:$8 sps:$4 sm:$0xff]  }
  0xa0   : > { %12098 = vmatprep.subr.bf16.mxu0 %v12953_v8  ;;  %v5694_v62 = vrot.slane %v5692_v33, 4  ;;  %v14088_v33 = vld [vmem:[%s13246_s10 + $0xdc] sm:$0x1] }
  0xa2   : > { %12083 = vmatmul.mubr.bf16.gmra.mrb[8].mxu0 %v12952_v26  ;;  %11685 = vmatpush3.bf16.msra.mxu1 %v12954_v12  ;;  %v5642_v12 = vor.u32 %v5641_v35, %v5638_v44  ;;  %v5664_v26 = vshrl.u32 %v10493_v16, 16  ;;  %v5695_v44 = vshll.u32 %v10497_v61, 16  ;;  %v12971_v35 = vld [vmem:[%s15863_s1 + $0x450] sm:$0xff]  }
  0xa3   : > { %12099 = vmatpush3.bf16.msra.mxu0 %v12953_v8  ;;  %12086 = vmatprep.mubr.bf16.mxu0 %v12956_v31  ;;  %v12968_v8 = vld [vmem:[%s13246_s10 + $0x28] ss:$8 sps:$4 sm:$0xff]   ;;  %v5606_v31 = vsel %vm13288_vm2, %v5601_v10, %v13976_v48  ;;  %v14030_v48 = vld [vmem:[%s13246_s10 + $0xb4] sm:$0x1]  ;;  %v5678_v10 = vshrl.u32 %v10495_v53, 16 }
  0xa4   : > { %12100 = vmatprep.subr.bf16.mxu0 %v12955_v46  ;;  %11686 = vmatprep.subr.bf16.mxu1 %v12957_v52  ;;  %v5643_v47 = vrot.slane %v5642_v12, 4  ;;  %v5666_v43 = vrot.slane %v5664_v26, 4  ;;  %v10528_v18 = vcombine.low %v5606_v31, %v5620_v29  ;;  %v5697_v16 = vrot.slane %v5695_v44, 5  ;;  %v12976_v26 = vld [vmem:[%s15863_s1 + $0x120] sm:$0xff]  }
  0xa5   : > { %11671 = vmatmul.mubr.bf16.gmra.mrb[12].mxu1 %v9708_v0  ;;  %v5628_v0 = vor.u32 %v5627_v39, %v5624_v37  ;;  %v12970_v37 = vld [vmem:[%s15863_s1 + $0x110] sm:$0xff]   ;;  %v5709_v31 = vshll.u32 %v10499_v3, 16 }
  0xa6   : > { %11687 = vmatpush3.bf16.msra.mxu1 %v12957_v52  ;;  %11690 = vmatprep.mubr.bf16.mxu1 %v12962_v9  ;;  %v5648_v52 = vsel %vm13288_vm2, %v5643_v47, %v5647_v51  ;;  %v5675_v9 = vrot.slane %v5673_v41, 5  ;;  %v12972_v51 = vld [vmem:[%s15863_s1 + $0x118] sm:$0xff]   ;;  %v5706_v41 = vshrl.u32 %v10499_v3, 16  ;;  %v12981_v3 = vld [vmem:[%s13246_s10 + $0x88] ss:$8 sps:$4 sm:$0xff]  }
  0xa7   : > { %12101 = vmatpush3.bf16.msra.mxu0 %v12955_v46  ;;  %11688 = vmatprep.subr.bf16.mxu1 %v12960_v32  ;;  %v5629_v20 = vrot.slane %v5628_v0, 4  ;;  %v5669_v46 = vrot.slane %v5667_v19, 5  ;;  %v14063_v19 = vld [vmem:[%s13246_s10 + $0xcc] sm:$0x1] }
  0xa8   : > { %12102 = vmatprep.subr.bf16.mxu0 %v12959_v15  ;;  %v5729_v29 = vshll.u32 %v14063_v19, 16 }
  0xa9   : > { %v5634_v11 = vsel %vm13288_vm2, %v5629_v20, %v5633_v28  ;;  %v5680_v28 = vrot.slane %v5678_v10, 4  ;;  %v5698_v20 = vor.u32 %v5697_v16, %v5694_v62  ;;  %v12978_v10 = vld [vmem:[%s15863_s1 + $0x128] sm:$0xff]   ;;  %v5757_v62 = vshll.u32 %v14088_v33, 16 }
  0xaa   : > { %12087 = vmatmul.mubr.bf16.gmra.mrb[12].mxu0 %v12958_v57  ;;  %11689 = vmatpush3.bf16.msra.mxu1 %v12960_v32  ;;  %v5670_v32 = vor.u32 %v5669_v46, %v5666_v43  ;;  %v10529_v5 = vcombine.low %v5634_v11, %v5648_v52  ;;  %v5687_v57 = vshll.u32 %v14030_v48, 16  ;;  %v5708_v43 = vrot.slane %v5706_v41, 4  ;;  %v12973_v52 = vld [vmem:[%s15863_s1 + $0x458] sm:$0xff]  }
  0xab   : > { %12103 = vmatpush3.bf16.msra.mxu0 %v12959_v15  ;;  %12106 = vmatprep.mubr.bf16.mxu0 %v10527_v22  ;;  %v12967_v15 = vld [vmem:[%s15863_s1 + $0x448] sm:$0xff]   ;;  %v12974_v22 = vld [vmem:[%s13246_s10 + $0x58] ss:$8 sps:$4 sm:$0xff]   ;;  %v5711_v46 = vrot.slane %v5709_v31, 5 }
  0xac   : > { %12104 = vmatprep.subr.bf16.mxu0 %v12961_v60  ;;  %11706 = vmatprep.subr.bf16.mxu1 %v12964_v23  ;;  %v5671_v14 = vrot.slane %v5670_v32, 4  ;;  %v5689_v0 = vrot.slane %v5687_v57, 5  ;;  %v5722_v32 = vrot.slane %v5720_v58, 4  ;;  %v10505_v57 = vld [vmem:[%s13246_s10 + $0xd8] sm:$0xf] }
  0xad   : > { %11691 = vmatmul.mubr.bf16.vlgmr.msra.gmra.mrb[0].mxu1 %v12963_v30  ;;  %v5683_v30 = vrot.slane %v5681_v25, 5  ;;  %v5712_v24 = vor.u32 %v5711_v46, %v5708_v43  ;;  %v10507_v31 = vld [vmem:[%s13246_s10 + $0xe0] sm:$0xf]  ;;  %v12983_v43 = vld [vmem:[%s15863_s1 + $0x470] sm:$0xff]   ;;  %v12984_v46 = vld [vmem:[%s15863_s1 + $0x138] sm:$0xff]  }
  0xae   : > { %11707 = vmatpush3.bf16.msra.mxu1 %v12964_v23  ;;  %11694 = vmatprep.mubr.bf16.mxu1 %v12968_v8  ;;  %v5676_v39 = vsel %vm13288_vm2, %v5671_v14, %v5675_v9  ;;  %v5725_v9 = vrot.slane %v5723_v50, 5  ;;  %v12980_v14 = vld [vmem:[%s13246_s10 + $0x78] ss:$8 sps:$4 sm:$0xff]   ;;  %v14109_v50 = vld [vmem:[%s13246_s10 + $0xec] sm:$0x1] }
  0xaf   : > { %12105 = vmatpush3.bf16.msra.mxu0 %v12961_v60  ;;  %11708 = vmatprep.subr.bf16.mxu1 %v12966_v40  ;;  %v5701_v60 = vshll.u32 %v14036_v56, 16  ;;  %v10530_v8 = vcombine.low %v5662_v38, %v5676_v39  ;;  %v5684_v12 = vor.u32 %v5683_v30, %v5680_v28  ;;  %v5713_v61 = vrot.slane %v5712_v24, 4  ;;  %v14084_v38 = vld [vmem:[%s13246_s10 + $0xd4] sm:$0x1] }
  0xb0   : > { %12122 = vmatprep.subr.bf16.mxu0 %v12965_v34 }
  0xb1   : > { %v5703_v23 = vrot.slane %v5701_v60, 5  ;;  %v5685_v47 = vrot.slane %v5684_v12, 4  ;;  %v5743_v60 = vshll.u32 %v14084_v38, 16 }
  0xb2   : > { %12107 = vmatmul.mubr.bf16.vlgmr.msra.gmra.mrb[0].mxu0 %v10528_v18  ;;  %11709 = vmatpush3.bf16.msra.mxu1 %v12966_v40  ;;  %v5699_v40 = vrot.slane %v5698_v20, 4  ;;  %v5731_v18 = vrot.slane %v5729_v29, 5  ;;  %v5762_v29 = vshrl.u32 %v10507_v31, 16 }
  0xb3   : > { %12123 = vmatpush3.bf16.msra.mxu0 %v12965_v34  ;;  %12110 = vmatprep.mubr.bf16.mxu0 %v10529_v5  ;;  %v5715_v34 = vshll.u32 %v14056_v1, 16  ;;  %v5690_v2 = vsel %vm13288_vm2, %v5685_v47, %v5689_v0  ;;  %v5726_v5 = vor.u32 %v5725_v9, %v5722_v32  ;;  %v5751_v0 = vshll.u32 %v10505_v57, 16  ;;  %v10509_v47 = vld [vmem:[%s13246_s10 + $0xe8] sm:$0xf] }
  0xb4   : > { %12124 = vmatprep.subr.bf16.mxu0 %v12967_v15  ;;  %11710 = vmatprep.subr.bf16.mxu1 %v12970_v37  ;;  %v5785_v32 = vshll.u32 %v14109_v50, 16 }
  0xb5   : > { %11695 = vmatmul.mubr.bf16.gmra.mrb[4].mxu1 %v12969_v17  ;;  %v5717_v11 = vrot.slane %v5715_v34, 5  ;;  %v12977_v17 = vld [vmem:[%s15863_s1 + $0x460] sm:$0xff]   ;;  %v5727_v25 = vrot.slane %v5726_v5, 4  ;;  %v5753_v20 = vrot.slane %v5751_v0, 5 }
  0xb6   : > { %11711 = vmatpush3.bf16.msra.mxu1 %v12970_v37  ;;  %11698 = vmatprep.mubr.bf16.mxu1 %v12974_v22  ;;  %v10503_v37 = vld [vmem:[%s13246_s10 + $0xd0] sm:$0xf]  ;;  %v12979_v22 = vld [vmem:[%s15863_s1 + $0x468] sm:$0xff]   ;;  %v14105_v34 = vld [vmem:[%s13246_s10 + $0xe4] sm:$0x1] }
  0xb7   : > { %12125 = vmatpush3.bf16.msra.mxu0 %v12967_v15  ;;  %11712 = vmatprep.subr.bf16.mxu1 %v12972_v51  ;;  %v5704_v15 = vsel %vm13288_vm2, %v5699_v40, %v5703_v23  ;;  %v5734_v39 = vshrl.u32 %v10503_v37, 16  ;;  %v5718_v28 = vsel %vm13288_vm2, %v5713_v61, %v5717_v11  ;;  %v5737_v44 = vshll.u32 %v10503_v37, 16  ;;  %v14124_v61 = vld [vmem:[%s15863_s1 + $0x140] sm:$0xff]  }
  0xb8   : > { %12126 = vmatprep.subr.bf16.mxu0 %v12971_v35  ;;  %v10531_v53 = vcombine.low %v5690_v2, %v5704_v15  ;;  %v5765_v40 = vshll.u32 %v10507_v31, 16  ;;  %v5779_v2 = vshll.u32 %v10509_v47, 16 }
  0xb9   : > { %v5736_v30 = vrot.slane %v5734_v39, 4  ;;  %v5739_v23 = vrot.slane %v5737_v44, 5  ;;  %v14133_v44 = vld [vmem:[%s13246_s10 + $0xc] sm:$0x1] }
  0xba   : > { %12111 = vmatmul.mubr.bf16.gmra.mrb[4].mxu0 %v10530_v8  ;;  %11713 = vmatpush3.bf16.msra.mxu1 %v12972_v51  ;;  %v5732_v51 = vsel %vm13288_vm2, %v5727_v25, %v5731_v18  ;;  %v5745_v8 = vrot.slane %v5743_v60, 5  ;;  %v5764_v18 = vrot.slane %v5762_v29, 4  ;;  %v5767_v15 = vrot.slane %v5765_v40, 5  ;;  %v12985_v25 = vld [vmem:[%s15863_s1 + $0x478] sm:$0xff]   ;;  %v9768_v60 = vld [vmem:[%s13246_s10 + $0x10] sm:$0xf] }
  0xbb   : > { %12127 = vmatpush3.bf16.msra.mxu0 %v12971_v35  ;;  %11714 = vmatprep.subr.bf16.mxu1 %v12976_v26  ;;  %v5748_v35 = vshrl.u32 %v10505_v57, 16  ;;  %v10532_v16 = vcombine.low %v5718_v28, %v5732_v51  ;;  %v5740_v41 = vor.u32 %v5739_v23, %v5736_v30  ;;  %v9766_v28 = vld [vmem:[%s13246_s10 + $0x8] sm:$0xf]  ;;  %v14137_v51 = vld [vmem:[%s13246_s10 + $0x14] sm:$0x1]  ;;  %v1450_v23 = vshll.u32 %v9768_v60, 16 }
  0xbc   : > { %12128 = vmatprep.subr.bf16.mxu0 %v12973_v52  ;;  %12114 = vmatprep.mubr.bf16.mxu0 %v10531_v53  ;;  %v5768_v37 = vor.u32 %v5767_v15, %v5764_v18  ;;  %v1433_v30 = vshrl.u32 %v9766_v28, 16  ;;  %v1436_v0 = vshll.u32 %v9766_v28, 16  ;;  %v9770_v40 = vld [vmem:[%s13246_s10 + $0x18] sm:$0xf]  ;;  %v14159_v18 = vld [vmem:[%s13246_s10 + $0x24] sm:$0x1] }
  0xbd   : > { %11699 = vmatmul.mubr.bf16.gmra.mrb[8].mxu1 %v12975_v49  ;;  %v5750_v12 = vrot.slane %v5748_v35, 4  ;;  %v5771_v49 = vshll.u32 %v14105_v34, 16  ;;  %v5741_v11 = vrot.slane %v5740_v41, 4  ;;  %v10544_v41 = vld [vmem:[%s13246_s10 + $0x68] sm:$0xe]  ;;  %v1461_v15 = vshrl.u32 %v9770_v40, 16 }
  0xbe   : > { %11715 = vmatpush3.bf16.msra.mxu1 %v12976_v26  ;;  %11702 = vmatprep.mubr.bf16.mxu1 %v12980_v14  ;;  %v5759_v26 = vrot.slane %v5757_v62, 5  ;;  %v5787_v14 = vrot.slane %v5785_v32, 5  ;;  %v5769_v35 = vrot.slane %v5768_v37, 4  ;;  %v1442_v62 = vshll.u32 %v14133_v44, 16  ;;  %v14155_v32 = vld [vmem:[%s13246_s10 + $0x1c] sm:$0x1] }
  0xbf   : > { %12129 = vmatpush3.bf16.msra.mxu0 %v12973_v52  ;;  %11716 = vmatprep.subr.bf16.mxu1 %v12978_v10  ;;  %v5754_v58 = vor.u32 %v5753_v20, %v5750_v12  ;;  %v5776_v52 = vshrl.u32 %v10509_v47, 16  ;;  %v5773_v24 = vrot.slane %v5771_v49, 5  ;;  %v5746_v53 = vsel %vm13288_vm2, %v5741_v11, %v5745_v8  ;;  %v10543_v12 = vld [vmem:[%s13246_s10 + $0x60] sm:$0xe] }
  0xc0   : > { %12130 = vmatprep.subr.bf16.mxu0 %v12977_v17  ;;  %v1456_v8 = vshll.u32 %v14137_v51, 16  ;;  %v1438_v20 = vrot.slane %v1436_v0, 5  ;;  %v14152_v49 = vld [vmem:[%s15863_s1 + $0x480] sm:$0xff]  }
  0xc1   : > { %v5755_v9 = vrot.slane %v5754_v58, 4  ;;  %v5778_v5 = vrot.slane %v5776_v52, 4  ;;  %v1452_v58 = vrot.slane %v1450_v23, 5  ;;  %v10559_v52 = vrot.slane %v10543_v12, 9 }
  0xc2   : > { %12115 = vmatmul.mubr.bf16.gmra.mrb[8].mxu0 %v10532_v16  ;;  %11717 = vmatpush3.bf16.msra.mxu1 %v12978_v10  ;;  %v1458_v29 = vrot.slane %v1456_v8, 5  ;;  %v6057_v23 = vrot.slane %v13939_v13, 5 }
  0xc3   : > { %12131 = vmatpush3.bf16.msra.mxu0 %v12977_v17  ;;  %11718 = vmatprep.subr.bf16.mxu1 %v12982_v27  ;;  %v5781_v17 = vrot.slane %v5779_v2, 5  ;;  %v5760_v10 = vsel %vm13288_vm2, %v5755_v9, %v5759_v26  ;;  %v1444_v26 = vrot.slane %v1442_v62, 5  ;;  %v10560_v2 = vrot.slane %v10544_v41, 9  ;;  %v9772_v9 = vld [vmem:[%s13246_s10 + $0x20] sm:$0xf] }
  0xc4   : > { %12132 = vmatprep.subr.bf16.mxu0 %v12979_v22  ;;  %v10533_v57 = vcombine.low %v5746_v53, %v5760_v10  ;;  %v1470_v53 = vshll.u32 %v14155_v32, 16  ;;  %v1475_v10 = vshrl.u32 %v9772_v9, 16  ;;  %v1478_v0 = vshll.u32 %v9772_v9, 16  ;;  %v10546_v62 = vld [vmem:[%s13246_s10 + $0x78] sm:$0xe] }
  0xc5   : > { %11703 = vmatmul.mubr.bf16.gmra.mrb[12].mxu1 %v12981_v3  ;;  %v5782_v39 = vor.u32 %v5781_v17, %v5778_v5  ;;  %v5774_v3 = vsel %vm13288_vm2, %v5769_v35, %v5773_v24  ;;  %v1464_v24 = vshll.u32 %v9770_v40, 16  ;;  %v6050_v17 = vsel %vm13627_vm5, %v10559_v52, %v6049_v45 }
  0xc6   : > { %11719 = vmatpush3.bf16.msra.mxu1 %v12982_v27  ;;  %12118 = vmatprep.mubr.bf16.mxu0 %v10533_v57  ;;  %v1435_v27 = vrot.slane %v1433_v30, 4  ;;  %v1472_v30 = vrot.slane %v1470_v53, 5  ;;  %v1477_v54 = vrot.slane %v1475_v10, 4  ;;  %v10562_v8 = vrot.slane %v10546_v62, 9  ;;  %v10548_v53 = vld [vmem:[%s13246_s10 + $0x88] sm:$0xe] }
  0xc7   : > { %12133 = vmatpush3.bf16.msra.mxu0 %v12979_v22  ;;  %11720 = vmatprep.subr.bf16.mxu1 %v12984_v46  ;;  %v5783_v16 = vrot.slane %v5782_v39, 4  ;;  %v1447_v22 = vshrl.u32 %v9768_v60, 16  ;;  %v1463_v39 = vrot.slane %v1461_v15, 4  ;;  %v1466_v28 = vrot.slane %v1464_v24, 5  ;;  %v10545_v60 = vld [vmem:[%s13246_s10 + $0x70] sm:$0xe] }
  0xc8   : > { %12134 = vmatprep.subr.bf16.mxu0 %v12983_v43  ;;  %v1439_v11 = vor.u32 %v1438_v20, %v1435_v27  ;;  %v6061_v27 = vrot.slane %v13943_v21, 5  ;;  %v6065_v20 = vrot.slane %v13966_v7, 5  ;;  %v14193_v21 = vld [vmem:[%s13246_s10 + $0x34] sm:$0x1] }
  0xc9   : > { %v5788_v31 = vsel %vm13288_vm2, %v5783_v16, %v5787_v14  ;;  %v1449_v47 = vrot.slane %v1447_v22, 4  ;;  %v6054_v14 = vsel %vm13627_vm5, %v10560_v2, %v6053_v59  ;;  %v1467_v45 = vor.u32 %v1466_v28, %v1463_v39  ;;  %v10547_v2 = vld [vmem:[%s13246_s10 + $0x80] sm:$0xe] }
  0xca   : > { %11721 = vmatpush3.bf16.msra.mxu1 %v12984_v46  ;;  %v10534_v46 = vcombine.low %v5774_v3, %v5788_v31  ;;  %v1440_v5 = vrot.slane %v1439_v11, 4  ;;  %v10591_v57 = vcombine.low %v6050_v17, %v6054_v14  ;;  %v1484_v59 = vshll.u32 %v14159_v18, 16  ;;  %v9774_v31 = vld [vmem:[%s13246_s10 + $0x28] sm:$0xf] }
  0xcb   : > { %12135 = vmatpush3.bf16.msra.mxu0 %v12983_v43  ;;  %11738 = vmatprep.subr.bf16.mxu1 %v14124_v61  ;;  %v1453_v43 = vor.u32 %v1452_v58, %v1449_v47  ;;  %v1480_v22 = vrot.slane %v1478_v0, 5  ;;  %v1468_v12 = vrot.slane %v1467_v45, 4  ;;  %v6062_v13 = vsel %vm13627_vm5, %v10562_v8, %v6061_v27  ;;  %v14189_v58 = vld [vmem:[%s13246_s10 + $0x2c] sm:$0x1]  ;;  %v12990_v8 = vld [vmem:[%s15863_s1 + $0x150] sm:$0xff]  }
  0xcc   : > { %12136 = vmatprep.subr.bf16.mxu0 %v12985_v25  ;;  %12119 = vmatmul.mubr.bf16.gmra.mrb[12].mxu0 %v10534_v46  ;;  %v1445_v35 = vsel %vm13288_vm2, %v1440_v5, %v1444_v26  ;;  %v1486_v3 = vrot.slane %v1484_v59, 5  ;;  %v12989_v46 = vld [vmem:[%s15863_s1 + $0x488] sm:$0xff]   ;;  %v1489_v11 = vshrl.u32 %v9774_v31, 16  ;;  %v1492_v52 = vshll.u32 %v9774_v31, 16  ;;  %v9780_v59 = vld [vmem:[%s13246_s10 + $0x40] sm:$0xf] }
  0xcd   : > { %v1454_v37 = vrot.slane %v1453_v43, 4  ;;  %12138 = vmatprep.mubr.bf16.mxu0 %v10591_v57  ;;  %v1481_v26 = vor.u32 %v1480_v22, %v1477_v54  ;;  %v1473_v47 = vsel %vm13288_vm2, %v1468_v12, %v1472_v30  ;;  %v1498_v9 = vshll.u32 %v14189_v58, 16  ;;  %v12988_v17 = vld [vmem:[%s15863_s1 + $0x148] sm:$0xff]   ;;  %v9778_v57 = vld [vmem:[%s13246_s10 + $0x38] sm:$0xf]  ;;  %v12991_v54 = vld [vmem:[%s15863_s1 + $0x490] sm:$0xff]  }
  0xce   : > { %v1512_v24 = vshll.u32 %v14193_v21, 16  ;;  %v1491_v14 = vrot.slane %v1489_v11, 4  ;;  %v1494_v10 = vrot.slane %v1492_v52, 5  ;;  %v14210_v30 = vld [vmem:[%s13246_s10 + $0x3c] sm:$0x1]  ;;  %v10564_v45 = vrot.slane %v10548_v53, 9 }
  0xcf   : > { %12137 = vmatpush3.bf16.msra.mxu0 %v12985_v25  ;;  %v1459_v63 = vsel %vm13288_vm2, %v1454_v37, %v1458_v29  ;;  %v10561_v25 = vrot.slane %v10545_v60, 9  ;;  %v9776_v29 = vld [vmem:[%s13246_s10 + $0x30] sm:$0xf]  ;;  %v1482_v40 = vrot.slane %v1481_v26, 4  ;;  %v10563_v37 = vrot.slane %v10547_v2, 9 }
  0xd0   : > { %12154 = vmatprep.subr.bf16.mxu0 %v14152_v49  ;;  %v9814_v16 = vcombine.low %v1445_v35, %v1459_v63  ;;  %v1503_v43 = vshrl.u32 %v9776_v29, 16  ;;  %v1506_v15 = vshll.u32 %v9776_v29, 16  ;;  %v1500_v28 = vrot.slane %v1498_v9, 5  ;;  %v10550_v11 = vld [vmem:[%s13246_s10 + $0x98] sm:$0xe] }
  0xd1   : > { %v6058_v41 = vsel %vm13627_vm5, %v10561_v25, %v6057_v23  ;;  %v1487_v5 = vsel %vm13288_vm2, %v1482_v40, %v1486_v3  ;;  %v1495_v0 = vor.u32 %v1494_v10, %v1491_v14  ;;  %v1514_v62 = vrot.slane %v1512_v24, 5  ;;  %v14219_v25 = vld [vmem:[%s13246_s10 + $0x44] sm:$0x1] }
  0xd2   : > { %11722 = vmatprep.mubr.bf16.mxu1 %v9814_v16  ;;  %v10592_v7 = vcombine.low %v6058_v41, %v6062_v13  ;;  %v9815_v39 = vcombine.low %v1473_v47, %v1487_v5  ;;  %v1505_v60 = vrot.slane %v1503_v43, 4  ;;  %v1508_v35 = vrot.slane %v1506_v15, 5  ;;  %v10549_v47 = vld [vmem:[%s13246_s10 + $0x90] sm:$0xe]  ;;  %v12993_v13 = vld [vmem:[%s15863_s1 + $0x498] sm:$0xff]  }
  0xd3   : > { %v6066_v63 = vsel %vm13627_vm5, %v10563_v37, %v6065_v20  ;;  %v6069_v16 = vrot.slane %v13980_v36, 5  ;;  %v1517_v22 = vshrl.u32 %v9778_v57, 16  ;;  %v1520_v23 = vshll.u32 %v9778_v57, 16  ;;  %v12992_v5 = vld [vmem:[%s15863_s1 + $0x158] sm:$0xff]   ;;  %v12995_v57 = vld [vmem:[%s15863_s1 + $0x4a0] sm:$0xff]  }
  0xd4   : > { %12139 = vmatmul.mubr.bf16.vlgmr.msra.gmra.mrb[0].mxu0 %v10592_v7  ;;  %11723 = vmatmul.mubr.bf16.vlgmr.msra.gmra.mrb[0].mxu1 %v9815_v39  ;;  %v1496_v12 = vrot.slane %v1495_v0, 4  ;;  %v1526_v3 = vshll.u32 %v14210_v30, 16  ;;  %v1531_v27 = vshrl.u32 %v9780_v59, 16  ;;  %v1534_v20 = vshll.u32 %v9780_v59, 16  ;;  %v9782_v39 = vld [vmem:[%s13246_s10 + $0x58] sm:$0xf] }
  0xd5   : > { %12155 = vmatpush3.bf16.msra.mxu0 %v14152_v49  ;;  %v1509_v49 = vor.u32 %v1508_v35, %v1505_v60  ;;  %11739 = vmatpush3.bf16.msra.mxu1 %v14124_v61  ;;  %v6070_v36 = vsel %vm13627_vm5, %v10564_v45, %v6069_v16  ;;  %v1519_v41 = vrot.slane %v1517_v22, 4  ;;  %v1522_v31 = vrot.slane %v1520_v23, 5  ;;  %v14259_v0 = vld [vmem:[%s13246_s10 + $0x64] sm:$0x1]  ;;  %v10551_v16 = vld [vmem:[%s13246_s10 + $0xb0] sm:$0xe] }
  0xd6   : > { %12156 = vmatprep.subr.bf16.mxu0 %v12989_v46  ;;  %11740 = vmatprep.subr.bf16.mxu1 %v12988_v17  ;;  %v1501_v61 = vsel %vm13288_vm2, %v1496_v12, %v1500_v28  ;;  %v10593_v29 = vcombine.low %v6066_v63, %v6070_v36  ;;  %v1528_v40 = vrot.slane %v1526_v3, 5  ;;  %v1533_v7 = vrot.slane %v1531_v27, 4  ;;  %v14251_v28 = vld [vmem:[%s13246_s10 + $0x5c] sm:$0x1]  ;;  %v10552_v27 = vld [vmem:[%s13246_s10 + $0xb8] sm:$0xe] }
  0xd7   : > { %v1510_v26 = vrot.slane %v1509_v49, 4  ;;  %v1523_v52 = vor.u32 %v1522_v31, %v1519_v41  ;;  %v1536_v2 = vrot.slane %v1534_v20, 5  ;;  %v1540_v9 = vshll.u32 %v14219_v25, 16  ;;  %v9786_v31 = vld [vmem:[%s13246_s10 + $0x68] sm:$0xf] }
  0xd8   : > { %12142 = vmatprep.mubr.bf16.mxu0 %v10593_v29  ;;  %v10565_v15 = vrot.slane %v10549_v47, 9  ;;  %v6073_v24 = vrot.slane %v13996_v55, 5  ;;  %v10566_v53 = vrot.slane %v10550_v11, 9  ;;  %v1548_v45 = vshll.u32 %v9782_v39, 16  ;;  %v12997_v47 = vld [vmem:[%s15863_s1 + $0x4a8] sm:$0xff]  }
  0xd9   : > { %12157 = vmatpush3.bf16.msra.mxu0 %v12989_v46  ;;  %v1515_v46 = vsel %vm13288_vm2, %v1510_v26, %v1514_v62  ;;  %11741 = vmatpush3.bf16.msra.mxu1 %v12988_v17  ;;  %v1524_v14 = vrot.slane %v1523_v52, 4  ;;  %v1537_v10 = vor.u32 %v1536_v2, %v1533_v7  ;;  %v1542_v37 = vrot.slane %v1540_v9, 5  ;;  %v14276_v7 = vld [vmem:[%s13246_s10 + $0x6c] sm:$0x1]  ;;  %v9788_v2 = vld [vmem:[%s13246_s10 + $0x70] sm:$0xf] }
  0xda   : > { %12158 = vmatprep.subr.bf16.mxu0 %v12991_v54  ;;  %v9816_v43 = vcombine.low %v1501_v61, %v1515_v46  ;;  %11742 = vmatprep.subr.bf16.mxu1 %v12990_v8  ;;  %v6077_v17 = vrot.slane %v14004_v6, 5  ;;  %v6074_v55 = vsel %vm13627_vm5, %v10565_v15, %v6073_v24  ;;  %v1545_v62 = vshrl.u32 %v9782_v39, 16  ;;  %v14281_v9 = vld [vmem:[%s13246_s10 + $0x74] sm:$0x1] }
  0xdb   : > { %v1529_v60 = vsel %vm13288_vm2, %v1524_v14, %v1528_v40  ;;  %v1538_v35 = vrot.slane %v1537_v10, 4  ;;  %v1554_v59 = vshll.u32 %v14251_v28, 16  ;;  %v1568_v3 = vshll.u32 %v14259_v0, 16 }
  0xdc   : > { %11726 = vmatprep.mubr.bf16.mxu1 %v9816_v43  ;;  %v6078_v6 = vsel %vm13627_vm5, %v10566_v53, %v6077_v17  ;;  %v1547_v23 = vrot.slane %v1545_v62, 4  ;;  %v1550_v26 = vrot.slane %v1548_v45, 5  ;;  %v10567_v29 = vrot.slane %v10551_v16, 9  ;;  %v12998_v45 = vld [vmem:[%s15863_s1 + $0x170] sm:$0xff]  }
  0xdd   : > { %12159 = vmatpush3.bf16.msra.mxu0 %v12991_v54  ;;  %v9784_v54 = vld [vmem:[%s13246_s10 + $0x60] sm:$0xf]  ;;  %v10594_v63 = vcombine.low %v6074_v55, %v6078_v6  ;;  %11743 = vmatpush3.bf16.msra.mxu1 %v12990_v8  ;;  %v1543_v22 = vsel %vm13288_vm2, %v1538_v35, %v1542_v37  ;;  %v1556_v36 = vrot.slane %v1554_v59, 5  ;;  %v1570_v61 = vrot.slane %v1568_v3, 5  ;;  %v10554_v35 = vld [vmem:[%s13246_s10 + $0xc8] sm:$0xe] }
  0xde   : > { %12160 = vmatprep.subr.bf16.mxu0 %v12993_v13  ;;  %v1559_v49 = vshrl.u32 %v9784_v54, 16  ;;  %11744 = vmatprep.subr.bf16.mxu1 %v12992_v5  ;;  %v1562_v12 = vshll.u32 %v9784_v54, 16  ;;  %v12994_v8 = vld [vmem:[%s15863_s1 + $0x160] sm:$0xff]   ;;  %v9817_v20 = vcombine.low %v1529_v60, %v1543_v22  ;;  %v6081_v40 = vrot.slane %v14030_v48, 5 }
  0xdf   : > { %12143 = vmatmul.mubr.bf16.gmra.mrb[4].mxu0 %v10594_v63  ;;  %v1551_v11 = vor.u32 %v1550_v26, %v1547_v23  ;;  %v10568_v46 = vrot.slane %v10552_v27, 9  ;;  %v6085_v52 = vrot.slane %v14036_v56, 5  ;;  %v1573_v24 = vshrl.u32 %v9786_v31, 16  ;;  %v10553_v56 = vld [vmem:[%s13246_s10 + $0xc0] sm:$0xe] }
  0xe0   : > { %v1561_v41 = vrot.slane %v1559_v49, 4  ;;  %11727 = vmatmul.mubr.bf16.gmra.mrb[4].mxu1 %v9817_v20  ;;  %v6082_v15 = vsel %vm13627_vm5, %v10567_v29, %v6081_v40  ;;  %v1576_v53 = vshll.u32 %v9786_v31, 16  ;;  %v1582_v10 = vshll.u32 %v14276_v7, 16  ;;  %v13001_v20 = vld [vmem:[%s15863_s1 + $0x4b8] sm:$0xff]   ;;  %v14325_v40 = vld [vmem:[%s13246_s10 + $0x84] sm:$0x1] }
  0xe1   : > { %12161 = vmatpush3.bf16.msra.mxu0 %v12993_v13  ;;  %v1564_v13 = vrot.slane %v1562_v12, 5  ;;  %11745 = vmatpush3.bf16.msra.mxu1 %v12992_v5  ;;  %v1552_v48 = vrot.slane %v1551_v11, 4  ;;  %v6086_v14 = vsel %vm13627_vm5, %v10568_v46, %v6085_v52  ;;  %v1587_v37 = vshrl.u32 %v9788_v2, 16  ;;  %v12996_v5 = vld [vmem:[%s15863_s1 + $0x168] sm:$0xff]  }
  0xe2   : > { %12162 = vmatprep.subr.bf16.mxu0 %v12995_v57  ;;  %11746 = vmatprep.subr.bf16.mxu1 %v12994_v8  ;;  %v10595_v55 = vcombine.low %v6082_v15, %v6086_v14  ;;  %v1575_v39 = vrot.slane %v1573_v24, 4  ;;  %v1578_v60 = vrot.slane %v1576_v53, 5  ;;  %v1584_v54 = vrot.slane %v1582_v10, 5  ;;  %v10555_v24 = vld [vmem:[%s13246_s10 + $0xd0] sm:$0xe]  ;;  %v14332_v53 = vld [vmem:[%s15863_s1 + $0x4c0] sm:$0xff]  }
  0xe3   : > { %v1565_v43 = vor.u32 %v1564_v13, %v1561_v41  ;;  %v1557_v6 = vsel %vm13288_vm2, %v1552_v48, %v1556_v36  ;;  %v1589_v62 = vrot.slane %v1587_v37, 4  ;;  %v1590_v63 = vshll.u32 %v9788_v2, 16  ;;  %v14314_v13 = vld [vmem:[%s13246_s10 + $0x7c] sm:$0x1] }
  0xe4   : > { %12146 = vmatprep.mubr.bf16.mxu0 %v10595_v55  ;;  %v1579_v49 = vor.u32 %v1578_v60, %v1575_v39  ;;  %v1596_v16 = vshll.u32 %v14281_v9, 16  ;;  %v10569_v22 = vrot.slane %v10553_v56, 9  ;;  %v6089_v3 = vrot.slane %v14056_v1, 5  ;;  %v10556_v56 = vld [vmem:[%s13246_s10 + $0xd8] sm:$0xe] }
  0xe5   : > { %12163 = vmatpush3.bf16.msra.mxu0 %v12995_v57  ;;  %v1566_v17 = vrot.slane %v1565_v43, 4  ;;  %v12999_v57 = vld [vmem:[%s15863_s1 + $0x4b0] sm:$0xff]   ;;  %11747 = vmatpush3.bf16.msra.mxu1 %v12994_v8  ;;  %v1592_v12 = vrot.slane %v1590_v63, 5  ;;  %v10570_v27 = vrot.slane %v10554_v35, 9  ;;  %v6093_v41 = vrot.slane %v14063_v19, 5 }
  0xe6   : > { %12164 = vmatprep.subr.bf16.mxu0 %v12997_v47  ;;  %11748 = vmatprep.subr.bf16.mxu1 %v12996_v5  ;;  %v1580_v26 = vrot.slane %v1579_v49, 4  ;;  %v1598_v36 = vrot.slane %v1596_v16, 5  ;;  %v6097_v8 = vrot.slane %v14084_v38, 5  ;;  %v6090_v1 = vsel %vm13627_vm5, %v10569_v22, %v6089_v3  ;;  %v9792_v38 = vld [vmem:[%s13246_s10 + $0x80] sm:$0xf] }
  0xe7   : > { %v1571_v59 = vsel %vm13288_vm2, %v1566_v17, %v1570_v61  ;;  %v1593_v31 = vor.u32 %v1592_v12, %v1589_v62  ;;  %v13000_v61 = vld [vmem:[%s15863_s1 + $0x178] sm:$0xff]   ;;  %v6094_v19 = vsel %vm13627_vm5, %v10570_v27, %v6093_v41  ;;  %v1610_v43 = vshll.u32 %v14314_v13, 16  ;;  %v9794_v60 = vld [vmem:[%s13246_s10 + $0x88] sm:$0xf]  ;;  %v14340_v62 = vld [vmem:[%s13246_s10 + $0x8c] sm:$0x1] }
  0xe8   : > { %v9818_v23 = vcombine.low %v1557_v6, %v1571_v59  ;;  %v1585_v29 = vsel %vm13288_vm2, %v1580_v26, %v1584_v54  ;;  %v10596_v2 = vcombine.low %v6090_v1, %v6094_v19  ;;  %v1615_v15 = vshrl.u32 %v9792_v38, 16  ;;  %v9796_v63 = vld [vmem:[%s13246_s10 + $0x90] sm:$0xf]  ;;  %v14347_v22 = vld [vmem:[%s13246_s10 + $0x94] sm:$0x1]  ;;  %v14352_v12 = vld [vmem:[%s15863_s1 + $0x180] sm:$0xff]  }
  0xe9   : > { %12165 = vmatpush3.bf16.msra.mxu0 %v12997_v47  ;;  %v9790_v47 = vld [vmem:[%s13246_s10 + $0x78] sm:$0xf]  ;;  %11749 = vmatpush3.bf16.msra.mxu1 %v12996_v5  ;;  %v1594_v52 = vrot.slane %v1593_v31, 4  ;;  %v1618_v10 = vshll.u32 %v9792_v38, 16  ;;  %v1624_v37 = vshll.u32 %v14325_v40, 16  ;;  %v1612_v17 = vrot.slane %v1610_v43, 5 }
  0xea   : > { %12166 = vmatprep.subr.bf16.mxu0 %v12999_v57  ;;  %11730 = vmatprep.mubr.bf16.mxu1 %v9818_v23  ;;  %v1601_v11 = vshrl.u32 %v9790_v47, 16  ;;  %v1604_v46 = vshll.u32 %v9790_v47, 16  ;;  %v1617_v55 = vrot.slane %v1615_v15, 4  ;;  %v10571_v39 = vrot.slane %v10555_v24, 9  ;;  %v10558_v19 = vld [vmem:[%s13246_s10 + $0xe8] sm:$0xe] }
  0xeb   : > { %11750 = vmatprep.subr.bf16.mxu1 %v12998_v45  ;;  %v1599_v5 = vsel %vm13288_vm2, %v1594_v52, %v1598_v36  ;;  %12147 = vmatmul.mubr.bf16.gmra.mrb[8].mxu0 %v10596_v2  ;;  %v1620_v6 = vrot.slane %v1618_v10, 5  ;;  %v1626_v54 = vrot.slane %v1624_v37, 5  ;;  %v10572_v49 = vrot.slane %v10556_v56, 9 }
  0xec   : > { %v1603_v48 = vrot.slane %v1601_v11, 4  ;;  %v1606_v14 = vrot.slane %v1604_v46, 5  ;;  %v9819_v35 = vcombine.low %v1585_v29, %v1599_v5  ;;  %v6098_v59 = vsel %vm13627_vm5, %v10571_v39, %v6097_v8  ;;  %v10557_v29 = vld [vmem:[%s13246_s10 + $0xe0] sm:$0xe]  ;;  %v9831_v39 = vld [vmem:[%s13246_s10 + $0x10] sm:$0xe] }
  0xed   : > { %12167 = vmatpush3.bf16.msra.mxu0 %v12999_v57  ;;  %11751 = vmatpush3.bf16.msra.mxu1 %v12998_v45  ;;  %v6101_v16 = vrot.slane %v14088_v33, 5  ;;  %v1629_v23 = vshrl.u32 %v9794_v60, 16  ;;  %v1621_v3 = vor.u32 %v1620_v6, %v1617_v55  ;;  %v1632_v27 = vshll.u32 %v9794_v60, 16 }
  0xee   : > { %12168 = vmatprep.subr.bf16.mxu0 %v13001_v20  ;;  %v1607_v57 = vor.u32 %v1606_v14, %v1603_v48  ;;  %11752 = vmatprep.subr.bf16.mxu1 %v13000_v61  ;;  %v1638_v26 = vshll.u32 %v14340_v62, 16  ;;  %v1646_v41 = vshll.u32 %v9796_v63, 16  ;;  %v1652_v52 = vshll.u32 %v14347_v22, 16 }
  0xef   : > { %11731 = vmatmul.mubr.bf16.gmra.mrb[8].mxu1 %v9819_v35  ;;  %v6102_v33 = vsel %vm13627_vm5, %v10572_v49, %v6101_v16  ;;  %v1631_v36 = vrot.slane %v1629_v23, 4  ;;  %v1622_v31 = vrot.slane %v1621_v3, 4  ;;  %v1634_v47 = vrot.slane %v1632_v27, 5  ;;  %v13002_v16 = vld [vmem:[%s13246_s10 + $0xa0] ss:$8 sps:$4 sm:$0xff]  }
  0xf0   : > { %v1608_v45 = vrot.slane %v1607_v57, 4  ;;  %v10597_v1 = vcombine.low %v6098_v59, %v6102_v33  ;;  %v1640_v38 = vrot.slane %v1638_v26, 5  ;;  %v1648_v46 = vrot.slane %v1646_v41, 5  ;;  %v13004_v41 = vld [vmem:[%s13246_s10 + $0xb0] ss:$8 sps:$4 sm:$0xff]  }
  0xf1   : > { %12169 = vmatpush3.bf16.msra.mxu0 %v13001_v20  ;;  %v1643_v20 = vshrl.u32 %v9796_v63, 16  ;;  %11753 = vmatpush3.bf16.msra.mxu1 %v13000_v61  ;;  %v1627_v2 = vsel %vm13288_vm2, %v1622_v31, %v1626_v54  ;;  %v1635_v43 = vor.u32 %v1634_v47, %v1631_v36  ;;  %v10573_v15 = vrot.slane %v10557_v29, 9  ;;  %v9835_v31 = vld [vmem:[%s13246_s10 + $0x30] sm:$0xe] }
  0xf2   : > { %12186 = vmatprep.subr.bf16.mxu0 %v14332_v53  ;;  %v1613_v8 = vsel %vm13288_vm2, %v1608_v45, %v1612_v17  ;;  %11770 = vmatprep.subr.bf16.mxu1 %v14352_v12  ;;  %v6105_v24 = vrot.slane %v14105_v34, 5  ;;  %v1654_v61 = vrot.slane %v1652_v52, 5  ;;  %v10574_v10 = vrot.slane %v10558_v19, 9  ;;  %v9830_v17 = vld [vmem:[%s13246_s10 + $0x8] sm:$0xe] }
  0xf3   : > { %v1645_v11 = vrot.slane %v1643_v20, 4  ;;  %12150 = vmatprep.mubr.bf16.mxu0 %v10597_v1  ;;  %v9820_v48 = vcombine.low %v1613_v8, %v1627_v2  ;;  %v1636_v37 = vrot.slane %v1635_v43, 4  ;;  %v6109_v5 = vrot.slane %v14109_v50, 5  ;;  %v9834_v8 = vld [vmem:[%s13246_s10 + $0x28] sm:$0xe] }
  0xf4   : > { %v6106_v56 = vsel %vm13627_vm5, %v10573_v15, %v6105_v24  ;;  %v9846_v60 = vrot.slane %v9830_v17, 9  ;;  %v1916_v34 = vrot.slane %v14133_v44, 5  ;;  %v1920_v35 = vrot.slane %v14137_v51, 5  ;;  %v9832_v44 = vld [vmem:[%s13246_s10 + $0x18] sm:$0xe]  ;;  %v13006_v15 = vld [vmem:[%s15863_s1 + $0x188] sm:$0xff]  }
  0xf5   : > { %v1649_v14 = vor.u32 %v1648_v46, %v1645_v11  ;;  %11734 = vmatprep.mubr.bf16.mxu1 %v9820_v48  ;;  %v1641_v57 = vsel %vm13288_vm2, %v1636_v37, %v1640_v38  ;;  %v6110_v6 = vsel %vm13627_vm5, %v10574_v10, %v6109_v5  ;;  %v9847_v54 = vrot.slane %v9831_v39, 9  ;;  %v9833_v51 = vld [vmem:[%s13246_s10 + $0x20] sm:$0xe]  ;;  %v9836_v19 = vld [vmem:[%s13246_s10 + $0x38] sm:$0xe] }
  0xf6   : > { %v1924_v50 = vrot.slane %v14155_v32, 5  ;;  %v10598_v59 = vcombine.low %v6106_v56, %v6110_v6  ;;  %v1917_v49 = vsel %vm13627_vm5, %v9846_v60, %v1916_v34  ;;  %v9848_v3 = vrot.slane %v9832_v44, 9  ;;  %v13008_v52 = vld [vmem:[%s13246_s10 + $0xc0] ss:$8 sps:$4 sm:$0xff]   ;;  %v9838_v37 = vld [vmem:[%s13246_s10 + $0x58] sm:$0xe] }
  0xf7   : > { %v1650_v55 = vrot.slane %v1649_v14, 4  ;;  %v1921_v45 = vsel %vm13627_vm5, %v9847_v54, %v1920_v35  ;;  %v9849_v27 = vrot.slane %v9833_v51, 9  ;;  %v1928_v26 = vrot.slane %v14159_v18, 5  ;;  %v9837_v2 = vld [vmem:[%s13246_s10 + $0x40] sm:$0xe] }
  0xf8   : > { %12151 = vmatmul.mubr.bf16.gmra.mrb[12].mxu0 %v10598_v59  ;;  %v9878_v32 = vcombine.low %v1917_v49, %v1921_v45  ;;  %v1932_v33 = vrot.slane %v14189_v58, 5  ;;  %v1925_v36 = vsel %vm13627_vm5, %v9848_v3, %v1924_v50  ;;  %v9850_v1 = vrot.slane %v9834_v8, 9  ;;  %v13007_v58 = vld [vmem:[%s15863_s1 + $0x4c8] sm:$0xff]   ;;  %v13010_v5 = vld [vmem:[%s13246_s10 + $0xd0] ss:$8 sps:$4 sm:$0xff]  }
  0xf9   : > { %v1655_v63 = vsel %vm13288_vm2, %v1650_v55, %v1654_v61  ;;  %12170 = vmatprep.mubr.bf16.mxu0 %v13002_v16  ;;  %v1929_v20 = vsel %vm13627_vm5, %v9849_v27, %v1928_v26  ;;  %v9851_v47 = vrot.slane %v9835_v31, 9  ;;  %v1936_v18 = vrot.slane %v14193_v21, 5  ;;  %v9840_v60 = vld [vmem:[%s13246_s10 + $0x68] sm:$0xe]  ;;  %v9841_v34 = vld [vmem:[%s13246_s10 + $0x70] sm:$0xe] }
  0xfa   : > { %v9821_v23 = vcombine.low %v1641_v57, %v1655_v63  ;;  %v9879_v29 = vcombine.low %v1925_v36, %v1929_v20  ;;  %v1940_v38 = vrot.slane %v14210_v30, 5  ;;  %v1933_v11 = vsel %vm13627_vm5, %v9850_v1, %v1932_v33  ;;  %v13011_v30 = vld [vmem:[%s15863_s1 + $0x4d0] sm:$0xff]   ;;  %v13012_v63 = vld [vmem:[%s15863_s1 + $0x198] sm:$0xff]   ;;  %v13015_v16 = vld [vmem:[%s15863_s1 + $0x1a0] sm:$0xff]  }
  0xfb   : > { %v1937_v46 = vsel %vm13627_vm5, %v9851_v47, %v1936_v18  ;;  %v9852_v43 = vrot.slane %v9836_v19, 9  ;;  %v1944_v21 = vrot.slane %v14219_v25, 5  ;;  %v9853_v48 = vrot.slane %v9837_v2, 9  ;;  %v13009_v25 = vld [vmem:[%s15863_s1 + $0x190] sm:$0xff]   ;;  %v9842_v44 = vld [vmem:[%s13246_s10 + $0x78] sm:$0xe] }
  0xfc   : > { %11735 = vmatmul.mubr.bf16.gmra.mrb[12].mxu1 %v9821_v23  ;;  %v9880_v24 = vcombine.low %v1933_v11, %v1937_v46  ;;  %v1948_v14 = vrot.slane %v14251_v28, 5  ;;  %v9839_v28 = vld [vmem:[%s13246_s10 + $0x60] sm:$0xe]  ;;  %v1952_v56 = vrot.slane %v14259_v0, 5  ;;  %v1956_v35 = vrot.slane %v14276_v7, 5  ;;  %v13019_v26 = vld [vmem:[%s15863_s1 + $0x4e8] sm:$0xff]  }
  0xfd   : > { %11754 = vmatprep.mubr.bf16.mxu1 %v9878_v32  ;;  %v1941_v61 = vsel %vm13627_vm5, %v9852_v43, %v1940_v38  ;;  %v1945_v10 = vsel %vm13627_vm5, %v9853_v48, %v1944_v21  ;;  %v9855_v17 = vrot.slane %v9839_v28, 9  ;;  %v1960_v57 = vrot.slane %v14281_v9, 5  ;;  %v13014_v6 = vld [vmem:[%s13246_s10 + $0xf0] ss:$8 sps:$4 sm:$0xff]   ;;  %v9843_v51 = vld [vmem:[%s13246_s10 + $0x80] sm:$0xe] }
  0xfe   : > { %v9881_v55 = vcombine.low %v1941_v61, %v1945_v10  ;;  %v9856_v54 = vrot.slane %v9840_v60, 9  ;;  %v9857_v50 = vrot.slane %v9841_v34, 9  ;;  %v1964_v7 = vrot.slane %v14314_v13, 5  ;;  %v13017_v13 = vld [vmem:[%s15863_s1 + $0x4e0] sm:$0xff]   ;;  %v9844_v33 = vld [vmem:[%s13246_s10 + $0x88] sm:$0xe] }
  0xff   : > { %v1953_v0 = vsel %vm13627_vm5, %v9855_v17, %v1952_v56  ;;  %v1968_v23 = vrot.slane %v14325_v40, 5  ;;  %v9858_v45 = vrot.slane %v9842_v44, 9  ;;  %v9859_v3 = vrot.slane %v9843_v51, 9  ;;  %v13016_v32 = vld [vmem:[%s13246_s10 + $0x100] ss:$8 sps:$4 sm:$0xff]   ;;  %v13025_v61 = vld [vmem:[%s15863_s1 + $0x4f8] sm:$0xff]  }
 0x100   : > { %12171 = vmatmul.mubr.bf16.vlgmr.msra.gmra.mrb[0].mxu0 %v13004_v41  ;;  %v1957_v9 = vsel %vm13627_vm5, %v9856_v54, %v1956_v35  ;;  %v1961_v49 = vsel %vm13627_vm5, %v9857_v50, %v1960_v57  ;;  %v9845_v36 = vld [vmem:[%s13246_s10 + $0x90] sm:$0xe]  ;;  %v13018_v20 = vld [vmem:[%s15863_s1 + $0x1a8] sm:$0xff]   ;;  %v9860_v8 = vrot.slane %v9844_v33, 9  ;;  %v1972_v31 = vrot.slane %v14340_v62, 5  ;;  %v13029_v44 = vld [vmem:[%s15863_s1 + $0x500] sm:$0xff]  }
 0x101   : > { %12187 = vmatpush3.bf16.msra.mxu0 %v14332_v53  ;;  %v9854_v53 = vrot.slane %v9838_v37, 9  ;;  %12174 = vmatprep.mubr.bf16.mxu0 %v13008_v52  ;;  %v9883_v27 = vcombine.low %v1957_v9, %v1961_v49  ;;  %v1965_v40 = vsel %vm13627_vm5, %v9858_v45, %v1964_v7  ;;  %v1969_v41 = vsel %vm13627_vm5, %v9859_v3, %v1968_v23  ;;  %v13021_v62 = vld [vmem:[%s15863_s1 + $0x1b0] sm:$0xff]   ;;  %v13022_v38 = vld [vmem:[%s13246_s10 + $0x120] ss:$8 sps:$4 sm:$0xff]   ;;  %v14488_v46 = vld [vmem:[%s13246_s10 + $0xa4] sm:$0x1] }
 0x102   : > { %12188 = vmatprep.subr.bf16.mxu0 %v13007_v58  ;;  %v9861_v1 = vrot.slane %v9845_v36, 9  ;;  %v1976_v47 = vrot.slane %v14347_v22, 5  ;;  %v9884_v18 = vcombine.low %v1965_v40, %v1969_v41  ;;  %v1973_v22 = vsel %vm13627_vm5, %v9860_v8, %v1972_v31  ;;  %v10657_v11 = vld [vmem:[%s13246_s10 + $0xa0] sm:$0xf]  ;;  %v10659_v52 = vld [vmem:[%s13246_s10 + $0xa8] sm:$0xf] }
 0x103   : > { %v1949_v39 = vsel %vm13627_vm5, %v9854_v53, %v1948_v14  ;;  %v14492_v2 = vld [vmem:[%s13246_s10 + $0xac] sm:$0x1]  ;;  %v6600_v43 = vshrl.u32 %v10657_v11, 16  ;;  %v6603_v21 = vshll.u32 %v10657_v11, 16  ;;  %v6617_v48 = vshll.u32 %v10659_v52, 16  ;;  %v13028_v49 = vld [vmem:[%s15863_s1 + $0x1c0] sm:$0xff]  }
 0x104   : > { %11755 = vmatmul.mubr.bf16.vlgmr.msra.gmra.mrb[0].mxu1 %v9879_v29  ;;  %v9882_v59 = vcombine.low %v1949_v39, %v1953_v0  ;;  %v13020_v29 = vld [vmem:[%s13246_s10 + $0x110] ss:$8 sps:$4 sm:$0xff]   ;;  %v1977_v19 = vsel %vm13627_vm5, %v9861_v1, %v1976_v47  ;;  %v14505_v60 = vld [vmem:[%s13246_s10 + $0xb4] sm:$0x1]  ;;  %v14509_v35 = vld [vmem:[%s13246_s10 + $0xbc] sm:$0x1] }
 0x105   : > { %11771 = vmatpush3.bf16.msra.mxu1 %v14352_v12  ;;  %11758 = vmatprep.mubr.bf16.mxu1 %v9880_v24  ;;  %v13013_v12 = vld [vmem:[%s15863_s1 + $0x4d8] sm:$0xff]   ;;  %v6614_v24 = vshrl.u32 %v10659_v52, 16  ;;  %v9885_v14 = vcombine.low %v1973_v22, %v1977_v19  ;;  %v6602_v10 = vrot.slane %v6600_v43, 4  ;;  %v6605_v37 = vrot.slane %v6603_v21, 5  ;;  %v13027_v23 = vld [vmem:[%s13246_s10 + $0x20] ss:$8 sps:$4 sm:$0xff]  }
 0x106   : > { %11772 = vmatprep.subr.bf16.mxu1 %v13006_v15  ;;  %12189 = vmatpush3.bf16.msra.mxu0 %v13007_v58  ;;  %v13023_v58 = vld [vmem:[%s15863_s1 + $0x4f0] sm:$0xff]   ;;  %v6619_v56 = vrot.slane %v6617_v48, 5  ;;  %v10663_v34 = vld [vmem:[%s13246_s10 + $0xb8] sm:$0xf]  ;;  %v6637_v54 = vshll.u32 %v14505_v60, 16  ;;  %v6651_v7 = vshll.u32 %v14509_v35, 16 }
 0x107   : > { %12190 = vmatprep.subr.bf16.mxu0 %v13011_v30  ;;  %v13026_v28 = vld [vmem:[%s13246_s10 + $0x10] ss:$8 sps:$4 sm:$0xff]   ;;  %v6616_v53 = vrot.slane %v6614_v24, 4  ;;  %v13030_v41 = vld [vmem:[%s15863_s1 + $0x1c8] sm:$0xff]   ;;  %v10665_v8 = vld [vmem:[%s13246_s10 + $0xc0] sm:$0xf] }
 0x108   : > { %12175 = vmatmul.mubr.bf16.gmra.mrb[4].mxu0 %v13010_v5  ;;  %v6606_v5 = vor.u32 %v6605_v37, %v6602_v10  ;;  %v6653_v33 = vrot.slane %v6651_v7, 5  ;;  %v14530_v31 = vld [vmem:[%s13246_s10 + $0xc4] sm:$0x1]  ;;  %v10667_v47 = vld [vmem:[%s13246_s10 + $0xc8] sm:$0xf] }
 0x109   : > { %11773 = vmatpush3.bf16.msra.mxu1 %v13006_v15  ;;  %12178 = vmatprep.mubr.bf16.mxu0 %v13014_v6  ;;  %v6609_v15 = vshll.u32 %v14488_v46, 16  ;;  %v6620_v39 = vor.u32 %v6619_v56, %v6616_v53  ;;  %v6665_v22 = vshll.u32 %v14530_v31, 16  ;;  %v6670_v19 = vshrl.u32 %v10667_v47, 16  ;;  %v13031_v11 = vld [vmem:[%s15863_s1 + $0x508] sm:$0xff]   ;;  %v14551_v53 = vld [vmem:[%s13246_s10 + $0xd4] sm:$0x1] }
 0x10a   : > { %11774 = vmatprep.subr.bf16.mxu1 %v13009_v25  ;;  %12191 = vmatpush3.bf16.msra.mxu0 %v13011_v30  ;;  %v6623_v30 = vshll.u32 %v14492_v2, 16  ;;  %v6607_v57 = vrot.slane %v6606_v5, 4  ;;  %v6673_v43 = vshll.u32 %v10667_v47, 16  ;;  %v10671_v56 = vld [vmem:[%s13246_s10 + $0xd8] sm:$0xf]  ;;  %v13035_v5 = vld [vmem:[%s15863_s1 + $0x510] sm:$0xff]  }
 0x10b   : > { %12192 = vmatprep.subr.bf16.mxu0 %v13013_v12  ;;  %v6621_v50 = vrot.slane %v6620_v39, 4  ;;  %v6667_v48 = vrot.slane %v6665_v22, 5 }
 0x10c   : > { %11759 = vmatmul.mubr.bf16.gmra.mrb[4].mxu1 %v9881_v55  ;;  %v6625_v17 = vrot.slane %v6623_v30, 5  ;;  %v10661_v55 = vld [vmem:[%s13246_s10 + $0xb0] sm:$0xf]  ;;  %v6672_v30 = vrot.slane %v6670_v19, 4 }
 0x10d   : > { %11775 = vmatpush3.bf16.msra.mxu1 %v13009_v25  ;;  %11762 = vmatprep.mubr.bf16.mxu1 %v9882_v59  ;;  %v13024_v25 = vld [vmem:[%s15863_s1 + $0x1b8] sm:$0xff]   ;;  %v6628_v0 = vshrl.u32 %v10661_v55, 16  ;;  %v6631_v6 = vshll.u32 %v10661_v55, 16  ;;  %v6645_v59 = vshll.u32 %v10663_v34, 16 }
 0x10e   : > { %11776 = vmatprep.subr.bf16.mxu1 %v13012_v63  ;;  %12193 = vmatpush3.bf16.msra.mxu0 %v13013_v12  ;;  %v6611_v12 = vrot.slane %v6609_v15, 5  ;;  %v6626_v51 = vsel %vm13288_vm2, %v6621_v50, %v6625_v17  ;;  %v14558_v17 = vld [vmem:[%s13246_s10 + $0xdc] sm:$0x1] }
 0x10f   : > { %12194 = vmatprep.subr.bf16.mxu0 %v13017_v13  ;;  %v6647_v3 = vrot.slane %v6645_v59, 5  ;;  %v6707_v50 = vshll.u32 %v14558_v17, 16 }
 0x110   : > { %12179 = vmatmul.mubr.bf16.gmra.mrb[8].mxu0 %v13016_v32  ;;  %v6612_v9 = vsel %vm13288_vm2, %v6607_v57, %v6611_v12  ;;  %v13036_v57 = vld [vmem:[%s15863_s1 + $0x1d8] sm:$0xff]  }
 0x111   : > { %11777 = vmatpush3.bf16.msra.mxu1 %v13012_v63  ;;  %12182 = vmatprep.mubr.bf16.mxu0 %v13020_v29  ;;  %v6642_v63 = vshrl.u32 %v10663_v34, 16  ;;  %v6656_v29 = vshrl.u32 %v10665_v8, 16  ;;  %v6693_v34 = vshll.u32 %v14551_v53, 16 }
 0x112   : > { %11778 = vmatprep.subr.bf16.mxu1 %v13015_v16  ;;  %12195 = vmatpush3.bf16.msra.mxu0 %v13017_v13  ;;  %v6633_v13 = vrot.slane %v6631_v6, 5  ;;  %v6698_v6 = vshrl.u32 %v10671_v56, 16 }
 0x113   : > { %12196 = vmatprep.subr.bf16.mxu0 %v13019_v26  ;;  %v6644_v45 = vrot.slane %v6642_v63, 4  ;;  %v6658_v52 = vrot.slane %v6656_v29, 4 }
 0x114   : > { %11763 = vmatmul.mubr.bf16.gmra.mrb[8].mxu1 %v9883_v27  ;;  %v10705_v27 = vcombine.low %v6612_v9, %v6626_v51  ;;  %v6695_v9 = vrot.slane %v6693_v34, 5  ;;  %v13037_v51 = vld [vmem:[%s15863_s1 + $0x518] sm:$0xff]  }
 0x115   : > { %11779 = vmatpush3.bf16.msra.mxu1 %v13015_v16  ;;  %11766 = vmatprep.mubr.bf16.mxu1 %v9884_v18  ;;  %v6630_v16 = vrot.slane %v6628_v0, 4  ;;  %v6648_v36 = vor.u32 %v6647_v3, %v6644_v45  ;;  %v14534_v18 = vld [vmem:[%s13246_s10 + $0xcc] sm:$0x1] }
 0x116   : > { %11780 = vmatprep.subr.bf16.mxu1 %v13018_v20  ;;  %12197 = vmatpush3.bf16.msra.mxu0 %v13019_v26  ;;  %v6639_v26 = vrot.slane %v6637_v54, 5  ;;  %v6679_v21 = vshll.u32 %v14534_v18, 16  ;;  %v6701_v54 = vshll.u32 %v10671_v56, 16  ;;  %v10679_v56 = vld [vmem:[%s13246_s10 + $0x108] sm:$0xf] }
 0x117   : > { %12198 = vmatprep.subr.bf16.mxu0 %v13023_v58  ;;  %v6634_v32 = vor.u32 %v6633_v13, %v6630_v16  ;;  %v6649_v1 = vrot.slane %v6648_v36, 4  ;;  %v6700_v16 = vrot.slane %v6698_v6, 4  ;;  %v10673_v36 = vld [vmem:[%s13246_s10 + $0xf0] sm:$0xf] }
 0x118   : > { %12183 = vmatmul.mubr.bf16.gmra.mrb[12].mxu0 %v13022_v38  ;;  %v6681_v10 = vrot.slane %v6679_v21, 5  ;;  %v6703_v13 = vrot.slane %v6701_v54, 5  ;;  %v6712_v47 = vshrl.u32 %v10673_v36, 16  ;;  %v6754_v54 = vshrl.u32 %v10679_v56, 16 }
 0x119   : > { %11781 = vmatpush3.bf16.msra.mxu1 %v13018_v20  ;;  %v13032_v20 = vld [vmem:[%s13246_s10 + $0x30] ss:$8 sps:$4 sm:$0xff]   ;;  %12202 = vmatprep.mubr.bf16.mxu0 %v10705_v27  ;;  %v6635_v40 = vrot.slane %v6634_v32, 4  ;;  %v6654_v38 = vsel %vm13288_vm2, %v6649_v1, %v6653_v33  ;;  %v14583_v1 = vld [vmem:[%s13246_s10 + $0xfc] sm:$0x1] }
 0x11a   : > { %11782 = vmatprep.subr.bf16.mxu1 %v13021_v62  ;;  %12199 = vmatpush3.bf16.msra.mxu0 %v13023_v58  ;;  %v6704_v32 = vor.u32 %v6703_v13, %v6700_v16  ;;  %v6756_v13 = vrot.slane %v6754_v54, 4 }
 0x11b   : > { %12200 = vmatprep.subr.bf16.mxu0 %v13025_v61  ;;  %v6640_v58 = vsel %vm13288_vm2, %v6635_v40, %v6639_v26  ;;  %v13038_v26 = vld [vmem:[%s13246_s10 + $0x60] ss:$8 sps:$4 sm:$0xff]   ;;  %v7083_v40 = vrot.slane %v14488_v46, 5 }
 0x11c   : > { %11767 = vmatmul.mubr.bf16.gmra.mrb[12].mxu1 %v9885_v14  ;;  %v10706_v15 = vcombine.low %v6640_v58, %v6654_v38  ;;  %v13033_v14 = vld [vmem:[%s13246_s10 + $0x40] ss:$8 sps:$4 sm:$0xff]   ;;  %v6715_v58 = vshll.u32 %v10673_v36, 16  ;;  %v6714_v38 = vrot.slane %v6712_v47, 4  ;;  %v7087_v47 = vrot.slane %v14492_v2, 5 }
 0x11d   : > { %11783 = vmatpush3.bf16.msra.mxu1 %v13021_v62  ;;  %11786 = vmatprep.mubr.bf16.mxu1 %v13026_v28  ;;  %v6659_v62 = vshll.u32 %v10665_v8, 16  ;;  %v10669_v28 = vld [vmem:[%s13246_s10 + $0xd0] sm:$0xf]  ;;  %v10675_v8 = vld [vmem:[%s13246_s10 + $0xf8] sm:$0xf] }
 0x11e   : > { %11784 = vmatprep.subr.bf16.mxu1 %v13024_v25  ;;  %12201 = vmatpush3.bf16.msra.mxu0 %v13025_v61  ;;  %v6675_v61 = vrot.slane %v6673_v43, 5  ;;  %v6684_v55 = vshrl.u32 %v10669_v28, 16  ;;  %v6687_v39 = vshll.u32 %v10669_v28, 16  ;;  %v6726_v22 = vshrl.u32 %v10675_v8, 16  ;;  %v13041_v43 = vld [vmem:[%s15863_s1 + $0x520] sm:$0xff]  }
 0x11f   : > { %12218 = vmatprep.subr.bf16.mxu0 %v13029_v44  ;;  %v6661_v24 = vrot.slane %v6659_v62, 5  ;;  %v14600_v28 = vld [vmem:[%s13246_s10 + $0x104] sm:$0x1] }
 0x120   : > { %v6676_v12 = vor.u32 %v6675_v61, %v6672_v30  ;;  %v6686_v59 = vrot.slane %v6684_v55, 4  ;;  %v6689_v7 = vrot.slane %v6687_v39, 5  ;;  %v13039_v30 = vld [vmem:[%s13246_s10 + $0x70] ss:$8 sps:$4 sm:$0xff]   ;;  %v14607_v55 = vld [vmem:[%s13246_s10 + $0x10c] sm:$0x1] }
 0x121   : > { %11785 = vmatpush3.bf16.msra.mxu1 %v13024_v25  ;;  %v13034_v25 = vld [vmem:[%s15863_s1 + $0x1d0] sm:$0xff]   ;;  %12203 = vmatmul.mubr.bf16.vlgmr.msra.gmra.mrb[0].mxu0 %v10706_v15  ;;  %v6662_v37 = vor.u32 %v6661_v24, %v6658_v52  ;;  %v6735_v52 = vshll.u32 %v14583_v1, 16  ;;  %v6717_v15 = vrot.slane %v6715_v58, 5  ;;  %v10683_v58 = vld [vmem:[%s13246_s10 + $0x118] sm:$0xf] }
 0x122   : > { %11802 = vmatprep.subr.bf16.mxu1 %v13028_v49  ;;  %12219 = vmatpush3.bf16.msra.mxu0 %v13029_v44  ;;  %v6677_v63 = vrot.slane %v6676_v12, 4  ;;  %v6709_v44 = vrot.slane %v6707_v50, 5  ;;  %v6690_v3 = vor.u32 %v6689_v7, %v6686_v59  ;;  %v6757_v50 = vshll.u32 %v10679_v56, 16 }
 0x123   : > { %12220 = vmatprep.subr.bf16.mxu0 %v13031_v11  ;;  %v6663_v0 = vrot.slane %v6662_v37, 4  ;;  %v6737_v61 = vrot.slane %v6735_v52, 5  ;;  %v10677_v37 = vld [vmem:[%s13246_s10 + $0x100] sm:$0xf]  ;;  %v6782_v52 = vshrl.u32 %v10683_v58, 16 }
 0x124   : > { %11787 = vmatmul.mubr.bf16.vlgmr.msra.gmra.mrb[0].mxu1 %v13027_v23  ;;  %v13040_v23 = vld [vmem:[%s15863_s1 + $0x1e0] sm:$0xff]   ;;  %v6682_v45 = vsel %vm13288_vm2, %v6677_v63, %v6681_v10  ;;  %v6691_v33 = vrot.slane %v6690_v3, 4  ;;  %v6718_v10 = vor.u32 %v6717_v15, %v6714_v38  ;;  %v6740_v39 = vshrl.u32 %v10677_v37, 16 }
 0x125   : > { %11803 = vmatpush3.bf16.msra.mxu1 %v13028_v49  ;;  %11790 = vmatprep.mubr.bf16.mxu1 %v13032_v20  ;;  %v6668_v49 = vsel %vm13288_vm2, %v6663_v0, %v6667_v48  ;;  %v14578_v20 = vld [vmem:[%s13246_s10 + $0xf4] sm:$0x1]  ;;  %v6728_v48 = vrot.slane %v6726_v22, 4  ;;  %v6743_v34 = vshll.u32 %v10677_v37, 16  ;;  %v6763_v63 = vshll.u32 %v14607_v55, 16  ;;  %v14647_v37 = vld [vmem:[%s15863_s1 + $0x200] sm:$0xff]  }
 0x126   : > { %11804 = vmatprep.subr.bf16.mxu1 %v13030_v41  ;;  %12221 = vmatpush3.bf16.msra.mxu0 %v13031_v11  ;;  %v10707_v27 = vcombine.low %v6668_v49, %v6682_v45  ;;  %v6696_v29 = vsel %vm13288_vm2, %v6691_v33, %v6695_v9  ;;  %v6721_v62 = vshll.u32 %v14578_v20, 16  ;;  %v6729_v11 = vshll.u32 %v10675_v8, 16  ;;  %v13046_v0 = vld [vmem:[%s15863_s1 + $0x1f0] sm:$0xff]   ;;  %v13048_v45 = vld [vmem:[%s15863_s1 + $0x1f8] sm:$0xff]   ;;  %v13044_v33 = vld [vmem:[%s13246_s10 + $0x80] ss:$8 sps:$4 sm:$0xff]  }
 0x127   : > { %12222 = vmatprep.subr.bf16.mxu0 %v13035_v5  ;;  %v6719_v6 = vrot.slane %v6718_v10, 4  ;;  %v6742_v7 = vrot.slane %v6740_v39, 4  ;;  %v6745_v9 = vrot.slane %v6743_v34, 5  ;;  %v14627_v8 = vld [vmem:[%s13246_s10 + $0x114] sm:$0x1]  ;;  %v6785_v15 = vshll.u32 %v10683_v58, 16 }
 0x128   : > { %12206 = vmatprep.mubr.bf16.mxu0 %v10707_v27  ;;  %v6723_v24 = vrot.slane %v6721_v62, 5  ;;  %v14632_v62 = vld [vmem:[%s13246_s10 + $0x11c] sm:$0x1]  ;;  %v13045_v10 = vld [vmem:[%s13246_s10 + $0x90] ss:$8 sps:$4 sm:$0xff]  }
 0x129   : > { %11805 = vmatpush3.bf16.msra.mxu1 %v13030_v41  ;;  %v6705_v41 = vrot.slane %v6704_v32, 4  ;;  %v6746_v27 = vor.u32 %v6745_v9, %v6742_v7  ;;  %v6787_v56 = vrot.slane %v6785_v15, 5  ;;  %v10685_v39 = vld [vmem:[%s13246_s10 + $0x120] sm:$0xf]  ;;  %v14651_v34 = vld [vmem:[%s13246_s10 + $0x124] sm:$0x1] }
 0x12a   : > { %11806 = vmatprep.subr.bf16.mxu1 %v13034_v25  ;;  %12223 = vmatpush3.bf16.msra.mxu0 %v13035_v5  ;;  %v13043_v5 = vld [vmem:[%s15863_s1 + $0x528] sm:$0xff]   ;;  %v6724_v16 = vsel %vm13288_vm2, %v6719_v6, %v6723_v24  ;;  %v6791_v24 = vshll.u32 %v14632_v62, 16  ;;  %v6796_v54 = vshrl.u32 %v10685_v39, 16  ;;  %v14671_v58 = vld [vmem:[%s13246_s10 + $0x14] sm:$0x1] }
 0x12b   : > { %v6710_v19 = vsel %vm13288_vm2, %v6705_v41, %v6709_v44  ;;  %12224 = vmatprep.subr.bf16.mxu0 %v13037_v51  ;;  %v6759_v44 = vrot.slane %v6757_v50, 5  ;;  %v6747_v36 = vrot.slane %v6746_v27, 4  ;;  %v10681_v41 = vld [vmem:[%s13246_s10 + $0x110] sm:$0xf]  ;;  %v14655_v6 = vld [vmem:[%s13246_s10 + $0x12c] sm:$0x1] }
 0x12c   : > { %11791 = vmatmul.mubr.bf16.gmra.mrb[4].mxu1 %v13033_v14  ;;  %v10708_v21 = vcombine.low %v6696_v29, %v6710_v19  ;;  %v13042_v14 = vld [vmem:[%s15863_s1 + $0x1e8] sm:$0xff]   ;;  %v6768_v22 = vshrl.u32 %v10681_v41, 16  ;;  %v6771_v38 = vshll.u32 %v10681_v41, 16  ;;  %v6799_v50 = vshll.u32 %v10685_v39, 16 }
 0x12d   : > { %11807 = vmatpush3.bf16.msra.mxu1 %v13034_v25  ;;  %11794 = vmatprep.mubr.bf16.mxu1 %v13038_v26  ;;  %v6731_v25 = vrot.slane %v6729_v11, 5  ;;  %v6760_v26 = vor.u32 %v6759_v44, %v6756_v13  ;;  %v6777_v11 = vshll.u32 %v14627_v8, 16  ;;  %v6798_v44 = vrot.slane %v6796_v54, 4 }
 0x12e   : > { %11808 = vmatprep.subr.bf16.mxu1 %v13036_v57  ;;  %12207 = vmatmul.mubr.bf16.gmra.mrb[4].mxu0 %v10708_v21  ;;  %v6770_v21 = vrot.slane %v6768_v22, 4  ;;  %v9945_v22 = vld [vmem:[%s13246_s10 + $0x18] sm:$0xf] }
 0x12f   : > { %12225 = vmatpush3.bf16.msra.mxu0 %v13037_v51  ;;  %v6732_v12 = vor.u32 %v6731_v25, %v6728_v48  ;;  %v6765_v51 = vrot.slane %v6763_v63, 5  ;;  %v6761_v29 = vrot.slane %v6760_v26, 4  ;;  %v13049_v48 = vld [vmem:[%s15863_s1 + $0x538] sm:$0xff]   ;;  %v6779_v25 = vrot.slane %v6777_v11, 5 }
 0x130   : > { %12226 = vmatprep.subr.bf16.mxu0 %v13041_v43  ;;  %v6805_v63 = vshll.u32 %v14651_v34, 16  ;;  %v2480_v15 = vshrl.u32 %v9945_v22, 16 }
 0x131   : > { %11809 = vmatpush3.bf16.msra.mxu1 %v13036_v57  ;;  %v6749_v57 = vshll.u32 %v14600_v28, 16  ;;  %v6733_v59 = vrot.slane %v6732_v12, 4 }
 0x132   : > { %11810 = vmatprep.subr.bf16.mxu1 %v13040_v23 }
 0x133   : > { %v6751_v49 = vrot.slane %v6749_v57, 5  ;;  %v6738_v3 = vsel %vm13288_vm2, %v6733_v59, %v6737_v61  ;;  %12227 = vmatpush3.bf16.msra.mxu0 %v13041_v43  ;;  %v6766_v43 = vsel %vm13288_vm2, %v6761_v29, %v6765_v51  ;;  %v6784_v61 = vrot.slane %v6782_v52, 4  ;;  %v10687_v57 = vld [vmem:[%s13246_s10 + $0x128] sm:$0xf]  ;;  %v14661_v59 = vld [vmem:[%s15863_s1 + $0x540] sm:$0xff]  }
 0x134   : > { %11795 = vmatmul.mubr.bf16.gmra.mrb[8].mxu1 %v13039_v30  ;;  %v10709_v32 = vcombine.low %v6724_v16, %v6738_v3  ;;  %12228 = vmatprep.subr.bf16.mxu0 %v13043_v5  ;;  %v6810_v9 = vshrl.u32 %v10687_v57, 16  ;;  %v6819_v16 = vshll.u32 %v14655_v6, 16  ;;  %v6801_v51 = vrot.slane %v6799_v50, 5  ;;  %v9943_v29 = vld [vmem:[%s13246_s10 + $0x10] sm:$0xf] }
 0x135   : > { %11811 = vmatpush3.bf16.msra.mxu1 %v13040_v23  ;;  %v13047_v23 = vld [vmem:[%s15863_s1 + $0x530] sm:$0xff]   ;;  %11798 = vmatprep.mubr.bf16.mxu1 %v13044_v33  ;;  %v6752_v19 = vsel %vm13288_vm2, %v6747_v36, %v6751_v49  ;;  %v6813_v49 = vshll.u32 %v10687_v57, 16  ;;  %v2466_v11 = vshrl.u32 %v9943_v29, 16  ;;  %v2469_v52 = vshll.u32 %v9943_v29, 16 }
 0x136   : > { %11812 = vmatprep.subr.bf16.mxu1 %v13042_v14  ;;  %12210 = vmatprep.mubr.bf16.mxu0 %v10709_v32  ;;  %v10710_v30 = vcombine.low %v6752_v19, %v6766_v43  ;;  %v6812_v3 = vrot.slane %v6810_v9, 4  ;;  %v6821_v32 = vrot.slane %v6819_v16, 5  ;;  %v6802_v33 = vor.u32 %v6801_v51, %v6798_v44  ;;  %v14688_v9 = vld [vmem:[%s13246_s10 + $0x24] sm:$0x1]  ;;  %v10723_v29 = vld [vmem:[%s13246_s10 + $0xb0] sm:$0xe] }
 0x137   : > { %12229 = vmatpush3.bf16.msra.mxu0 %v13043_v5  ;;  %v6793_v5 = vrot.slane %v6791_v24, 5  ;;  %v6815_v27 = vrot.slane %v6813_v49, 5  ;;  %v2475_v43 = vshll.u32 %v14671_v58, 16  ;;  %v2483_v24 = vshll.u32 %v9945_v22, 16  ;;  %v9949_v49 = vld [vmem:[%s13246_s10 + $0x28] sm:$0xf] }
 0x138   : > { %12230 = vmatprep.subr.bf16.mxu0 %v13047_v23  ;;  %12211 = vmatmul.mubr.bf16.gmra.mrb[8].mxu0 %v10710_v30  ;;  %v6803_v19 = vrot.slane %v6802_v33, 4  ;;  %v10721_v30 = vld [vmem:[%s13246_s10 + $0xa0] sm:$0xe]  ;;  %v2511_v46 = vshll.u32 %v9949_v49, 16 }
 0x139   : > { %11813 = vmatpush3.bf16.msra.mxu1 %v13042_v14  ;;  %v6773_v14 = vrot.slane %v6771_v38, 5  ;;  %v6816_v41 = vor.u32 %v6815_v27, %v6812_v3  ;;  %v14676_v38 = vld [vmem:[%s13246_s10 + $0x1c] sm:$0x1]  ;;  %v2485_v39 = vrot.slane %v2483_v24, 5  ;;  %v7091_v24 = vrot.slane %v14505_v60, 5 }
 0x13a   : > { %11814 = vmatprep.subr.bf16.mxu1 %v13046_v0 }
 0x13b   : > { %v6774_v12 = vor.u32 %v6773_v14, %v6770_v21  ;;  %12231 = vmatpush3.bf16.msra.mxu0 %v13047_v23  ;;  %v6807_v23 = vrot.slane %v6805_v63, 5  ;;  %v6817_v21 = vrot.slane %v6816_v41, 4  ;;  %v10737_v63 = vrot.slane %v10721_v30, 9 }
 0x13c   : > { %11799 = vmatmul.mubr.bf16.gmra.mrb[12].mxu1 %v13045_v10  ;;  %12232 = vmatprep.subr.bf16.mxu0 %v13049_v48  ;;  %v2477_v10 = vrot.slane %v2475_v43, 5  ;;  %v10739_v43 = vrot.slane %v10723_v29, 9 }
 0x13d   : > { %11815 = vmatpush3.bf16.msra.mxu1 %v13046_v0  ;;  %v6788_v0 = vor.u32 %v6787_v56, %v6784_v61  ;;  %v6775_v7 = vrot.slane %v6774_v12, 4  ;;  %v6808_v14 = vsel %vm13288_vm2, %v6803_v19, %v6807_v23  ;;  %v2471_v61 = vrot.slane %v2469_v52, 5  ;;  %v10722_v56 = vld [vmem:[%s13246_s10 + $0xa8] sm:$0xe]  ;;  %v10724_v52 = vld [vmem:[%s13246_s10 + $0xb8] sm:$0xe] }
 0x13e   : > { %11816 = vmatprep.subr.bf16.mxu1 %v13048_v45  ;;  %v2482_v12 = vrot.slane %v2480_v15, 4  ;;  %v2503_v23 = vshll.u32 %v14688_v9, 16  ;;  %v7084_v3 = vsel %vm13627_vm5, %v10737_v63, %v7083_v40  ;;  %v2513_v15 = vrot.slane %v2511_v46, 5 }
 0x13f   : > { %v6789_v13 = vrot.slane %v6788_v0, 4  ;;  %12233 = vmatpush3.bf16.msra.mxu0 %v13049_v48  ;;  %v2489_v48 = vshll.u32 %v14676_v38, 16  ;;  %v9947_v0 = vld [vmem:[%s13246_s10 + $0x20] sm:$0xf] }
 0x140   : > { %12250 = vmatprep.subr.bf16.mxu0 %v14661_v59  ;;  %v2486_v16 = vor.u32 %v2485_v39, %v2482_v12  ;;  %v2494_v44 = vshrl.u32 %v9947_v0, 16  ;;  %v2497_v51 = vshll.u32 %v9947_v0, 16  ;;  %v2505_v19 = vrot.slane %v2503_v23, 5  ;;  %v14721_v39 = vld [vmem:[%s13246_s10 + $0x34] sm:$0x1] }
 0x141   : > { %11817 = vmatpush3.bf16.msra.mxu1 %v13048_v45  ;;  %v6780_v45 = vsel %vm13288_vm2, %v6775_v7, %v6779_v25  ;;  %v6794_v26 = vsel %vm13288_vm2, %v6789_v13, %v6793_v5  ;;  %v2468_v25 = vrot.slane %v2466_v11, 4  ;;  %v6822_v5 = vsel %vm13288_vm2, %v6817_v21, %v6821_v32  ;;  %v14692_v13 = vld [vmem:[%s13246_s10 + $0x2c] sm:$0x1]  ;;  %v10726_v23 = vld [vmem:[%s13246_s10 + $0xc8] sm:$0xe] }
 0x142   : > { %11834 = vmatprep.subr.bf16.mxu1 %v14647_v37  ;;  %v10711_v36 = vcombine.low %v6780_v45, %v6794_v26  ;;  %v2491_v57 = vrot.slane %v2489_v48, 5  ;;  %v10712_v54 = vcombine.low %v6808_v14, %v6822_v5  ;;  %v10738_v7 = vrot.slane %v10722_v56, 9  ;;  %v9951_v5 = vld [vmem:[%s13246_s10 + $0x30] sm:$0xf] }
 0x143   : > { %v2472_v50 = vor.u32 %v2471_v61, %v2468_v25  ;;  %v2508_v32 = vshrl.u32 %v9949_v49, 16  ;;  %v2487_v26 = vrot.slane %v2486_v16, 4  ;;  %v2499_v41 = vrot.slane %v2497_v51, 5 }
 0x144   : > { %12214 = vmatprep.mubr.bf16.mxu0 %v10711_v36  ;;  %v7088_v27 = vsel %vm13627_vm5, %v10738_v7, %v7087_v47  ;;  %v2496_v36 = vrot.slane %v2494_v44, 4  ;;  %v2517_v47 = vshll.u32 %v14692_v13, 16  ;;  %v10740_v48 = vrot.slane %v10724_v52, 9  ;;  %v10725_v7 = vld [vmem:[%s13246_s10 + $0xc0] sm:$0xe] }
 0x145   : > { %12215 = vmatmul.mubr.bf16.gmra.mrb[12].mxu0 %v10712_v54  ;;  %v2473_v45 = vrot.slane %v2472_v50, 4  ;;  %v10769_v33 = vcombine.low %v7084_v3, %v7088_v27  ;;  %v2510_v11 = vrot.slane %v2508_v32, 4  ;;  %v2492_v40 = vsel %vm13288_vm2, %v2487_v26, %v2491_v57  ;;  %v9953_v57 = vld [vmem:[%s13246_s10 + $0x38] sm:$0xf]  ;;  %v13053_v54 = vld [vmem:[%s15863_s1 + $0x548] sm:$0xff]  }
 0x146   : > { %v2500_v2 = vor.u32 %v2499_v41, %v2496_v36  ;;  %v2519_v14 = vrot.slane %v2517_v47, 5  ;;  %v7095_v25 = vrot.slane %v14509_v35, 5  ;;  %v7099_v61 = vrot.slane %v14530_v31, 5  ;;  %v14725_v35 = vld [vmem:[%s13246_s10 + $0x3c] sm:$0x1]  ;;  %v13052_v3 = vld [vmem:[%s15863_s1 + $0x208] sm:$0xff]  }
 0x147   : > { %v2478_v22 = vsel %vm13288_vm2, %v2473_v45, %v2477_v10  ;;  %12234 = vmatprep.mubr.bf16.mxu0 %v10769_v33  ;;  %v2514_v10 = vor.u32 %v2513_v15, %v2510_v11  ;;  %v7092_v56 = vsel %vm13627_vm5, %v10739_v43, %v7091_v24  ;;  %v2522_v50 = vshrl.u32 %v9951_v5, 16  ;;  %v9955_v33 = vld [vmem:[%s13246_s10 + $0x40] sm:$0xf]  ;;  %v13055_v11 = vld [vmem:[%s15863_s1 + $0x550] sm:$0xff]   ;;  %v9957_v47 = vld [vmem:[%s13246_s10 + $0x48] sm:$0xf] }
 0x148   : > { %v9991_v21 = vcombine.low %v2478_v22, %v2492_v40  ;;  %v2501_v30 = vrot.slane %v2500_v2, 4  ;;  %v7096_v60 = vsel %vm13627_vm5, %v10740_v48, %v7095_v25  ;;  %v2525_v63 = vshll.u32 %v9951_v5, 16  ;;  %v14751_v43 = vld [vmem:[%s13246_s10 + $0x4c] sm:$0x1]  ;;  %v13054_v48 = vld [vmem:[%s15863_s1 + $0x210] sm:$0xff]  }
 0x149   : > { %v2515_v0 = vrot.slane %v2514_v10, 4  ;;  %v10770_v31 = vcombine.low %v7092_v56, %v7096_v60  ;;  %v2531_v49 = vshll.u32 %v14721_v39, 16  ;;  %v2536_v16 = vshrl.u32 %v9953_v57, 16  ;;  %v13057_v60 = vld [vmem:[%s15863_s1 + $0x558] sm:$0xff]  }
 0x14a   : > { %11818 = vmatprep.mubr.bf16.mxu1 %v9991_v21  ;;  %v2506_v12 = vsel %vm13288_vm2, %v2501_v30, %v2505_v19  ;;  %v2539_v44 = vshll.u32 %v9953_v57, 16  ;;  %v2545_v51 = vshll.u32 %v14725_v35, 16  ;;  %v2524_v27 = vrot.slane %v2522_v50, 4  ;;  %v14742_v19 = vld [vmem:[%s13246_s10 + $0x44] sm:$0x1] }
 0x14b   : > { %v2520_v45 = vsel %vm13288_vm2, %v2515_v0, %v2519_v14  ;;  %v2527_v32 = vrot.slane %v2525_v63, 5  ;;  %v10741_v26 = vrot.slane %v10725_v7, 9  ;;  %v2533_v41 = vrot.slane %v2531_v49, 5  ;;  %v10728_v50 = vld [vmem:[%s13246_s10 + $0xd8] sm:$0xe] }
 0x14c   : > { %v9992_v36 = vcombine.low %v2506_v12, %v2520_v45  ;;  %v2538_v29 = vrot.slane %v2536_v16, 4  ;;  %v2541_v22 = vrot.slane %v2539_v44, 5  ;;  %v2547_v52 = vrot.slane %v2545_v51, 5  ;;  %v10727_v12 = vld [vmem:[%s13246_s10 + $0xd0] sm:$0xe]  ;;  %v13056_v45 = vld [vmem:[%s15863_s1 + $0x218] sm:$0xff]  }
 0x14d   : > { %12235 = vmatmul.mubr.bf16.vlgmr.msra.gmra.mrb[0].mxu0 %v10770_v31  ;;  %v2528_v46 = vor.u32 %v2527_v32, %v2524_v27  ;;  %v7100_v40 = vsel %vm13627_vm5, %v10741_v26, %v7099_v61  ;;  %v10742_v2 = vrot.slane %v10726_v23, 9  ;;  %v7103_v21 = vrot.slane %v14534_v18, 5 }
 0x14e   : > { %12251 = vmatpush3.bf16.msra.mxu0 %v14661_v59  ;;  %11819 = vmatmul.mubr.bf16.vlgmr.msra.gmra.mrb[0].mxu1 %v9992_v36  ;;  %v2542_v59 = vor.u32 %v2541_v22, %v2538_v29  ;;  %v2550_v15 = vshrl.u32 %v9955_v33, 16  ;;  %v2553_v24 = vshll.u32 %v9955_v33, 16  ;;  %v2559_v14 = vshll.u32 %v14742_v19, 16  ;;  %v13059_v33 = vld [vmem:[%s15863_s1 + $0x560] sm:$0xff]  }
 0x14f   : > { %12252 = vmatprep.subr.bf16.mxu0 %v13053_v54  ;;  %11835 = vmatpush3.bf16.msra.mxu1 %v14647_v37  ;;  %v2529_v30 = vrot.slane %v2528_v46, 4  ;;  %v2564_v25 = vshrl.u32 %v9957_v47, 16  ;;  %v2567_v61 = vshll.u32 %v9957_v47, 16  ;;  %v7104_v18 = vsel %vm13627_vm5, %v10742_v2, %v7103_v21  ;;  %v9959_v36 = vld [vmem:[%s13246_s10 + $0x60] sm:$0xf] }
 0x150   : > { %11836 = vmatprep.subr.bf16.mxu1 %v13052_v3  ;;  %v2543_v10 = vrot.slane %v2542_v59, 4  ;;  %v2552_v56 = vrot.slane %v2550_v15, 4  ;;  %v2555_v5 = vrot.slane %v2553_v24, 5  ;;  %v10771_v57 = vcombine.low %v7100_v40, %v7104_v18  ;;  %v14791_v46 = vld [vmem:[%s13246_s10 + $0x6c] sm:$0x1] }
 0x151   : > { %v2534_v37 = vsel %vm13288_vm2, %v2529_v30, %v2533_v41  ;;  %v2561_v0 = vrot.slane %v2559_v14, 5  ;;  %v2566_v31 = vrot.slane %v2564_v25, 4  ;;  %v2569_v7 = vrot.slane %v2567_v61, 5  ;;  %v14783_v41 = vld [vmem:[%s13246_s10 + $0x64] sm:$0x1] }
 0x152   : > { %12253 = vmatpush3.bf16.msra.mxu0 %v13053_v54  ;;  %v2548_v54 = vsel %vm13288_vm2, %v2543_v10, %v2547_v52  ;;  %v2556_v63 = vor.u32 %v2555_v5, %v2552_v56  ;;  %v2573_v49 = vshll.u32 %v14751_v43, 16  ;;  %12238 = vmatprep.mubr.bf16.mxu0 %v10771_v57  ;;  %v10743_v44 = vrot.slane %v10727_v12, 9  ;;  %v10729_v21 = vld [vmem:[%s13246_s10 + $0xf0] sm:$0xe]  ;;  %v10730_v25 = vld [vmem:[%s13246_s10 + $0xf8] sm:$0xe] }
 0x153   : > { %12254 = vmatprep.subr.bf16.mxu0 %v13055_v11  ;;  %11837 = vmatpush3.bf16.msra.mxu1 %v13052_v3  ;;  %v9993_v16 = vcombine.low %v2534_v37, %v2548_v54  ;;  %v7107_v51 = vrot.slane %v14551_v53, 5  ;;  %v10744_v23 = vrot.slane %v10728_v50, 9  ;;  %v2570_v32 = vor.u32 %v2569_v7, %v2566_v31  ;;  %v9963_v5 = vld [vmem:[%s13246_s10 + $0x70] sm:$0xf]  ;;  %v13061_v12 = vld [vmem:[%s15863_s1 + $0x568] sm:$0xff]  }
 0x154   : > { %v2557_v27 = vrot.slane %v2556_v63, 4  ;;  %v2575_v26 = vrot.slane %v2573_v49, 5  ;;  %11838 = vmatprep.subr.bf16.mxu1 %v13054_v48  ;;  %v7111_v3 = vrot.slane %v14558_v17, 5  ;;  %v2578_v52 = vshrl.u32 %v9959_v36, 16  ;;  %v14808_v31 = vld [vmem:[%s13246_s10 + $0x74] sm:$0x1] }
 0x155   : > { %11822 = vmatprep.mubr.bf16.mxu1 %v9993_v16  ;;  %v7108_v53 = vsel %vm13627_vm5, %v10743_v44, %v7107_v51  ;;  %v2571_v22 = vrot.slane %v2570_v32, 4  ;;  %v2581_v2 = vshll.u32 %v9959_v36, 16  ;;  %v2587_v47 = vshll.u32 %v14783_v41, 16  ;;  %v9965_v7 = vld [vmem:[%s13246_s10 + $0x78] sm:$0xf] }
 0x156   : > { %12255 = vmatpush3.bf16.msra.mxu0 %v13055_v11  ;;  %v2562_v29 = vsel %vm13288_vm2, %v2557_v27, %v2561_v0  ;;  %v7112_v17 = vsel %vm13627_vm5, %v10744_v23, %v7111_v3  ;;  %v9961_v11 = vld [vmem:[%s13246_s10 + $0x68] sm:$0xf]  ;;  %v2580_v24 = vrot.slane %v2578_v52, 4  ;;  %v2601_v14 = vshll.u32 %v14791_v46, 16  ;;  %v14813_v49 = vld [vmem:[%s13246_s10 + $0x7c] sm:$0x1] }
 0x157   : > { %12256 = vmatprep.subr.bf16.mxu0 %v13057_v60  ;;  %v10772_v40 = vcombine.low %v7108_v53, %v7112_v17  ;;  %11839 = vmatpush3.bf16.msra.mxu1 %v13054_v48  ;;  %v2592_v59 = vshrl.u32 %v9961_v11, 16  ;;  %v2576_v15 = vsel %vm13288_vm2, %v2571_v22, %v2575_v26  ;;  %v2595_v30 = vshll.u32 %v9961_v11, 16  ;;  %v13058_v48 = vld [vmem:[%s15863_s1 + $0x220] sm:$0xff]   ;;  %v10732_v22 = vld [vmem:[%s13246_s10 + $0x108] sm:$0xe] }
 0x158   : > { %11840 = vmatprep.subr.bf16.mxu1 %v13056_v45  ;;  %v9994_v61 = vcombine.low %v2562_v29, %v2576_v15  ;;  %v2583_v10 = vrot.slane %v2581_v2, 5  ;;  %v2589_v18 = vrot.slane %v2587_v47, 5  ;;  %v2603_v37 = vrot.slane %v2601_v14, 5  ;;  %v13062_v2 = vld [vmem:[%s15863_s1 + $0x230] sm:$0xff]  }
 0x159   : > { %12239 = vmatmul.mubr.bf16.gmra.mrb[4].mxu0 %v10772_v40  ;;  %v2594_v56 = vrot.slane %v2592_v59, 4  ;;  %v10745_v57 = vrot.slane %v10729_v21, 9  ;;  %v7115_v0 = vrot.slane %v14578_v20, 5  ;;  %v10746_v54 = vrot.slane %v10730_v25, 9 }
 0x15a   : > { %12257 = vmatpush3.bf16.msra.mxu0 %v13057_v60  ;;  %v2597_v60 = vrot.slane %v2595_v30, 5  ;;  %11823 = vmatmul.mubr.bf16.gmra.mrb[4].mxu1 %v9994_v61  ;;  %v2584_v50 = vor.u32 %v2583_v10, %v2580_v24  ;;  %v7119_v63 = vrot.slane %v14583_v1, 5  ;;  %v2606_v51 = vshrl.u32 %v9963_v5, 16  ;;  %v10731_v1 = vld [vmem:[%s13246_s10 + $0x100] sm:$0xe]  ;;  %v13065_v61 = vld [vmem:[%s15863_s1 + $0x578] sm:$0xff]  }
 0x15b   : > { %12258 = vmatprep.subr.bf16.mxu0 %v13059_v33  ;;  %11841 = vmatpush3.bf16.msra.mxu1 %v13056_v45  ;;  %v7116_v44 = vsel %vm13627_vm5, %v10745_v57, %v7115_v0  ;;  %v2609_v23 = vshll.u32 %v9963_v5, 16  ;;  %v2615_v32 = vshll.u32 %v14808_v31, 16  ;;  %v2620_v26 = vshrl.u32 %v9965_v7, 16  ;;  %v13060_v45 = vld [vmem:[%s15863_s1 + $0x228] sm:$0xff]  }
 0x15c   : > { %v2598_v16 = vor.u32 %v2597_v60, %v2594_v56  ;;  %v2585_v20 = vrot.slane %v2584_v50, 4  ;;  %v7120_v27 = vsel %vm13627_vm5, %v10746_v54, %v7119_v63  ;;  %11842 = vmatprep.subr.bf16.mxu1 %v13058_v48  ;;  %v2608_v36 = vrot.slane %v2606_v51, 4  ;;  %v14846_v60 = vld [vmem:[%s13246_s10 + $0x84] sm:$0x1]  ;;  %v14857_v0 = vld [vmem:[%s13246_s10 + $0x8c] sm:$0x1] }
 0x15d   : > { %v10773_v53 = vcombine.low %v7116_v44, %v7120_v27  ;;  %v2611_v29 = vrot.slane %v2609_v23, 5  ;;  %v2617_v11 = vrot.slane %v2615_v32, 5  ;;  %v2622_v52 = vrot.slane %v2620_v26, 4  ;;  %v10733_v51 = vld [vmem:[%s13246_s10 + $0x110] sm:$0xe]  ;;  %v14864_v23 = vld [vmem:[%s15863_s1 + $0x580] sm:$0xff]  }
 0x15e   : > { %12259 = vmatpush3.bf16.msra.mxu0 %v13059_v33  ;;  %v2599_v3 = vrot.slane %v2598_v16, 4  ;;  %v13063_v33 = vld [vmem:[%s15863_s1 + $0x570] sm:$0xff]   ;;  %v2590_v17 = vsel %vm13288_vm2, %v2585_v20, %v2589_v18  ;;  %v2623_v40 = vshll.u32 %v9965_v7, 16  ;;  %v2629_v21 = vshll.u32 %v14813_v49, 16 }
 0x15f   : > { %12260 = vmatprep.subr.bf16.mxu0 %v13061_v12  ;;  %12242 = vmatprep.mubr.bf16.mxu0 %v10773_v53  ;;  %v2612_v59 = vor.u32 %v2611_v29, %v2608_v36  ;;  %v10747_v15 = vrot.slane %v10731_v1, 9  ;;  %v7123_v14 = vrot.slane %v14600_v28, 5  ;;  %v10748_v25 = vrot.slane %v10732_v22, 9  ;;  %v10734_v1 = vld [vmem:[%s13246_s10 + $0x118] sm:$0xe] }
 0x160   : > { %v2604_v47 = vsel %vm13288_vm2, %v2599_v3, %v2603_v37  ;;  %11843 = vmatpush3.bf16.msra.mxu1 %v13058_v48  ;;  %v2625_v30 = vrot.slane %v2623_v40, 5  ;;  %v2631_v18 = vrot.slane %v2629_v21, 5  ;;  %v7127_v56 = vrot.slane %v14607_v55, 5  ;;  %v13064_v37 = vld [vmem:[%s15863_s1 + $0x238] sm:$0xff]   ;;  %v9971_v29 = vld [vmem:[%s13246_s10 + $0x90] sm:$0xf] }
 0x161   : > { %v9995_v24 = vcombine.low %v2590_v17, %v2604_v47  ;;  %11844 = vmatprep.subr.bf16.mxu1 %v13060_v45  ;;  %v2613_v10 = vrot.slane %v2612_v59, 4  ;;  %v7131_v48 = vrot.slane %v14627_v8, 5  ;;  %v7124_v28 = vsel %vm13627_vm5, %v10747_v15, %v7123_v14  ;;  %v9969_v8 = vld [vmem:[%s13246_s10 + $0x88] sm:$0xf]  ;;  %v9973_v40 = vld [vmem:[%s13246_s10 + $0x98] sm:$0xf] }
 0x162   : > { %12261 = vmatpush3.bf16.msra.mxu0 %v13061_v12  ;;  %v2626_v5 = vor.u32 %v2625_v30, %v2622_v52  ;;  %v9967_v12 = vld [vmem:[%s13246_s10 + $0x80] sm:$0xf]  ;;  %v7128_v55 = vsel %vm13627_vm5, %v10748_v25, %v7127_v56  ;;  %v2643_v16 = vshll.u32 %v14846_v60, 16  ;;  %v2648_v44 = vshrl.u32 %v9969_v8, 16  ;;  %v14872_v52 = vld [vmem:[%s13246_s10 + $0x94] sm:$0x1] }
 0x163   : > { %12262 = vmatprep.subr.bf16.mxu0 %v13063_v33  ;;  %11826 = vmatprep.mubr.bf16.mxu1 %v9995_v24  ;;  %v2618_v57 = vsel %vm13288_vm2, %v2613_v10, %v2617_v11  ;;  %v2634_v50 = vshrl.u32 %v9967_v12, 16  ;;  %v2637_v54 = vshll.u32 %v9967_v12, 16  ;;  %v10774_v7 = vcombine.low %v7124_v28, %v7128_v55  ;;  %v14879_v15 = vld [vmem:[%s13246_s10 + $0x9c] sm:$0x1]  ;;  %v14884_v30 = vld [vmem:[%s15863_s1 + $0x240] sm:$0xff]  }
 0x164   : > { %11845 = vmatpush3.bf16.msra.mxu1 %v13060_v45  ;;  %v2627_v63 = vrot.slane %v2626_v5, 4  ;;  %v2651_v32 = vshll.u32 %v9969_v8, 16  ;;  %v2657_v26 = vshll.u32 %v14857_v0, 16  ;;  %v2645_v3 = vrot.slane %v2643_v16, 5  ;;  %v10736_v55 = vld [vmem:[%s13246_s10 + $0x128] sm:$0xe] }
 0x165   : > { %11846 = vmatprep.subr.bf16.mxu1 %v13062_v2  ;;  %v2636_v20 = vrot.slane %v2634_v50, 4  ;;  %v2639_v27 = vrot.slane %v2637_v54, 5  ;;  %12243 = vmatmul.mubr.bf16.gmra.mrb[8].mxu0 %v10774_v7  ;;  %v2650_v53 = vrot.slane %v2648_v44, 4  ;;  %v10749_v36 = vrot.slane %v10733_v51, 9 }
 0x166   : > { %12263 = vmatpush3.bf16.msra.mxu0 %v13063_v33  ;;  %v2632_v45 = vsel %vm13288_vm2, %v2627_v63, %v2631_v18  ;;  %v2653_v17 = vrot.slane %v2651_v32, 5  ;;  %v2659_v11 = vrot.slane %v2657_v26, 5  ;;  %v10750_v59 = vrot.slane %v10734_v1, 9 }
 0x167   : > { %12264 = vmatprep.subr.bf16.mxu0 %v13065_v61  ;;  %v9996_v22 = vcombine.low %v2618_v57, %v2632_v45  ;;  %v2640_v33 = vor.u32 %v2639_v27, %v2636_v20  ;;  %v7132_v47 = vsel %vm13627_vm5, %v10749_v36, %v7131_v48  ;;  %v7135_v21 = vrot.slane %v14632_v62, 5  ;;  %v10735_v57 = vld [vmem:[%s13246_s10 + $0x120] sm:$0xe]  ;;  %v10008_v36 = vld [vmem:[%s13246_s10 + $0x18] sm:$0xe] }
 0x168   : > { %11847 = vmatpush3.bf16.msra.mxu1 %v13062_v2  ;;  %v2662_v24 = vshrl.u32 %v9971_v29, 16  ;;  %v2654_v14 = vor.u32 %v2653_v17, %v2650_v53  ;;  %v2665_v25 = vshll.u32 %v9971_v29, 16  ;;  %v2671_v10 = vshll.u32 %v14872_v52, 16 }
 0x169   : > { %11848 = vmatprep.subr.bf16.mxu1 %v13064_v37  ;;  %11827 = vmatmul.mubr.bf16.gmra.mrb[8].mxu1 %v9996_v22  ;;  %v2641_v2 = vrot.slane %v2640_v33, 4  ;;  %v7136_v62 = vsel %vm13627_vm5, %v10750_v59, %v7135_v21  ;;  %v2679_v56 = vshll.u32 %v9973_v40, 16  ;;  %v2685_v63 = vshll.u32 %v14879_v15, 16  ;;  %v13066_v21 = vld [vmem:[%s13246_s10 + $0xa8] ss:$8 sps:$4 sm:$0xff]  }
 0x16a   : > { %12265 = vmatpush3.bf16.msra.mxu0 %v13065_v61  ;;  %v2664_v18 = vrot.slane %v2662_v24, 4  ;;  %v2676_v61 = vshrl.u32 %v9973_v40, 16  ;;  %v2655_v5 = vrot.slane %v2654_v14, 4  ;;  %v10775_v28 = vcombine.low %v7132_v47, %v7136_v62 }
 0x16b   : > { %12282 = vmatprep.subr.bf16.mxu0 %v14864_v23  ;;  %v2646_v48 = vsel %vm13288_vm2, %v2641_v2, %v2645_v3  ;;  %v2667_v12 = vrot.slane %v2665_v25, 5  ;;  %v2673_v8 = vrot.slane %v2671_v10, 5  ;;  %v2681_v54 = vrot.slane %v2679_v56, 5  ;;  %v10007_v3 = vld [vmem:[%s13246_s10 + $0x10] sm:$0xe] }
 0x16c   : > { %11849 = vmatpush3.bf16.msra.mxu1 %v13064_v37  ;;  %v2678_v50 = vrot.slane %v2676_v61, 4  ;;  %v2660_v7 = vsel %vm13288_vm2, %v2655_v5, %v2659_v11  ;;  %12246 = vmatprep.mubr.bf16.mxu0 %v10775_v28  ;;  %v10751_v44 = vrot.slane %v10735_v57, 9  ;;  %v7139_v51 = vrot.slane %v14651_v34, 5  ;;  %v13068_v56 = vld [vmem:[%s13246_s10 + $0xb8] ss:$8 sps:$4 sm:$0xff]  }
 0x16d   : > { %11866 = vmatprep.subr.bf16.mxu1 %v14884_v30  ;;  %v2668_v16 = vor.u32 %v2667_v12, %v2664_v18  ;;  %v9997_v20 = vcombine.low %v2646_v48, %v2660_v7  ;;  %v2687_v37 = vrot.slane %v2685_v63, 5  ;;  %v10752_v32 = vrot.slane %v10736_v55, 9  ;;  %v10011_v48 = vld [vmem:[%s13246_s10 + $0x30] sm:$0xe]  ;;  %v10012_v5 = vld [vmem:[%s13246_s10 + $0x38] sm:$0xe] }
 0x16e   : > { %v2682_v27 = vor.u32 %v2681_v54, %v2678_v50  ;;  %v7140_v1 = vsel %vm13627_vm5, %v10751_v44, %v7139_v51  ;;  %v7143_v45 = vrot.slane %v14655_v6, 5  ;;  %v10023_v29 = vrot.slane %v10007_v3, 9  ;;  %v10013_v55 = vld [vmem:[%s13246_s10 + $0x40] sm:$0xe]  ;;  %v13072_v63 = vld [vmem:[%s13246_s10 + $0xc8] ss:$8 sps:$4 sm:$0xff]  }
 0x16f   : > { %v2669_v26 = vrot.slane %v2668_v16, 4  ;;  %11830 = vmatprep.mubr.bf16.mxu1 %v9997_v20  ;;  %v2949_v34 = vrot.slane %v14671_v58, 5  ;;  %v2953_v22 = vrot.slane %v14676_v38, 5  ;;  %v10024_v11 = vrot.slane %v10008_v36, 9  ;;  %v10009_v58 = vld [vmem:[%s13246_s10 + $0x20] sm:$0xe] }
 0x170   : > { %v2683_v53 = vrot.slane %v2682_v27, 4  ;;  %v7144_v17 = vsel %vm13627_vm5, %v10752_v32, %v7143_v45  ;;  %v2957_v6 = vrot.slane %v14688_v9, 5  ;;  %v10010_v38 = vld [vmem:[%s13246_s10 + $0x28] sm:$0xe]  ;;  %v10025_v14 = vrot.slane %v10009_v58, 9 }
 0x171   : > { %v2674_v33 = vsel %vm13288_vm2, %v2669_v26, %v2673_v8  ;;  %v10776_v47 = vcombine.low %v7140_v1, %v7144_v17  ;;  %v2950_v59 = vsel %vm13627_vm5, %v10023_v29, %v2949_v34  ;;  %v2954_v2 = vsel %vm13627_vm5, %v10024_v11, %v2953_v22  ;;  %v10014_v7 = vld [vmem:[%s13246_s10 + $0x48] sm:$0xe]  ;;  %v10015_v26 = vld [vmem:[%s13246_s10 + $0x60] sm:$0xe]  ;;  %v10017_v29 = vld [vmem:[%s13246_s10 + $0x70] sm:$0xe] }
 0x172   : > { %v2688_v40 = vsel %vm13288_vm2, %v2683_v53, %v2687_v37  ;;  %v10026_v25 = vrot.slane %v10010_v38, 9  ;;  %v10055_v9 = vcombine.low %v2950_v59, %v2954_v2  ;;  %v2961_v10 = vrot.slane %v14692_v13, 5  ;;  %v13070_v44 = vld [vmem:[%s15863_s1 + $0x248] sm:$0xff]   ;;  %v13074_v45 = vld [vmem:[%s13246_s10 + $0xd8] ss:$8 sps:$4 sm:$0xff]  }
 0x173   : > { %v9998_v24 = vcombine.low %v2674_v33, %v2688_v40  ;;  %12247 = vmatmul.mubr.bf16.gmra.mrb[12].mxu0 %v10776_v47  ;;  %v2965_v62 = vrot.slane %v14721_v39, 5  ;;  %v2958_v18 = vsel %vm13627_vm5, %v10025_v14, %v2957_v6  ;;  %v10027_v28 = vrot.slane %v10011_v48, 9  ;;  %v13071_v39 = vld [vmem:[%s15863_s1 + $0x588] sm:$0xff]   ;;  %v10018_v34 = vld [vmem:[%s13246_s10 + $0x78] sm:$0xe] }
 0x174   : > { %12266 = vmatprep.mubr.bf16.mxu0 %v13066_v21  ;;  %v2962_v61 = vsel %vm13627_vm5, %v10026_v25, %v2961_v10  ;;  %v10028_v12 = vrot.slane %v10012_v5, 9  ;;  %v2969_v13 = vrot.slane %v14725_v35, 5  ;;  %v2973_v8 = vrot.slane %v14742_v19, 5  ;;  %v13075_v19 = vld [vmem:[%s15863_s1 + $0x590] sm:$0xff]   ;;  %v13078_v17 = vld [vmem:[%s13246_s10 + $0xf8] ss:$8 sps:$4 sm:$0xff]  }
 0x175   : > { %11831 = vmatmul.mubr.bf16.gmra.mrb[12].mxu1 %v9998_v24  ;;  %v10056_v57 = vcombine.low %v2958_v18, %v2962_v61  ;;  %v2966_v50 = vsel %vm13627_vm5, %v10027_v28, %v2965_v62  ;;  %v10029_v16 = vrot.slane %v10013_v55, 9  ;;  %v2977_v35 = vrot.slane %v14751_v43, 5  ;;  %v13073_v43 = vld [vmem:[%s15863_s1 + $0x250] sm:$0xff]   ;;  %v13076_v40 = vld [vmem:[%s15863_s1 + $0x258] sm:$0xff]   ;;  %v13079_v21 = vld [vmem:[%s15863_s1 + $0x260] sm:$0xff]  }
 0x176   : > { %11850 = vmatprep.mubr.bf16.mxu1 %v10055_v9  ;;  %v2970_v54 = vsel %vm13627_vm5, %v10028_v12, %v2969_v13  ;;  %v10030_v20 = vrot.slane %v10014_v7, 9  ;;  %v2981_v27 = vrot.slane %v14783_v41, 5  ;;  %v10016_v41 = vld [vmem:[%s13246_s10 + $0x68] sm:$0xe]  ;;  %v2985_v1 = vrot.slane %v14791_v46, 5 }
 0x177   : > { %v10057_v51 = vcombine.low %v2966_v50, %v2970_v54  ;;  %v2974_v37 = vsel %vm13627_vm5, %v10029_v16, %v2973_v8  ;;  %v10032_v3 = vrot.slane %v10016_v41, 9  ;;  %v2989_v22 = vrot.slane %v14808_v31, 5  ;;  %v10019_v58 = vld [vmem:[%s13246_s10 + $0x80] sm:$0xe]  ;;  %v10020_v38 = vld [vmem:[%s13246_s10 + $0x88] sm:$0xe] }
 0x178   : > { %v2978_v32 = vsel %vm13627_vm5, %v10030_v20, %v2977_v35  ;;  %v2993_v33 = vrot.slane %v14813_v49, 5  ;;  %v10033_v11 = vrot.slane %v10017_v29, 9  ;;  %v10034_v6 = vrot.slane %v10018_v34, 9  ;;  %v13080_v9 = vld [vmem:[%s13246_s10 + $0x108] ss:$8 sps:$4 sm:$0xff]  }
 0x179   : > { %v10058_v53 = vcombine.low %v2974_v37, %v2978_v32  ;;  %v2986_v46 = vsel %vm13627_vm5, %v10032_v3, %v2985_v1  ;;  %v2997_v31 = vrot.slane %v14846_v60, 5  ;;  %v13081_v60 = vld [vmem:[%s15863_s1 + $0x5a0] sm:$0xff]   ;;  %v3001_v24 = vrot.slane %v14857_v0, 5  ;;  %v13083_v10 = vld [vmem:[%s15863_s1 + $0x5a8] sm:$0xff]   ;;  %v10021_v62 = vld [vmem:[%s13246_s10 + $0x90] sm:$0xe] }
 0x17a   : > { %v2990_v49 = vsel %vm13627_vm5, %v10033_v11, %v2989_v22  ;;  %v2994_v59 = vsel %vm13627_vm5, %v10034_v6, %v2993_v33  ;;  %v10035_v2 = vrot.slane %v10019_v58, 9  ;;  %v10036_v14 = vrot.slane %v10020_v38, 9  ;;  %v10022_v18 = vld [vmem:[%s13246_s10 + $0x98] sm:$0xe]  ;;  %v13082_v61 = vld [vmem:[%s15863_s1 + $0x268] sm:$0xff]   ;;  %v13093_v58 = vld [vmem:[%s15863_s1 + $0x5c0] sm:$0xff]  }
 0x17b   : > { %12267 = vmatmul.mubr.bf16.vlgmr.msra.gmra.mrb[0].mxu0 %v13068_v56  ;;  %v10060_v25 = vcombine.low %v2990_v49, %v2994_v59  ;;  %v10037_v48 = vrot.slane %v10021_v62, 9  ;;  %v3005_v5 = vrot.slane %v14872_v52, 5  ;;  %v10038_v28 = vrot.slane %v10022_v18, 9  ;;  %v13085_v52 = vld [vmem:[%s15863_s1 + $0x270] sm:$0xff]   ;;  %v10836_v50 = vld [vmem:[%s13246_s10 + $0xa8] sm:$0xf] }
 0x17c   : > { %12283 = vmatpush3.bf16.msra.mxu0 %v14864_v23  ;;  %v10031_v23 = vrot.slane %v10015_v26, 9  ;;  %12270 = vmatprep.mubr.bf16.mxu0 %v13072_v63  ;;  %v2998_v0 = vsel %vm13627_vm5, %v10035_v2, %v2997_v31  ;;  %v3002_v56 = vsel %vm13627_vm5, %v10036_v14, %v3001_v24  ;;  %v3009_v12 = vrot.slane %v14879_v15, 5  ;;  %v13086_v8 = vld [vmem:[%s13246_s10 + $0x128] ss:$8 sps:$4 sm:$0xff]   ;;  %v15020_v54 = vld [vmem:[%s13246_s10 + $0xac] sm:$0x1] }
 0x17d   : > { %11851 = vmatmul.mubr.bf16.vlgmr.msra.gmra.mrb[0].mxu1 %v10056_v57  ;;  %12284 = vmatprep.subr.bf16.mxu0 %v13071_v39  ;;  %v10061_v13 = vcombine.low %v2998_v0, %v3002_v56  ;;  %v13084_v57 = vld [vmem:[%s13246_s10 + $0x118] ss:$8 sps:$4 sm:$0xff]   ;;  %v3006_v15 = vsel %vm13627_vm5, %v10037_v48, %v3005_v5  ;;  %v10838_v63 = vld [vmem:[%s13246_s10 + $0xb0] sm:$0xf]  ;;  %v15024_v7 = vld [vmem:[%s13246_s10 + $0xb4] sm:$0x1] }
 0x17e   : > { %11867 = vmatpush3.bf16.msra.mxu1 %v14884_v30  ;;  %11854 = vmatprep.mubr.bf16.mxu1 %v10057_v51  ;;  %v13077_v30 = vld [vmem:[%s15863_s1 + $0x598] sm:$0xff]   ;;  %v2982_v36 = vsel %vm13627_vm5, %v10031_v23, %v2981_v27  ;;  %v3010_v55 = vsel %vm13627_vm5, %v10038_v28, %v3009_v12  ;;  %v7633_v16 = vshrl.u32 %v10836_v50, 16  ;;  %v7636_v35 = vshll.u32 %v10836_v50, 16  ;;  %v10842_v34 = vld [vmem:[%s13246_s10 + $0xc0] sm:$0xf]  ;;  %v13094_v56 = vld [vmem:[%s15863_s1 + $0x288] sm:$0xff]  }
 0x17f   : > { %11868 = vmatprep.subr.bf16.mxu1 %v13070_v44  ;;  %v10059_v47 = vcombine.low %v2982_v36, %v2986_v46  ;;  %v7647_v51 = vshrl.u32 %v10838_v63, 16  ;;  %v7650_v20 = vshll.u32 %v10838_v63, 16  ;;  %v10062_v27 = vcombine.low %v3006_v15, %v3010_v55  ;;  %v13089_v37 = vld [vmem:[%s15863_s1 + $0x5b8] sm:$0xff]   ;;  %v15041_v22 = vld [vmem:[%s13246_s10 + $0xc4] sm:$0x1]  ;;  %v13095_v50 = vld [vmem:[%s15863_s1 + $0x5c8] sm:$0xff]  }
 0x180   : > { %12285 = vmatpush3.bf16.msra.mxu0 %v13071_v39  ;;  %v13087_v39 = vld [vmem:[%s15863_s1 + $0x5b0] sm:$0xff]   ;;  %v7635_v32 = vrot.slane %v7633_v16, 4  ;;  %v7638_v26 = vrot.slane %v7636_v35, 5  ;;  %v15037_v29 = vld [vmem:[%s13246_s10 + $0xbc] sm:$0x1]  ;;  %v7684_v31 = vshll.u32 %v15041_v22, 16 }
 0x181   : > { %12286 = vmatprep.subr.bf16.mxu0 %v13075_v19  ;;  %v13090_v41 = vld [vmem:[%s13246_s10 + $0x50] ss:$8 sps:$4 sm:$0xff]   ;;  %v7649_v23 = vrot.slane %v7647_v51, 4  ;;  %v7652_v1 = vrot.slane %v7650_v20, 5  ;;  %v7670_v11 = vshll.u32 %v15037_v29, 16  ;;  %v13092_v59 = vld [vmem:[%s15863_s1 + $0x280] sm:$0xff]  }
 0x182   : > { %11869 = vmatpush3.bf16.msra.mxu1 %v13070_v44  ;;  %v7642_v44 = vshll.u32 %v15020_v54, 16  ;;  %v13091_v24 = vld [vmem:[%s13246_s10 + $0x60] ss:$8 sps:$4 sm:$0xff]   ;;  %v7686_v62 = vrot.slane %v7684_v31, 5  ;;  %v15062_v5 = vld [vmem:[%s13246_s10 + $0xcc] sm:$0x1] }
 0x183   : > { %11870 = vmatprep.subr.bf16.mxu1 %v13073_v43  ;;  %12271 = vmatmul.mubr.bf16.gmra.mrb[4].mxu0 %v13074_v45  ;;  %v7639_v45 = vor.u32 %v7638_v26, %v7635_v32  ;;  %v7653_v36 = vor.u32 %v7652_v1, %v7649_v23  ;;  %v10844_v48 = vld [vmem:[%s13246_s10 + $0xc8] sm:$0xf]  ;;  %v10846_v12 = vld [vmem:[%s13246_s10 + $0xd0] sm:$0xf]  ;;  %v7698_v15 = vshll.u32 %v15062_v5, 16 }
 0x184   : > { %12287 = vmatpush3.bf16.msra.mxu0 %v13075_v19  ;;  %12274 = vmatprep.mubr.bf16.mxu0 %v13078_v17  ;;  %v7656_v19 = vshll.u32 %v15024_v7, 16  ;;  %v7703_v55 = vshrl.u32 %v10846_v12, 16  ;;  %v7706_v16 = vshll.u32 %v10846_v12, 16  ;;  %v15083_v23 = vld [vmem:[%s13246_s10 + $0xdc] sm:$0x1] }
 0x185   : > { %11855 = vmatmul.mubr.bf16.gmra.mrb[4].mxu1 %v10058_v53  ;;  %12288 = vmatprep.subr.bf16.mxu0 %v13077_v30  ;;  %v10840_v53 = vld [vmem:[%s13246_s10 + $0xb8] sm:$0xf]  ;;  %v7640_v33 = vrot.slane %v7639_v45, 4  ;;  %v7654_v6 = vrot.slane %v7653_v36, 4  ;;  %v7700_v20 = vrot.slane %v7698_v15, 5  ;;  %v13099_v45 = vld [vmem:[%s15863_s1 + $0x5d0] sm:$0xff]  }
 0x186   : > { %11871 = vmatpush3.bf16.msra.mxu1 %v13073_v43  ;;  %11858 = vmatprep.mubr.bf16.mxu1 %v10059_v47  ;;  %v13088_v43 = vld [vmem:[%s15863_s1 + $0x278] sm:$0xff]   ;;  %v7658_v3 = vrot.slane %v7656_v19, 5  ;;  %v7661_v46 = vshrl.u32 %v10840_v53, 16  ;;  %v7664_v17 = vshll.u32 %v10840_v53, 16  ;;  %v7678_v47 = vshll.u32 %v10842_v34, 16 }
 0x187   : > { %11872 = vmatprep.subr.bf16.mxu1 %v13076_v40  ;;  %v7705_v19 = vrot.slane %v7703_v55, 4  ;;  %v10850_v1 = vld [vmem:[%s13246_s10 + $0xe0] sm:$0xf] }
 0x188   : > { %12289 = vmatpush3.bf16.msra.mxu0 %v13077_v30  ;;  %v7644_v30 = vrot.slane %v7642_v44, 5  ;;  %v7659_v38 = vsel %vm13288_vm2, %v7654_v6, %v7658_v3  ;;  %v7680_v14 = vrot.slane %v7678_v47, 5  ;;  %v15090_v3 = vld [vmem:[%s13246_s10 + $0xe4] sm:$0x1] }
 0x189   : > { %12290 = vmatprep.subr.bf16.mxu0 %v13081_v60  ;;  %v7740_v6 = vshll.u32 %v15090_v3, 16 }
 0x18a   : > { %11873 = vmatpush3.bf16.msra.mxu1 %v13076_v40  ;;  %v7675_v40 = vshrl.u32 %v10842_v34, 16  ;;  %v7645_v49 = vsel %vm13288_vm2, %v7640_v33, %v7644_v30  ;;  %v7726_v34 = vshll.u32 %v15083_v23, 16  ;;  %v13100_v33 = vld [vmem:[%s15863_s1 + $0x298] sm:$0xff]  }
 0x18b   : > { %11874 = vmatprep.subr.bf16.mxu1 %v13079_v21  ;;  %12275 = vmatmul.mubr.bf16.gmra.mrb[8].mxu0 %v13080_v9 }
 0x18c   : > { %12291 = vmatpush3.bf16.msra.mxu0 %v13081_v60  ;;  %12278 = vmatprep.mubr.bf16.mxu0 %v13084_v57  ;;  %v7666_v60 = vrot.slane %v7664_v17, 5  ;;  %v7677_v2 = vrot.slane %v7675_v40, 4  ;;  %v7689_v57 = vshrl.u32 %v10844_v48, 16  ;;  %v7731_v17 = vshrl.u32 %v10850_v1, 16 }
 0x18d   : > { %11859 = vmatmul.mubr.bf16.gmra.mrb[8].mxu1 %v10060_v25  ;;  %12292 = vmatprep.subr.bf16.mxu0 %v13083_v10  ;;  %v10884_v25 = vcombine.low %v7645_v49, %v7659_v38  ;;  %v7728_v49 = vrot.slane %v7726_v34, 5  ;;  %v13101_v38 = vld [vmem:[%s15863_s1 + $0x5d8] sm:$0xff]  }
 0x18e   : > { %11875 = vmatpush3.bf16.msra.mxu1 %v13079_v21  ;;  %11862 = vmatprep.mubr.bf16.mxu1 %v10061_v13  ;;  %v7663_v21 = vrot.slane %v7661_v46, 4  ;;  %v7681_v18 = vor.u32 %v7680_v14, %v7677_v2  ;;  %v15066_v13 = vld [vmem:[%s13246_s10 + $0xd4] sm:$0x1]  ;;  %v7691_v63 = vrot.slane %v7689_v57, 4 }
 0x18f   : > { %11876 = vmatprep.subr.bf16.mxu1 %v13082_v61  ;;  %v7712_v35 = vshll.u32 %v15066_v13, 16 }
 0x190   : > { %12293 = vmatpush3.bf16.msra.mxu0 %v13083_v10  ;;  %v7667_v9 = vor.u32 %v7666_v60, %v7663_v21  ;;  %v7672_v10 = vrot.slane %v7670_v11, 5  ;;  %v7682_v28 = vrot.slane %v7681_v18, 4  ;;  %v7734_v11 = vshll.u32 %v10850_v1, 16  ;;  %v10852_v18 = vld [vmem:[%s13246_s10 + $0xf8] sm:$0xf] }
 0x191   : > { %12294 = vmatprep.subr.bf16.mxu0 %v13087_v39  ;;  %v7714_v32 = vrot.slane %v7712_v35, 5  ;;  %v7733_v21 = vrot.slane %v7731_v17, 4  ;;  %v7745_v12 = vshrl.u32 %v10852_v18, 16  ;;  %v10858_v1 = vld [vmem:[%s13246_s10 + $0x110] sm:$0xf] }
 0x192   : > { %11877 = vmatpush3.bf16.msra.mxu1 %v13082_v61  ;;  %v13096_v61 = vld [vmem:[%s13246_s10 + $0x70] ss:$8 sps:$4 sm:$0xff]   ;;  %v7668_v0 = vrot.slane %v7667_v9, 4  ;;  %v7736_v60 = vrot.slane %v7734_v11, 5  ;;  %v7787_v11 = vshrl.u32 %v10858_v1, 16 }
 0x193   : > { %11878 = vmatprep.subr.bf16.mxu1 %v13085_v52  ;;  %12279 = vmatmul.mubr.bf16.gmra.mrb[12].mxu0 %v13086_v8  ;;  %v7687_v8 = vsel %vm13288_vm2, %v7682_v28, %v7686_v62  ;;  %v15115_v28 = vld [vmem:[%s13246_s10 + $0x104] sm:$0x1] }
 0x194   : > { %12295 = vmatpush3.bf16.msra.mxu0 %v13087_v39  ;;  %12298 = vmatprep.mubr.bf16.mxu0 %v10884_v25  ;;  %v7673_v39 = vsel %vm13288_vm2, %v7668_v0, %v7672_v10  ;;  %v7737_v9 = vor.u32 %v7736_v60, %v7733_v21  ;;  %v13102_v10 = vld [vmem:[%s13246_s10 + $0xa0] ss:$8 sps:$4 sm:$0xff]   ;;  %v8116_v0 = vrot.slane %v15020_v54, 5  ;;  %v7789_v60 = vrot.slane %v7787_v11, 4 }
 0x195   : > { %11863 = vmatmul.mubr.bf16.gmra.mrb[12].mxu1 %v10062_v27  ;;  %12296 = vmatprep.subr.bf16.mxu0 %v13089_v37  ;;  %v10885_v44 = vcombine.low %v7673_v39, %v7687_v8  ;;  %v13097_v27 = vld [vmem:[%s13246_s10 + $0x80] ss:$8 sps:$4 sm:$0xff]   ;;  %v7748_v39 = vshll.u32 %v10852_v18, 16  ;;  %v7747_v8 = vrot.slane %v7745_v12, 4  ;;  %v8120_v12 = vrot.slane %v15024_v7, 5 }
 0x196   : > { %11879 = vmatpush3.bf16.msra.mxu1 %v13085_v52  ;;  %11882 = vmatprep.mubr.bf16.mxu1 %v13090_v41  ;;  %v7692_v52 = vshll.u32 %v10844_v48, 16  ;;  %v10848_v41 = vld [vmem:[%s13246_s10 + $0xd8] sm:$0xf]  ;;  %v10854_v48 = vld [vmem:[%s13246_s10 + $0x100] sm:$0xf] }
 0x197   : > { %11880 = vmatprep.subr.bf16.mxu1 %v13088_v43  ;;  %v7717_v53 = vshrl.u32 %v10848_v41, 16  ;;  %v7720_v36 = vshll.u32 %v10848_v41, 16  ;;  %v7759_v15 = vshrl.u32 %v10854_v48, 16  ;;  %v15132_v41 = vld [vmem:[%s13246_s10 + $0x10c] sm:$0x1] }
 0x198   : > { %12297 = vmatpush3.bf16.msra.mxu0 %v13089_v37  ;;  %v7694_v51 = vrot.slane %v7692_v52, 5  ;;  %v7708_v37 = vrot.slane %v7706_v16, 5  ;;  %v13105_v16 = vld [vmem:[%s15863_s1 + $0x5e0] sm:$0xff]  }
 0x199   : > { %12314 = vmatprep.subr.bf16.mxu0 %v13093_v58  ;;  %v7719_v47 = vrot.slane %v7717_v53, 4  ;;  %v7722_v31 = vrot.slane %v7720_v36, 5  ;;  %v15139_v53 = vld [vmem:[%s13246_s10 + $0x114] sm:$0x1] }
 0x19a   : > { %11881 = vmatpush3.bf16.msra.mxu1 %v13088_v43  ;;  %v13098_v43 = vld [vmem:[%s15863_s1 + $0x290] sm:$0xff]   ;;  %v7695_v26 = vor.u32 %v7694_v51, %v7691_v63  ;;  %v7709_v30 = vor.u32 %v7708_v37, %v7705_v19  ;;  %v7768_v63 = vshll.u32 %v15115_v28, 16 }
 0x19b   : > { %11898 = vmatprep.subr.bf16.mxu1 %v13092_v59  ;;  %12299 = vmatmul.mubr.bf16.vlgmr.msra.gmra.mrb[0].mxu0 %v10885_v44  ;;  %v7723_v14 = vor.u32 %v7722_v31, %v7719_v47  ;;  %v7750_v44 = vrot.slane %v7748_v39, 5  ;;  %v13103_v19 = vld [vmem:[%s13246_s10 + $0xb0] ss:$8 sps:$4 sm:$0xff]   ;;  %v10862_v39 = vld [vmem:[%s13246_s10 + $0x120] sm:$0xf] }
 0x19c   : > { %12315 = vmatpush3.bf16.msra.mxu0 %v13093_v58  ;;  %v7696_v46 = vrot.slane %v7695_v26, 4  ;;  %v7710_v40 = vrot.slane %v7709_v30, 4  ;;  %v7742_v58 = vrot.slane %v7740_v6, 5  ;;  %v7770_v37 = vrot.slane %v7768_v63, 5  ;;  %v10856_v26 = vld [vmem:[%s13246_s10 + $0x108] sm:$0xf] }
 0x19d   : > { %11883 = vmatmul.mubr.bf16.vlgmr.msra.gmra.mrb[0].mxu1 %v13091_v24  ;;  %12316 = vmatprep.subr.bf16.mxu0 %v13095_v50  ;;  %v13104_v24 = vld [vmem:[%s15863_s1 + $0x2a0] sm:$0xff]   ;;  %v7724_v62 = vrot.slane %v7723_v14, 4  ;;  %v7773_v36 = vshrl.u32 %v10856_v26, 16  ;;  %v7776_v34 = vshll.u32 %v10856_v26, 16  ;;  %v7790_v6 = vshll.u32 %v10858_v1, 16 }
 0x19e   : > { %11899 = vmatpush3.bf16.msra.mxu1 %v13092_v59  ;;  %11886 = vmatprep.mubr.bf16.mxu1 %v13096_v61  ;;  %v7701_v59 = vsel %vm13288_vm2, %v7696_v46, %v7700_v20  ;;  %v7715_v2 = vsel %vm13288_vm2, %v7710_v40, %v7714_v32  ;;  %v15110_v61 = vld [vmem:[%s13246_s10 + $0xfc] sm:$0x1]  ;;  %v7761_v20 = vrot.slane %v7759_v15, 4  ;;  %v7751_v32 = vor.u32 %v7750_v44, %v7747_v8  ;;  %v13110_v46 = vld [vmem:[%s15863_s1 + $0x2b0] sm:$0xff]   ;;  %v15179_v26 = vld [vmem:[%s15863_s1 + $0x2c0] sm:$0xff]  }
 0x19f   : > { %11900 = vmatprep.subr.bf16.mxu1 %v13094_v56  ;;  %v10886_v25 = vcombine.low %v7701_v59, %v7715_v2  ;;  %v7729_v57 = vsel %vm13288_vm2, %v7724_v62, %v7728_v49  ;;  %v7754_v52 = vshll.u32 %v15110_v61, 16  ;;  %v7796_v40 = vshll.u32 %v15139_v53, 16  ;;  %v13112_v2 = vld [vmem:[%s15863_s1 + $0x2b8] sm:$0xff]   ;;  %v13108_v62 = vld [vmem:[%s13246_s10 + $0xc0] ss:$8 sps:$4 sm:$0xff]  }
 0x1a0   : > { %12317 = vmatpush3.bf16.msra.mxu0 %v13095_v50  ;;  %v7762_v50 = vshll.u32 %v10854_v48, 16  ;;  %v7752_v17 = vrot.slane %v7751_v32, 4  ;;  %v7775_v31 = vrot.slane %v7773_v36, 4  ;;  %v7778_v49 = vrot.slane %v7776_v34, 5  ;;  %v15159_v48 = vld [vmem:[%s13246_s10 + $0x11c] sm:$0x1] }
 0x1a1   : > { %12318 = vmatprep.subr.bf16.mxu0 %v13099_v45  ;;  %12302 = vmatprep.mubr.bf16.mxu0 %v10886_v25  ;;  %v7756_v51 = vrot.slane %v7754_v52, 5  ;;  %v15164_v52 = vld [vmem:[%s13246_s10 + $0x124] sm:$0x1]  ;;  %v7815_v63 = vshrl.u32 %v10862_v39, 16  ;;  %v7818_v44 = vshll.u32 %v10862_v39, 16 }
 0x1a2   : > { %11901 = vmatpush3.bf16.msra.mxu1 %v13094_v56  ;;  %v7738_v56 = vrot.slane %v7737_v9, 4  ;;  %v7779_v25 = vor.u32 %v7778_v49, %v7775_v31  ;;  %v13109_v32 = vld [vmem:[%s13246_s10 + $0xd0] ss:$8 sps:$4 sm:$0xff]   ;;  %v10864_v36 = vld [vmem:[%s13246_s10 + $0x128] sm:$0xf] }
 0x1a3   : > { %11902 = vmatprep.subr.bf16.mxu1 %v13098_v43  ;;  %v7757_v21 = vsel %vm13288_vm2, %v7752_v17, %v7756_v51  ;;  %v7824_v51 = vshll.u32 %v15164_v52, 16  ;;  %v7820_v1 = vrot.slane %v7818_v44, 5  ;;  %v15183_v34 = vld [vmem:[%s13246_s10 + $0x12c] sm:$0x1]  ;;  %v15187_v17 = vld [vmem:[%s13246_s10 + $0x134] sm:$0x1] }
 0x1a4   : > { %12319 = vmatpush3.bf16.msra.mxu0 %v13099_v45  ;;  %v7743_v55 = vsel %vm13288_vm2, %v7738_v56, %v7742_v58  ;;  %v13107_v45 = vld [vmem:[%s15863_s1 + $0x5e8] sm:$0xff]   ;;  %v7792_v58 = vrot.slane %v7790_v6, 5  ;;  %v7780_v18 = vrot.slane %v7779_v25, 4  ;;  %v10860_v56 = vld [vmem:[%s13246_s10 + $0x118] sm:$0xf]  ;;  %v7829_v11 = vshrl.u32 %v10864_v36, 16 }
 0x1a5   : > { %11887 = vmatmul.mubr.bf16.gmra.mrb[4].mxu1 %v13097_v27  ;;  %12320 = vmatprep.subr.bf16.mxu0 %v13101_v38  ;;  %v10887_v35 = vcombine.low %v7729_v57, %v7743_v55  ;;  %v13106_v27 = vld [vmem:[%s15863_s1 + $0x2a8] sm:$0xff]   ;;  %v7801_v15 = vshrl.u32 %v10860_v56, 16  ;;  %v7804_v8 = vshll.u32 %v10860_v56, 16  ;;  %v7832_v6 = vshll.u32 %v10864_v36, 16  ;;  %v15203_v39 = vld [vmem:[%s13246_s10 + $0x54] sm:$0x1] }
 0x1a6   : > { %11903 = vmatpush3.bf16.msra.mxu1 %v13098_v43  ;;  %11890 = vmatprep.mubr.bf16.mxu1 %v13102_v10  ;;  %v7764_v43 = vrot.slane %v7762_v50, 5  ;;  %v7793_v10 = vor.u32 %v7792_v58, %v7789_v60  ;;  %v7810_v50 = vshll.u32 %v15159_v48, 16  ;;  %v7831_v58 = vrot.slane %v7829_v11, 4 }
 0x1a7   : > { %11904 = vmatprep.subr.bf16.mxu1 %v13100_v33  ;;  %12303 = vmatmul.mubr.bf16.gmra.mrb[4].mxu0 %v10887_v35  ;;  %v7803_v35 = vrot.slane %v7801_v15, 4  ;;  %v10123_v15 = vld [vmem:[%s13246_s10 + $0x58] sm:$0xf] }
 0x1a8   : > { %12321 = vmatpush3.bf16.msra.mxu0 %v13101_v38  ;;  %v7765_v30 = vor.u32 %v7764_v43, %v7761_v20  ;;  %v7798_v38 = vrot.slane %v7796_v40, 5  ;;  %v7794_v57 = vrot.slane %v7793_v10, 4  ;;  %v13113_v20 = vld [vmem:[%s15863_s1 + $0x5f8] sm:$0xff]   ;;  %v7812_v43 = vrot.slane %v7810_v50, 5 }
 0x1a9   : > { %12322 = vmatprep.subr.bf16.mxu0 %v13105_v16  ;;  %v7838_v40 = vshll.u32 %v15183_v34, 16  ;;  %v3514_v44 = vshrl.u32 %v10123_v15, 16 }
 0x1aa   : > { %11905 = vmatpush3.bf16.msra.mxu1 %v13100_v33  ;;  %v7782_v33 = vshll.u32 %v15132_v41, 16  ;;  %v7766_v47 = vrot.slane %v7765_v30, 4 }
 0x1ab   : > { %11906 = vmatprep.subr.bf16.mxu1 %v13104_v24 }
 0x1ac   : > { %v7784_v59 = vrot.slane %v7782_v33, 5  ;;  %v7771_v14 = vsel %vm13288_vm2, %v7766_v47, %v7770_v37  ;;  %12323 = vmatpush3.bf16.msra.mxu0 %v13105_v16  ;;  %v7799_v16 = vsel %vm13288_vm2, %v7794_v57, %v7798_v38  ;;  %v7817_v37 = vrot.slane %v7815_v63, 4  ;;  %v10866_v33 = vld [vmem:[%s13246_s10 + $0x130] sm:$0xf]  ;;  %v15193_v47 = vld [vmem:[%s15863_s1 + $0x600] sm:$0xff]  }
 0x1ad   : > { %11891 = vmatmul.mubr.bf16.gmra.mrb[8].mxu1 %v13103_v19  ;;  %v10888_v9 = vcombine.low %v7757_v21, %v7771_v14  ;;  %12324 = vmatprep.subr.bf16.mxu0 %v13107_v45  ;;  %v7843_v49 = vshrl.u32 %v10866_v33, 16  ;;  %v7852_v21 = vshll.u32 %v15187_v17, 16  ;;  %v7834_v38 = vrot.slane %v7832_v6, 5  ;;  %v10121_v57 = vld [vmem:[%s13246_s10 + $0x50] sm:$0xf] }
 0x1ae   : > { %11907 = vmatpush3.bf16.msra.mxu1 %v13104_v24  ;;  %v13111_v24 = vld [vmem:[%s15863_s1 + $0x5f0] sm:$0xff]   ;;  %11894 = vmatprep.mubr.bf16.mxu1 %v13108_v62  ;;  %v7785_v55 = vsel %vm13288_vm2, %v7780_v18, %v7784_v59  ;;  %v7846_v59 = vshll.u32 %v10866_v33, 16  ;;  %v3500_v50 = vshrl.u32 %v10121_v57, 16  ;;  %v3503_v63 = vshll.u32 %v10121_v57, 16  ;;  %v10902_v57 = vld [vmem:[%s13246_s10 + $0xb8] sm:$0xe] }
 0x1af   : > { %11908 = vmatprep.subr.bf16.mxu1 %v13106_v27  ;;  %12306 = vmatprep.mubr.bf16.mxu0 %v10888_v9  ;;  %v10889_v19 = vcombine.low %v7785_v55, %v7799_v16  ;;  %v7845_v14 = vrot.slane %v7843_v49, 4  ;;  %v7854_v9 = vrot.slane %v7852_v21, 5  ;;  %v7835_v62 = vor.u32 %v7834_v38, %v7831_v58  ;;  %v15220_v49 = vld [vmem:[%s13246_s10 + $0x64] sm:$0x1] }
 0x1b0   : > { %12325 = vmatpush3.bf16.msra.mxu0 %v13107_v45  ;;  %v7826_v45 = vrot.slane %v7824_v51, 5  ;;  %v7848_v25 = vrot.slane %v7846_v59, 5  ;;  %v3509_v16 = vshll.u32 %v15203_v39, 16  ;;  %v3517_v51 = vshll.u32 %v10123_v15, 16  ;;  %v10127_v59 = vld [vmem:[%s13246_s10 + $0x68] sm:$0xf] }
 0x1b1   : > { %12326 = vmatprep.subr.bf16.mxu0 %v13111_v24  ;;  %12307 = vmatmul.mubr.bf16.gmra.mrb[8].mxu0 %v10889_v19  ;;  %v7836_v55 = vrot.slane %v7835_v62, 4  ;;  %v10900_v19 = vld [vmem:[%s13246_s10 + $0xa8] sm:$0xe]  ;;  %v3545_v54 = vshll.u32 %v10127_v59, 16 }
 0x1b2   : > { %11909 = vmatpush3.bf16.msra.mxu1 %v13106_v27  ;;  %v7806_v27 = vrot.slane %v7804_v8, 5  ;;  %v7849_v56 = vor.u32 %v7848_v25, %v7845_v14  ;;  %v15208_v8 = vld [vmem:[%s13246_s10 + $0x5c] sm:$0x1]  ;;  %v3519_v36 = vrot.slane %v3517_v51, 5  ;;  %v8124_v51 = vrot.slane %v15037_v29, 5 }
 0x1b3   : > { %11910 = vmatprep.subr.bf16.mxu1 %v13110_v46 }
 0x1b4   : > { %v7807_v30 = vor.u32 %v7806_v27, %v7803_v35  ;;  %12327 = vmatpush3.bf16.msra.mxu0 %v13111_v24  ;;  %v7840_v24 = vrot.slane %v7838_v40, 5  ;;  %v7850_v35 = vrot.slane %v7849_v56, 4  ;;  %v10916_v40 = vrot.slane %v10900_v19, 9 }
 0x1b5   : > { %11895 = vmatmul.mubr.bf16.gmra.mrb[12].mxu1 %v13109_v32  ;;  %12328 = vmatprep.subr.bf16.mxu0 %v13113_v20  ;;  %v3511_v32 = vrot.slane %v3509_v16, 5  ;;  %v10918_v16 = vrot.slane %v10902_v57, 9 }
 0x1b6   : > { %11911 = vmatpush3.bf16.msra.mxu1 %v13110_v46  ;;  %v7821_v46 = vor.u32 %v7820_v1, %v7817_v37  ;;  %v7808_v31 = vrot.slane %v7807_v30, 4  ;;  %v7841_v27 = vsel %vm13288_vm2, %v7836_v55, %v7840_v24  ;;  %v3505_v37 = vrot.slane %v3503_v63, 5  ;;  %v10901_v1 = vld [vmem:[%s13246_s10 + $0xb0] sm:$0xe]  ;;  %v10903_v63 = vld [vmem:[%s13246_s10 + $0xc0] sm:$0xe] }
 0x1b7   : > { %11912 = vmatprep.subr.bf16.mxu1 %v13112_v2  ;;  %v3516_v30 = vrot.slane %v3514_v44, 4  ;;  %v3537_v24 = vshll.u32 %v15220_v49, 16  ;;  %v8117_v14 = vsel %vm13627_vm5, %v10916_v40, %v8116_v0  ;;  %v3547_v44 = vrot.slane %v3545_v54, 5 }
 0x1b8   : > { %v7822_v60 = vrot.slane %v7821_v46, 4  ;;  %12329 = vmatpush3.bf16.msra.mxu0 %v13113_v20  ;;  %v3523_v20 = vshll.u32 %v15208_v8, 16  ;;  %v10125_v46 = vld [vmem:[%s13246_s10 + $0x60] sm:$0xf] }
 0x1b9   : > { %12346 = vmatprep.subr.bf16.mxu0 %v15193_v47  ;;  %v3520_v21 = vor.u32 %v3519_v36, %v3516_v30  ;;  %v3528_v58 = vshrl.u32 %v10125_v46, 16  ;;  %v3531_v38 = vshll.u32 %v10125_v46, 16  ;;  %v3539_v55 = vrot.slane %v3537_v24, 5  ;;  %v15253_v36 = vld [vmem:[%s13246_s10 + $0x74] sm:$0x1] }
 0x1ba   : > { %11913 = vmatpush3.bf16.msra.mxu1 %v13112_v2  ;;  %v7813_v2 = vsel %vm13288_vm2, %v7808_v31, %v7812_v43  ;;  %v7827_v10 = vsel %vm13288_vm2, %v7822_v60, %v7826_v45  ;;  %v3502_v43 = vrot.slane %v3500_v50, 4  ;;  %v7855_v45 = vsel %vm13288_vm2, %v7850_v35, %v7854_v9  ;;  %v15224_v60 = vld [vmem:[%s13246_s10 + $0x6c] sm:$0x1]  ;;  %v10905_v24 = vld [vmem:[%s13246_s10 + $0xd0] sm:$0xe] }
 0x1bb   : > { %11930 = vmatprep.subr.bf16.mxu1 %v15179_v26  ;;  %v10890_v18 = vcombine.low %v7813_v2, %v7827_v10  ;;  %v3525_v33 = vrot.slane %v3523_v20, 5  ;;  %v10891_v11 = vcombine.low %v7841_v27, %v7855_v45  ;;  %v10917_v31 = vrot.slane %v10901_v1, 9  ;;  %v10129_v45 = vld [vmem:[%s13246_s10 + $0x70] sm:$0xf] }
 0x1bc   : > { %v3506_v6 = vor.u32 %v3505_v37, %v3502_v43  ;;  %v3542_v9 = vshrl.u32 %v10127_v59, 16  ;;  %v3521_v10 = vrot.slane %v3520_v21, 4  ;;  %v3533_v56 = vrot.slane %v3531_v38, 5 }
 0x1bd   : > { %12310 = vmatprep.mubr.bf16.mxu0 %v10890_v18  ;;  %v8121_v25 = vsel %vm13627_vm5, %v10917_v31, %v8120_v12  ;;  %v3530_v18 = vrot.slane %v3528_v58, 4  ;;  %v3551_v12 = vshll.u32 %v15224_v60, 16  ;;  %v10919_v20 = vrot.slane %v10903_v63, 9  ;;  %v10904_v31 = vld [vmem:[%s13246_s10 + $0xc8] sm:$0xe] }
 0x1be   : > { %12311 = vmatmul.mubr.bf16.gmra.mrb[12].mxu0 %v10891_v11  ;;  %v3507_v2 = vrot.slane %v3506_v6, 4  ;;  %v10948_v62 = vcombine.low %v8117_v14, %v8121_v25  ;;  %v3544_v50 = vrot.slane %v3542_v9, 4  ;;  %v3526_v0 = vsel %vm13288_vm2, %v3521_v10, %v3525_v33  ;;  %v10131_v33 = vld [vmem:[%s13246_s10 + $0x78] sm:$0xf]  ;;  %v13117_v11 = vld [vmem:[%s15863_s1 + $0x608] sm:$0xff]  }
 0x1bf   : > { %v3534_v7 = vor.u32 %v3533_v56, %v3530_v18  ;;  %v3553_v27 = vrot.slane %v3551_v12, 5  ;;  %v8128_v43 = vrot.slane %v15041_v22, 5  ;;  %v8132_v37 = vrot.slane %v15062_v5, 5  ;;  %v15257_v22 = vld [vmem:[%s13246_s10 + $0x7c] sm:$0x1]  ;;  %v13116_v14 = vld [vmem:[%s15863_s1 + $0x2c8] sm:$0xff]  }
 0x1c0   : > { %v3512_v15 = vsel %vm13288_vm2, %v3507_v2, %v3511_v32  ;;  %12330 = vmatprep.mubr.bf16.mxu0 %v10948_v62  ;;  %v3548_v32 = vor.u32 %v3547_v44, %v3544_v50  ;;  %v8125_v1 = vsel %vm13627_vm5, %v10918_v16, %v8124_v51  ;;  %v3556_v6 = vshrl.u32 %v10129_v45, 16  ;;  %v10133_v62 = vld [vmem:[%s13246_s10 + $0x80] sm:$0xf]  ;;  %v13119_v50 = vld [vmem:[%s15863_s1 + $0x610] sm:$0xff]   ;;  %v10135_v12 = vld [vmem:[%s13246_s10 + $0x88] sm:$0xf] }
 0x1c1   : > { %v10169_v35 = vcombine.low %v3512_v15, %v3526_v0  ;;  %v3535_v19 = vrot.slane %v3534_v7, 4  ;;  %v8129_v29 = vsel %vm13627_vm5, %v10919_v20, %v8128_v43  ;;  %v3559_v40 = vshll.u32 %v10129_v45, 16  ;;  %v15283_v16 = vld [vmem:[%s13246_s10 + $0x8c] sm:$0x1]  ;;  %v13118_v20 = vld [vmem:[%s15863_s1 + $0x2d0] sm:$0xff]  }
 0x1c2   : > { %v3549_v46 = vrot.slane %v3548_v32, 4  ;;  %v10949_v5 = vcombine.low %v8125_v1, %v8129_v29  ;;  %v3565_v59 = vshll.u32 %v15253_v36, 16  ;;  %v3570_v21 = vshrl.u32 %v10131_v33, 16  ;;  %v13121_v29 = vld [vmem:[%s15863_s1 + $0x618] sm:$0xff]  }
 0x1c3   : > { %11914 = vmatprep.mubr.bf16.mxu1 %v10169_v35  ;;  %v3540_v30 = vsel %vm13288_vm2, %v3535_v19, %v3539_v55  ;;  %v3573_v58 = vshll.u32 %v10131_v33, 16  ;;  %v3579_v38 = vshll.u32 %v15257_v22, 16  ;;  %v3558_v25 = vrot.slane %v3556_v6, 4  ;;  %v15274_v55 = vld [vmem:[%s13246_s10 + $0x84] sm:$0x1] }
 0x1c4   : > { %v3554_v2 = vsel %vm13288_vm2, %v3549_v46, %v3553_v27  ;;  %v3561_v9 = vrot.slane %v3559_v40, 5  ;;  %v10920_v10 = vrot.slane %v10904_v31, 9  ;;  %v3567_v56 = vrot.slane %v3565_v59, 5  ;;  %v10907_v6 = vld [vmem:[%s13246_s10 + $0xe0] sm:$0xe] }
 0x1c5   : > { %v10170_v18 = vcombine.low %v3540_v30, %v3554_v2  ;;  %v3572_v57 = vrot.slane %v3570_v21, 4  ;;  %v3575_v15 = vrot.slane %v3573_v58, 5  ;;  %v3581_v63 = vrot.slane %v3579_v38, 5  ;;  %v10906_v30 = vld [vmem:[%s13246_s10 + $0xd8] sm:$0xe] }
 0x1c6   : > { %12331 = vmatmul.mubr.bf16.vlgmr.msra.gmra.mrb[0].mxu0 %v10949_v5  ;;  %v3562_v54 = vor.u32 %v3561_v9, %v3558_v25  ;;  %v8133_v0 = vsel %vm13627_vm5, %v10920_v10, %v8132_v37  ;;  %v10921_v7 = vrot.slane %v10905_v24, 9  ;;  %v8136_v35 = vrot.slane %v15066_v13, 5  ;;  %v13120_v2 = vld [vmem:[%s15863_s1 + $0x2d8] sm:$0xff]  }
 0x1c7   : > { %12347 = vmatpush3.bf16.msra.mxu0 %v15193_v47  ;;  %11915 = vmatmul.mubr.bf16.vlgmr.msra.gmra.mrb[0].mxu1 %v10170_v18  ;;  %v3576_v47 = vor.u32 %v3575_v15, %v3572_v57  ;;  %v3584_v44 = vshrl.u32 %v10133_v62, 16  ;;  %v3587_v51 = vshll.u32 %v10133_v62, 16  ;;  %v3593_v27 = vshll.u32 %v15274_v55, 16  ;;  %v13123_v62 = vld [vmem:[%s15863_s1 + $0x620] sm:$0xff]  }
 0x1c8   : > { %12348 = vmatprep.subr.bf16.mxu0 %v13117_v11  ;;  %11931 = vmatpush3.bf16.msra.mxu1 %v15179_v26  ;;  %v3563_v19 = vrot.slane %v3562_v54, 4  ;;  %v3598_v43 = vshrl.u32 %v10135_v12, 16  ;;  %v3601_v37 = vshll.u32 %v10135_v12, 16  ;;  %v8137_v13 = vsel %vm13627_vm5, %v10921_v7, %v8136_v35  ;;  %v10137_v18 = vld [vmem:[%s13246_s10 + $0xa0] sm:$0xf] }
 0x1c9   : > { %11932 = vmatprep.subr.bf16.mxu1 %v13116_v14  ;;  %v3577_v32 = vrot.slane %v3576_v47, 4  ;;  %v3586_v1 = vrot.slane %v3584_v44, 4  ;;  %v3589_v45 = vrot.slane %v3587_v51, 5  ;;  %v10950_v33 = vcombine.low %v8133_v0, %v8137_v13  ;;  %v15323_v54 = vld [vmem:[%s13246_s10 + $0xac] sm:$0x1] }
 0x1ca   : > { %v3568_v26 = vsel %vm13288_vm2, %v3563_v19, %v3567_v56  ;;  %v3595_v46 = vrot.slane %v3593_v27, 5  ;;  %v3600_v5 = vrot.slane %v3598_v43, 4  ;;  %v3603_v31 = vrot.slane %v3601_v37, 5  ;;  %v15315_v56 = vld [vmem:[%s13246_s10 + $0xa4] sm:$0x1] }
 0x1cb   : > { %12349 = vmatpush3.bf16.msra.mxu0 %v13117_v11  ;;  %v3582_v11 = vsel %vm13288_vm2, %v3577_v32, %v3581_v63  ;;  %v3590_v40 = vor.u32 %v3589_v45, %v3586_v1  ;;  %v3607_v59 = vshll.u32 %v15283_v16, 16  ;;  %12334 = vmatprep.mubr.bf16.mxu0 %v10950_v33  ;;  %v10922_v58 = vrot.slane %v10906_v30, 9  ;;  %v10908_v35 = vld [vmem:[%s13246_s10 + $0xf8] sm:$0xe]  ;;  %v10909_v43 = vld [vmem:[%s13246_s10 + $0x100] sm:$0xe] }
 0x1cc   : > { %12350 = vmatprep.subr.bf16.mxu0 %v13119_v50  ;;  %11933 = vmatpush3.bf16.msra.mxu1 %v13116_v14  ;;  %v10171_v21 = vcombine.low %v3568_v26, %v3582_v11  ;;  %v8140_v38 = vrot.slane %v15083_v23, 5  ;;  %v10923_v24 = vrot.slane %v10907_v6, 9  ;;  %v3604_v9 = vor.u32 %v3603_v31, %v3600_v5  ;;  %v10141_v45 = vld [vmem:[%s13246_s10 + $0xb0] sm:$0xf]  ;;  %v13125_v30 = vld [vmem:[%s15863_s1 + $0x628] sm:$0xff]  }
 0x1cd   : > { %v3591_v25 = vrot.slane %v3590_v40, 4  ;;  %v3609_v10 = vrot.slane %v3607_v59, 5  ;;  %11934 = vmatprep.subr.bf16.mxu1 %v13118_v20  ;;  %v8144_v14 = vrot.slane %v15090_v3, 5  ;;  %v3612_v63 = vshrl.u32 %v10137_v18, 16  ;;  %v15340_v5 = vld [vmem:[%s13246_s10 + $0xb4] sm:$0x1] }
 0x1ce   : > { %11918 = vmatprep.mubr.bf16.mxu1 %v10171_v21  ;;  %v8141_v23 = vsel %vm13627_vm5, %v10922_v58, %v8140_v38  ;;  %v3605_v15 = vrot.slane %v3604_v9, 4  ;;  %v3615_v7 = vshll.u32 %v10137_v18, 16  ;;  %v3621_v12 = vshll.u32 %v15315_v56, 16  ;;  %v10143_v31 = vld [vmem:[%s13246_s10 + $0xb8] sm:$0xf] }
 0x1cf   : > { %12351 = vmatpush3.bf16.msra.mxu0 %v13119_v50  ;;  %v3596_v57 = vsel %vm13288_vm2, %v3591_v25, %v3595_v46  ;;  %v8145_v3 = vsel %vm13627_vm5, %v10923_v24, %v8144_v14  ;;  %v10139_v50 = vld [vmem:[%s13246_s10 + $0xa8] sm:$0xf]  ;;  %v3614_v51 = vrot.slane %v3612_v63, 4  ;;  %v3635_v27 = vshll.u32 %v15323_v54, 16  ;;  %v15345_v59 = vld [vmem:[%s13246_s10 + $0xbc] sm:$0x1] }
 0x1d0   : > { %12352 = vmatprep.subr.bf16.mxu0 %v13121_v29  ;;  %v10951_v0 = vcombine.low %v8141_v23, %v8145_v3  ;;  %11935 = vmatpush3.bf16.msra.mxu1 %v13118_v20  ;;  %v3626_v47 = vshrl.u32 %v10139_v50, 16  ;;  %v3610_v44 = vsel %vm13288_vm2, %v3605_v15, %v3609_v10  ;;  %v3629_v19 = vshll.u32 %v10139_v50, 16  ;;  %v13122_v20 = vld [vmem:[%s15863_s1 + $0x2e0] sm:$0xff]   ;;  %v10911_v15 = vld [vmem:[%s13246_s10 + $0x110] sm:$0xe] }
 0x1d1   : > { %11936 = vmatprep.subr.bf16.mxu1 %v13120_v2  ;;  %v10172_v37 = vcombine.low %v3596_v57, %v3610_v44  ;;  %v3617_v32 = vrot.slane %v3615_v7, 5  ;;  %v3623_v13 = vrot.slane %v3621_v12, 5  ;;  %v3637_v26 = vrot.slane %v3635_v27, 5  ;;  %v13126_v7 = vld [vmem:[%s15863_s1 + $0x2f0] sm:$0xff]  }
 0x1d2   : > { %12335 = vmatmul.mubr.bf16.gmra.mrb[4].mxu0 %v10951_v0  ;;  %v3628_v1 = vrot.slane %v3626_v47, 4  ;;  %v10924_v33 = vrot.slane %v10908_v35, 9  ;;  %v8148_v46 = vrot.slane %v15110_v61, 5  ;;  %v10925_v11 = vrot.slane %v10909_v43, 9 }
 0x1d3   : > { %12353 = vmatpush3.bf16.msra.mxu0 %v13121_v29  ;;  %v3631_v29 = vrot.slane %v3629_v19, 5  ;;  %11919 = vmatmul.mubr.bf16.gmra.mrb[4].mxu1 %v10172_v37  ;;  %v3618_v6 = vor.u32 %v3617_v32, %v3614_v51  ;;  %v8152_v40 = vrot.slane %v15115_v28, 5  ;;  %v3640_v38 = vshrl.u32 %v10141_v45, 16  ;;  %v10910_v28 = vld [vmem:[%s13246_s10 + $0x108] sm:$0xe]  ;;  %v13129_v37 = vld [vmem:[%s15863_s1 + $0x638] sm:$0xff]  }
 0x1d4   : > { %12354 = vmatprep.subr.bf16.mxu0 %v13123_v62  ;;  %11937 = vmatpush3.bf16.msra.mxu1 %v13120_v2  ;;  %v8149_v58 = vsel %vm13627_vm5, %v10924_v33, %v8148_v46  ;;  %v3643_v24 = vshll.u32 %v10141_v45, 16  ;;  %v3649_v9 = vshll.u32 %v15340_v5, 16  ;;  %v3654_v10 = vshrl.u32 %v10143_v31, 16  ;;  %v13124_v2 = vld [vmem:[%s15863_s1 + $0x2e8] sm:$0xff]  }
 0x1d5   : > { %v3632_v21 = vor.u32 %v3631_v29, %v3628_v1  ;;  %v3619_v61 = vrot.slane %v3618_v6, 4  ;;  %v8153_v25 = vsel %vm13627_vm5, %v10925_v11, %v8152_v40  ;;  %11938 = vmatprep.subr.bf16.mxu1 %v13122_v20  ;;  %v3642_v18 = vrot.slane %v3640_v38, 4  ;;  %v15378_v29 = vld [vmem:[%s13246_s10 + $0xc4] sm:$0x1]  ;;  %v15389_v46 = vld [vmem:[%s13246_s10 + $0xcc] sm:$0x1] }
 0x1d6   : > { %v10952_v23 = vcombine.low %v8149_v58, %v8153_v25  ;;  %v3645_v57 = vrot.slane %v3643_v24, 5  ;;  %v3651_v50 = vrot.slane %v3649_v9, 5  ;;  %v3656_v63 = vrot.slane %v3654_v10, 4  ;;  %v10912_v38 = vld [vmem:[%s13246_s10 + $0x118] sm:$0xe]  ;;  %v15396_v24 = vld [vmem:[%s15863_s1 + $0x640] sm:$0xff]  }
 0x1d7   : > { %12355 = vmatpush3.bf16.msra.mxu0 %v13123_v62  ;;  %v3633_v14 = vrot.slane %v3632_v21, 4  ;;  %v13127_v62 = vld [vmem:[%s15863_s1 + $0x630] sm:$0xff]   ;;  %v3624_v3 = vsel %vm13288_vm2, %v3619_v61, %v3623_v13  ;;  %v3657_v0 = vshll.u32 %v10143_v31, 16  ;;  %v3663_v35 = vshll.u32 %v15345_v59, 16 }
 0x1d8   : > { %12356 = vmatprep.subr.bf16.mxu0 %v13125_v30  ;;  %12338 = vmatprep.mubr.bf16.mxu0 %v10952_v23  ;;  %v3646_v47 = vor.u32 %v3645_v57, %v3642_v18  ;;  %v10926_v44 = vrot.slane %v10910_v28, 9  ;;  %v8156_v27 = vrot.slane %v15132_v41, 5  ;;  %v10927_v43 = vrot.slane %v10911_v15, 9  ;;  %v10913_v28 = vld [vmem:[%s13246_s10 + $0x120] sm:$0xe] }
 0x1d9   : > { %v3638_v12 = vsel %vm13288_vm2, %v3633_v14, %v3637_v26  ;;  %11939 = vmatpush3.bf16.msra.mxu1 %v13122_v20  ;;  %v3659_v19 = vrot.slane %v3657_v0, 5  ;;  %v3665_v13 = vrot.slane %v3663_v35, 5  ;;  %v8160_v1 = vrot.slane %v15139_v53, 5  ;;  %v13128_v26 = vld [vmem:[%s15863_s1 + $0x2f8] sm:$0xff]   ;;  %v10149_v57 = vld [vmem:[%s13246_s10 + $0xd0] sm:$0xf] }
 0x1da   : > { %v10173_v51 = vcombine.low %v3624_v3, %v3638_v12  ;;  %11940 = vmatprep.subr.bf16.mxu1 %v13124_v2  ;;  %v3647_v32 = vrot.slane %v3646_v47, 4  ;;  %v8164_v20 = vrot.slane %v15159_v48, 5  ;;  %v8157_v41 = vsel %vm13627_vm5, %v10926_v44, %v8156_v27  ;;  %v10147_v48 = vld [vmem:[%s13246_s10 + $0xc8] sm:$0xf]  ;;  %v10151_v0 = vld [vmem:[%s13246_s10 + $0xd8] sm:$0xf] }
 0x1db   : > { %12357 = vmatpush3.bf16.msra.mxu0 %v13125_v30  ;;  %v3660_v45 = vor.u32 %v3659_v19, %v3656_v63  ;;  %v10145_v30 = vld [vmem:[%s13246_s10 + $0xc0] sm:$0xf]  ;;  %v8161_v53 = vsel %vm13627_vm5, %v10927_v43, %v8160_v1  ;;  %v3677_v21 = vshll.u32 %v15378_v29, 16  ;;  %v3682_v58 = vshrl.u32 %v10147_v48, 16  ;;  %v15404_v63 = vld [vmem:[%s13246_s10 + $0xd4] sm:$0x1] }
 0x1dc   : > { %12358 = vmatprep.subr.bf16.mxu0 %v13127_v62  ;;  %11922 = vmatprep.mubr.bf16.mxu1 %v10173_v51  ;;  %v3652_v33 = vsel %vm13288_vm2, %v3647_v32, %v3651_v50  ;;  %v3668_v6 = vshrl.u32 %v10145_v30, 16  ;;  %v3671_v11 = vshll.u32 %v10145_v30, 16  ;;  %v10953_v31 = vcombine.low %v8157_v41, %v8161_v53  ;;  %v15411_v44 = vld [vmem:[%s13246_s10 + $0xdc] sm:$0x1]  ;;  %v15416_v19 = vld [vmem:[%s15863_s1 + $0x300] sm:$0xff]  }
 0x1dd   : > { %11941 = vmatpush3.bf16.msra.mxu1 %v13124_v2  ;;  %v3661_v40 = vrot.slane %v3660_v45, 4  ;;  %v3685_v9 = vshll.u32 %v10147_v48, 16  ;;  %v3691_v10 = vshll.u32 %v15389_v46, 16  ;;  %v3679_v14 = vrot.slane %v3677_v21, 5  ;;  %v10915_v53 = vld [vmem:[%s13246_s10 + $0x130] sm:$0xe] }
 0x1de   : > { %11942 = vmatprep.subr.bf16.mxu1 %v13126_v7  ;;  %v3670_v61 = vrot.slane %v3668_v6, 4  ;;  %v3673_v25 = vrot.slane %v3671_v11, 5  ;;  %12339 = vmatmul.mubr.bf16.gmra.mrb[8].mxu0 %v10953_v31  ;;  %v3684_v23 = vrot.slane %v3682_v58, 4  ;;  %v10928_v18 = vrot.slane %v10912_v38, 9 }
 0x1df   : > { %12359 = vmatpush3.bf16.msra.mxu0 %v13127_v62  ;;  %v3666_v2 = vsel %vm13288_vm2, %v3661_v40, %v3665_v13  ;;  %v3687_v3 = vrot.slane %v3685_v9, 5  ;;  %v3693_v50 = vrot.slane %v3691_v10, 5  ;;  %v10929_v47 = vrot.slane %v10913_v28, 9 }
 0x1e0   : > { %12360 = vmatprep.subr.bf16.mxu0 %v13129_v37  ;;  %v10174_v15 = vcombine.low %v3652_v33, %v3666_v2  ;;  %v3674_v62 = vor.u32 %v3673_v25, %v3670_v61  ;;  %v8165_v12 = vsel %vm13627_vm5, %v10928_v18, %v8164_v20  ;;  %v8168_v35 = vrot.slane %v15164_v52, 5  ;;  %v10914_v33 = vld [vmem:[%s13246_s10 + $0x128] sm:$0xe]  ;;  %v10186_v18 = vld [vmem:[%s13246_s10 + $0x58] sm:$0xe] }
 0x1e1   : > { %11943 = vmatpush3.bf16.msra.mxu1 %v13126_v7  ;;  %v3696_v51 = vshrl.u32 %v10149_v57, 16  ;;  %v3688_v27 = vor.u32 %v3687_v3, %v3684_v23  ;;  %v3699_v43 = vshll.u32 %v10149_v57, 16  ;;  %v3705_v32 = vshll.u32 %v15404_v63, 16 }
 0x1e2   : > { %11944 = vmatprep.subr.bf16.mxu1 %v13128_v26  ;;  %11923 = vmatmul.mubr.bf16.gmra.mrb[8].mxu1 %v10174_v15  ;;  %v3675_v7 = vrot.slane %v3674_v62, 4  ;;  %v8169_v52 = vsel %vm13627_vm5, %v10929_v47, %v8168_v35  ;;  %v3713_v1 = vshll.u32 %v10151_v0, 16  ;;  %v3719_v40 = vshll.u32 %v15411_v44, 16  ;;  %v13130_v35 = vld [vmem:[%s13246_s10 + $0xb0] ss:$8 sps:$4 sm:$0xff]  }
 0x1e3   : > { %12361 = vmatpush3.bf16.msra.mxu0 %v13129_v37  ;;  %v3698_v13 = vrot.slane %v3696_v51, 4  ;;  %v3710_v37 = vshrl.u32 %v10151_v0, 16  ;;  %v3689_v45 = vrot.slane %v3688_v27, 4  ;;  %v10954_v41 = vcombine.low %v8165_v12, %v8169_v52 }
 0x1e4   : > { %12378 = vmatprep.subr.bf16.mxu0 %v15396_v24  ;;  %v3680_v20 = vsel %vm13288_vm2, %v3675_v7, %v3679_v14  ;;  %v3701_v30 = vrot.slane %v3699_v43, 5  ;;  %v3707_v48 = vrot.slane %v3705_v32, 5  ;;  %v3715_v11 = vrot.slane %v3713_v1, 5  ;;  %v10185_v14 = vld [vmem:[%s13246_s10 + $0x50] sm:$0xe] }
 0x1e5   : > { %11945 = vmatpush3.bf16.msra.mxu1 %v13128_v26  ;;  %v3712_v6 = vrot.slane %v3710_v37, 4  ;;  %v3694_v31 = vsel %vm13288_vm2, %v3689_v45, %v3693_v50  ;;  %12342 = vmatprep.mubr.bf16.mxu0 %v10954_v41  ;;  %v10930_v58 = vrot.slane %v10914_v33, 9  ;;  %v8172_v38 = vrot.slane %v15183_v34, 5  ;;  %v13132_v1 = vld [vmem:[%s13246_s10 + $0xc0] ss:$8 sps:$4 sm:$0xff]  }
 0x1e6   : > { %11962 = vmatprep.subr.bf16.mxu1 %v15416_v19  ;;  %v3702_v21 = vor.u32 %v3701_v30, %v3698_v13  ;;  %v10175_v61 = vcombine.low %v3680_v20, %v3694_v31  ;;  %v3721_v26 = vrot.slane %v3719_v40, 5  ;;  %v10931_v9 = vrot.slane %v10915_v53, 9  ;;  %v10189_v20 = vld [vmem:[%s13246_s10 + $0x70] sm:$0xe]  ;;  %v10190_v45 = vld [vmem:[%s13246_s10 + $0x78] sm:$0xe] }
 0x1e7   : > { %v3716_v25 = vor.u32 %v3715_v11, %v3712_v6  ;;  %v8173_v28 = vsel %vm13627_vm5, %v10930_v58, %v8172_v38  ;;  %v8176_v2 = vrot.slane %v15187_v17, 5  ;;  %v10201_v57 = vrot.slane %v10185_v14, 9  ;;  %v10191_v53 = vld [vmem:[%s13246_s10 + $0x80] sm:$0xe]  ;;  %v13136_v40 = vld [vmem:[%s13246_s10 + $0xd0] ss:$8 sps:$4 sm:$0xff]  }
 0x1e8   : > { %v3703_v10 = vrot.slane %v3702_v21, 4  ;;  %11926 = vmatprep.mubr.bf16.mxu1 %v10175_v61  ;;  %v3983_v34 = vrot.slane %v15203_v39, 5  ;;  %v3987_v15 = vrot.slane %v15208_v8, 5  ;;  %v10202_v50 = vrot.slane %v10186_v18, 9  ;;  %v10187_v39 = vld [vmem:[%s13246_s10 + $0x60] sm:$0xe] }
 0x1e9   : > { %v3717_v23 = vrot.slane %v3716_v25, 4  ;;  %v8177_v3 = vsel %vm13627_vm5, %v10931_v9, %v8176_v2  ;;  %v3991_v17 = vrot.slane %v15220_v49, 5  ;;  %v10188_v8 = vld [vmem:[%s13246_s10 + $0x68] sm:$0xe]  ;;  %v10203_v27 = vrot.slane %v10187_v39, 9 }
 0x1ea   : > { %v3708_v62 = vsel %vm13288_vm2, %v3703_v10, %v3707_v48  ;;  %v10955_v12 = vcombine.low %v8173_v28, %v8177_v3  ;;  %v3984_v47 = vsel %vm13627_vm5, %v10201_v57, %v3983_v34  ;;  %v3988_v7 = vsel %vm13627_vm5, %v10202_v50, %v3987_v15  ;;  %v10192_v31 = vld [vmem:[%s13246_s10 + $0x88] sm:$0xe]  ;;  %v10193_v10 = vld [vmem:[%s13246_s10 + $0xa0] sm:$0xe]  ;;  %v10195_v57 = vld [vmem:[%s13246_s10 + $0xb0] sm:$0xe] }
 0x1eb   : > { %v3722_v0 = vsel %vm13288_vm2, %v3717_v23, %v3721_v26  ;;  %v10204_v43 = vrot.slane %v10188_v8, 9  ;;  %v10233_v49 = vcombine.low %v3984_v47, %v3988_v7  ;;  %v3995_v32 = vrot.slane %v15224_v60, 5  ;;  %v13134_v58 = vld [vmem:[%s15863_s1 + $0x308] sm:$0xff]   ;;  %v10196_v34 = vld [vmem:[%s13246_s10 + $0xb8] sm:$0xe] }
 0x1ec   : > { %v10176_v51 = vcombine.low %v3708_v62, %v3722_v0  ;;  %12343 = vmatmul.mubr.bf16.gmra.mrb[12].mxu0 %v10955_v12  ;;  %v3999_v52 = vrot.slane %v15253_v36, 5  ;;  %v3992_v13 = vsel %vm13627_vm5, %v10203_v27, %v3991_v17  ;;  %v10205_v41 = vrot.slane %v10189_v20, 9  ;;  %v13135_v36 = vld [vmem:[%s15863_s1 + $0x648] sm:$0xff]   ;;  %v13140_v0 = vld [vmem:[%s15863_s1 + $0x318] sm:$0xff]   ;;  %v10197_v39 = vld [vmem:[%s13246_s10 + $0xc0] sm:$0xe] }
 0x1ed   : > { %12362 = vmatprep.mubr.bf16.mxu0 %v13130_v35  ;;  %v3996_v37 = vsel %vm13627_vm5, %v10204_v43, %v3995_v32  ;;  %v10206_v30 = vrot.slane %v10190_v45, 9  ;;  %v4003_v60 = vrot.slane %v15257_v22, 5  ;;  %v4007_v48 = vrot.slane %v15274_v55, 5  ;;  %v13139_v55 = vld [vmem:[%s15863_s1 + $0x650] sm:$0xff]   ;;  %v13138_v2 = vld [vmem:[%s13246_s10 + $0xe0] ss:$8 sps:$4 sm:$0xff]  }
 0x1ee   : > { %11927 = vmatmul.mubr.bf16.gmra.mrb[12].mxu1 %v10176_v51  ;;  %v10234_v33 = vcombine.low %v3992_v13, %v3996_v37  ;;  %v4000_v6 = vsel %vm13627_vm5, %v10205_v41, %v3999_v52  ;;  %v10207_v21 = vrot.slane %v10191_v53, 9  ;;  %v4011_v22 = vrot.slane %v15283_v16, 5  ;;  %v13137_v16 = vld [vmem:[%s15863_s1 + $0x310] sm:$0xff]   ;;  %v13142_v3 = vld [vmem:[%s13246_s10 + $0x100] ss:$8 sps:$4 sm:$0xff]  }
 0x1ef   : > { %11946 = vmatprep.mubr.bf16.mxu1 %v10233_v49  ;;  %v4004_v11 = vsel %vm13627_vm5, %v10206_v30, %v4003_v60  ;;  %v10208_v61 = vrot.slane %v10192_v31, 9  ;;  %v4015_v25 = vrot.slane %v15315_v56, 5  ;;  %v10194_v56 = vld [vmem:[%s13246_s10 + $0xa8] sm:$0xe]  ;;  %v4019_v28 = vrot.slane %v15323_v54, 5  ;;  %v13143_v35 = vld [vmem:[%s15863_s1 + $0x320] sm:$0xff]  }
 0x1f0   : > { %v10235_v38 = vcombine.low %v4000_v6, %v4004_v11  ;;  %v4008_v26 = vsel %vm13627_vm5, %v10207_v21, %v4007_v48  ;;  %v10210_v14 = vrot.slane %v10194_v56, 9  ;;  %v4023_v15 = vrot.slane %v15340_v5, 5  ;;  %v10198_v8 = vld [vmem:[%s13246_s10 + $0xc8] sm:$0xe]  ;;  %v13144_v49 = vld [vmem:[%s13246_s10 + $0x110] ss:$8 sps:$4 sm:$0xff]  }
 0x1f1   : > { %v4012_v9 = vsel %vm13627_vm5, %v10208_v61, %v4011_v22  ;;  %v4027_v62 = vrot.slane %v15345_v59, 5  ;;  %v10211_v50 = vrot.slane %v10195_v57, 9  ;;  %v10212_v17 = vrot.slane %v10196_v34, 9  ;;  %v13147_v32 = vld [vmem:[%s15863_s1 + $0x668] sm:$0xff]   ;;  %v10199_v52 = vld [vmem:[%s13246_s10 + $0xd0] sm:$0xe] }
 0x1f2   : > { %v10236_v23 = vcombine.low %v4008_v26, %v4012_v9  ;;  %v4020_v54 = vsel %vm13627_vm5, %v10210_v14, %v4019_v28  ;;  %v4031_v5 = vrot.slane %v15378_v29, 5  ;;  %v13145_v29 = vld [vmem:[%s15863_s1 + $0x660] sm:$0xff]   ;;  %v4035_v51 = vrot.slane %v15389_v46, 5  ;;  %v10200_v13 = vld [vmem:[%s13246_s10 + $0xd8] sm:$0xe]  ;;  %v13146_v37 = vld [vmem:[%s15863_s1 + $0x328] sm:$0xff]  }
 0x1f3   : > { %v4024_v59 = vsel %vm13627_vm5, %v10211_v50, %v4023_v15  ;;  %v4028_v47 = vsel %vm13627_vm5, %v10212_v17, %v4027_v62  ;;  %v10213_v7 = vrot.slane %v10197_v39, 9  ;;  %v10214_v27 = vrot.slane %v10198_v8, 9  ;;  %v13150_v48 = vld [vmem:[%s13246_s10 + $0x130] ss:$8 sps:$4 sm:$0xff]   ;;  %v15552_v11 = vld [vmem:[%s13246_s10 + $0xb4] sm:$0x1] }
 0x1f4   : > { %12363 = vmatmul.mubr.bf16.vlgmr.msra.gmra.mrb[0].mxu0 %v13132_v1  ;;  %v10238_v43 = vcombine.low %v4024_v59, %v4028_v47  ;;  %v10215_v20 = vrot.slane %v10199_v52, 9  ;;  %v4039_v45 = vrot.slane %v15404_v63, 5  ;;  %v10216_v41 = vrot.slane %v10200_v13, 9  ;;  %v13149_v63 = vld [vmem:[%s15863_s1 + $0x330] sm:$0xff]   ;;  %v15556_v31 = vld [vmem:[%s13246_s10 + $0xbc] sm:$0x1] }
 0x1f5   : > { %12379 = vmatpush3.bf16.msra.mxu0 %v15396_v24  ;;  %v10209_v24 = vrot.slane %v10193_v10, 9  ;;  %12366 = vmatprep.mubr.bf16.mxu0 %v13136_v40  ;;  %v4032_v46 = vsel %vm13627_vm5, %v10213_v7, %v4031_v5  ;;  %v4036_v1 = vsel %vm13627_vm5, %v10214_v27, %v4035_v51  ;;  %v4043_v30 = vrot.slane %v15411_v44, 5  ;;  %v11015_v6 = vld [vmem:[%s13246_s10 + $0xb0] sm:$0xf]  ;;  %v11017_v40 = vld [vmem:[%s13246_s10 + $0xb8] sm:$0xf] }
 0x1f6   : > { %11947 = vmatmul.mubr.bf16.vlgmr.msra.gmra.mrb[0].mxu1 %v10234_v33  ;;  %12380 = vmatprep.subr.bf16.mxu0 %v13135_v36  ;;  %v10239_v60 = vcombine.low %v4032_v46, %v4036_v1  ;;  %v13148_v33 = vld [vmem:[%s13246_s10 + $0x120] ss:$8 sps:$4 sm:$0xff]   ;;  %v4040_v44 = vsel %vm13627_vm5, %v10215_v20, %v4039_v45  ;;  %v8666_v21 = vshrl.u32 %v11015_v6, 16  ;;  %v8669_v22 = vshll.u32 %v11015_v6, 16  ;;  %v13152_v26 = vld [vmem:[%s15863_s1 + $0x338] sm:$0xff]  }
 0x1f7   : > { %11963 = vmatpush3.bf16.msra.mxu1 %v15416_v19  ;;  %11950 = vmatprep.mubr.bf16.mxu1 %v10235_v38  ;;  %v13141_v19 = vld [vmem:[%s15863_s1 + $0x658] sm:$0xff]   ;;  %v4016_v18 = vsel %vm13627_vm5, %v10209_v24, %v4015_v25  ;;  %v4044_v53 = vsel %vm13627_vm5, %v10216_v41, %v4043_v30  ;;  %v8675_v38 = vshll.u32 %v15552_v11, 16  ;;  %v8680_v61 = vshrl.u32 %v11017_v40, 16  ;;  %v11019_v14 = vld [vmem:[%s13246_s10 + $0xc0] sm:$0xf] }
 0x1f8   : > { %11964 = vmatprep.subr.bf16.mxu1 %v13134_v58  ;;  %v10237_v12 = vcombine.low %v4016_v18, %v4020_v54  ;;  %v8689_v25 = vshll.u32 %v15556_v31, 16  ;;  %v13154_v9 = vld [vmem:[%s13246_s10 + $0x58] ss:$8 sps:$4 sm:$0xff]   ;;  %v8668_v10 = vrot.slane %v8666_v21, 4  ;;  %v8671_v56 = vrot.slane %v8669_v22, 5 }
 0x1f9   : > { %12381 = vmatpush3.bf16.msra.mxu0 %v13135_v36  ;;  %v13151_v36 = vld [vmem:[%s15863_s1 + $0x670] sm:$0xff]   ;;  %v8677_v24 = vrot.slane %v8675_v38, 5  ;;  %v8682_v28 = vrot.slane %v8680_v61, 4  ;;  %v15569_v18 = vld [vmem:[%s13246_s10 + $0xc4] sm:$0x1]  ;;  %v8694_v62 = vshrl.u32 %v11019_v14, 16 }
 0x1fa   : > { %12382 = vmatprep.subr.bf16.mxu0 %v13139_v55  ;;  %v11021_v57 = vld [vmem:[%s13246_s10 + $0xc8] sm:$0xf]  ;;  %v15573_v34 = vld [vmem:[%s13246_s10 + $0xcc] sm:$0x1]  ;;  %v8697_v54 = vshll.u32 %v11019_v14, 16  ;;  %v15579_v50 = vld [vmem:[%s15863_s1 + $0x680] sm:$0xff]  }
 0x1fb   : > { %11965 = vmatpush3.bf16.msra.mxu1 %v13134_v58  ;;  %v13153_v58 = vld [vmem:[%s15863_s1 + $0x678] sm:$0xff]   ;;  %v8717_v5 = vshll.u32 %v15573_v34, 16  ;;  %v8696_v47 = vrot.slane %v8694_v62, 4  ;;  %v13155_v8 = vld [vmem:[%s13246_s10 + $0x68] ss:$8 sps:$4 sm:$0xff]  }
 0x1fc   : > { %11966 = vmatprep.subr.bf16.mxu1 %v13137_v16  ;;  %12367 = vmatmul.mubr.bf16.gmra.mrb[4].mxu0 %v13138_v2  ;;  %v11023_v46 = vld [vmem:[%s13246_s10 + $0xd0] sm:$0xf]  ;;  %v15595_v1 = vld [vmem:[%s13246_s10 + $0xd4] sm:$0x1]  ;;  %v11025_v20 = vld [vmem:[%s13246_s10 + $0xd8] sm:$0xf] }
 0x1fd   : > { %12383 = vmatpush3.bf16.msra.mxu0 %v13139_v55  ;;  %12370 = vmatprep.mubr.bf16.mxu0 %v13142_v3  ;;  %v8683_v55 = vshll.u32 %v11017_v40, 16  ;;  %v8703_v3 = vshll.u32 %v15569_v18, 16  ;;  %v8719_v27 = vrot.slane %v8717_v5, 5  ;;  %v15600_v41 = vld [vmem:[%s13246_s10 + $0xdc] sm:$0x1]  ;;  %v8722_v30 = vshrl.u32 %v11023_v46, 16 }
 0x1fe   : > { %11951 = vmatmul.mubr.bf16.gmra.mrb[4].mxu1 %v10236_v23  ;;  %12384 = vmatprep.subr.bf16.mxu0 %v13141_v19  ;;  %v8672_v23 = vor.u32 %v8671_v56, %v8668_v10  ;;  %v13159_v56 = vld [vmem:[%s13246_s10 + $0x88] ss:$8 sps:$4 sm:$0xff]  }
 0x1ff   : > { %11967 = vmatpush3.bf16.msra.mxu1 %v13137_v16  ;;  %11954 = vmatprep.mubr.bf16.mxu1 %v10237_v12  ;;  %v10240_v16 = vcombine.low %v4040_v44, %v4044_v53  ;;  %v8685_v2 = vrot.slane %v8683_v55, 5  ;;  %v8711_v12 = vshll.u32 %v11021_v57, 16  ;;  %v8739_v44 = vshll.u32 %v11025_v20, 16  ;;  %v13160_v14 = vld [vmem:[%s15863_s1 + $0x690] sm:$0xff]  }
 0x200   : > { %11968 = vmatprep.subr.bf16.mxu1 %v13140_v0  ;;  %v8673_v17 = vrot.slane %v8672_v23, 4  ;;  %v8745_v53 = vshll.u32 %v15600_v41, 16  ;;  %v8724_v6 = vrot.slane %v8722_v30, 4 }
 0x201   : > { %12385 = vmatpush3.bf16.msra.mxu0 %v13141_v19  ;;  %v8691_v19 = vrot.slane %v8689_v25, 5  ;;  %v8686_v15 = vor.u32 %v8685_v2, %v8682_v28  ;;  %v8713_v7 = vrot.slane %v8711_v12, 5  ;;  %v8741_v38 = vrot.slane %v8739_v44, 5 }
 0x202   : > { %12386 = vmatprep.subr.bf16.mxu0 %v13145_v29  ;;  %v8678_v39 = vsel %vm13288_vm2, %v8673_v17, %v8677_v24  ;;  %v8747_v61 = vrot.slane %v8745_v53, 5  ;;  %v15618_v24 = vld [vmem:[%s13246_s10 + $0xec] sm:$0x1] }
 0x203   : > { %11969 = vmatpush3.bf16.msra.mxu1 %v13140_v0  ;;  %v8708_v0 = vshrl.u32 %v11021_v57, 16  ;;  %v8687_v59 = vrot.slane %v8686_v15, 4  ;;  %v8773_v62 = vshll.u32 %v15618_v24, 16 }
 0x204   : > { %11970 = vmatprep.subr.bf16.mxu1 %v13143_v35  ;;  %12371 = vmatmul.mubr.bf16.gmra.mrb[8].mxu0 %v13144_v49 }
 0x205   : > { %12387 = vmatpush3.bf16.msra.mxu0 %v13145_v29  ;;  %12374 = vmatprep.mubr.bf16.mxu0 %v13148_v33  ;;  %v8705_v29 = vrot.slane %v8703_v3, 5  ;;  %v8710_v51 = vrot.slane %v8708_v0, 4  ;;  %v8731_v33 = vshll.u32 %v15595_v1, 16 }
 0x206   : > { %11955 = vmatmul.mubr.bf16.gmra.mrb[8].mxu1 %v10238_v43  ;;  %12388 = vmatprep.subr.bf16.mxu0 %v13147_v32  ;;  %v8692_v43 = vsel %vm13288_vm2, %v8687_v59, %v8691_v19 }
 0x207   : > { %11971 = vmatpush3.bf16.msra.mxu1 %v13143_v35  ;;  %11958 = vmatprep.mubr.bf16.mxu1 %v10239_v60  ;;  %v8699_v35 = vrot.slane %v8697_v54, 5  ;;  %v11063_v52 = vcombine.low %v8678_v39, %v8692_v43  ;;  %v8714_v13 = vor.u32 %v8713_v7, %v8710_v51  ;;  %v8725_v60 = vshll.u32 %v11023_v46, 16  ;;  %v13162_v51 = vld [vmem:[%s13246_s10 + $0xa8] ss:$8 sps:$4 sm:$0xff]   ;;  %v11031_v7 = vld [vmem:[%s13246_s10 + $0x100] sm:$0xf] }
 0x208   : > { %11972 = vmatprep.subr.bf16.mxu1 %v13146_v37  ;;  %v8733_v21 = vrot.slane %v8731_v33, 5  ;;  %v8781_v46 = vshll.u32 %v11031_v7, 16 }
 0x209   : > { %12389 = vmatpush3.bf16.msra.mxu0 %v13147_v32  ;;  %v8700_v49 = vor.u32 %v8699_v35, %v8696_v47  ;;  %v13158_v32 = vld [vmem:[%s13246_s10 + $0x78] ss:$8 sps:$4 sm:$0xff]   ;;  %v8727_v40 = vrot.slane %v8725_v60, 5  ;;  %v8775_v47 = vrot.slane %v8773_v62, 5 }
 0x20a   : > { %12390 = vmatprep.subr.bf16.mxu0 %v13151_v36 }
 0x20b   : > { %11973 = vmatpush3.bf16.msra.mxu1 %v13146_v37  ;;  %v15591_v37 = vld [vmem:[%s15863_s1 + $0x688] sm:$0xff]   ;;  %v8701_v45 = vrot.slane %v8700_v49, 4  ;;  %v8728_v25 = vor.u32 %v8727_v40, %v8724_v6  ;;  %v13164_v6 = vld [vmem:[%s15863_s1 + $0x6a0] sm:$0xff]  }
 0x20c   : > { %11974 = vmatprep.subr.bf16.mxu1 %v13149_v63  ;;  %12375 = vmatmul.mubr.bf16.gmra.mrb[12].mxu0 %v13150_v48  ;;  %v11033_v49 = vld [vmem:[%s13246_s10 + $0x108] sm:$0xf] }
 0x20d   : > { %12391 = vmatpush3.bf16.msra.mxu0 %v13151_v36  ;;  %12394 = vmatprep.mubr.bf16.mxu0 %v11063_v52  ;;  %v8715_v36 = vrot.slane %v8714_v13, 4  ;;  %v8706_v48 = vsel %vm13288_vm2, %v8701_v45, %v8705_v29  ;;  %v8729_v23 = vrot.slane %v8728_v25, 4  ;;  %v8778_v52 = vshrl.u32 %v11031_v7, 16  ;;  %v15661_v25 = vld [vmem:[%s13246_s10 + $0x11c] sm:$0x1] }
 0x20e   : > { %11959 = vmatmul.mubr.bf16.gmra.mrb[12].mxu1 %v10240_v16  ;;  %12392 = vmatprep.subr.bf16.mxu0 %v13153_v58  ;;  %v11027_v16 = vld [vmem:[%s13246_s10 + $0xe0] sm:$0xf]  ;;  %v8792_v45 = vshrl.u32 %v11033_v49, 16  ;;  %v8795_v60 = vshll.u32 %v11033_v49, 16  ;;  %v15683_v49 = vld [vmem:[%s13246_s10 + $0x124] sm:$0x1] }
 0x20f   : > { %11975 = vmatpush3.bf16.msra.mxu1 %v13149_v63  ;;  %11978 = vmatprep.mubr.bf16.mxu1 %v13154_v9  ;;  %v8736_v63 = vshrl.u32 %v11025_v20, 16  ;;  %v8720_v22 = vsel %vm13288_vm2, %v8715_v36, %v8719_v27  ;;  %v11029_v9 = vld [vmem:[%s13246_s10 + $0xe8] sm:$0xf]  ;;  %v8750_v28 = vshrl.u32 %v11027_v16, 16  ;;  %v8753_v2 = vshll.u32 %v11027_v16, 16 }
 0x210   : > { %11976 = vmatprep.subr.bf16.mxu1 %v13152_v26  ;;  %v11064_v55 = vcombine.low %v8706_v48, %v8720_v22  ;;  %v8764_v57 = vshrl.u32 %v11029_v9, 16  ;;  %v8767_v15 = vshll.u32 %v11029_v9, 16  ;;  %v8734_v12 = vsel %vm13288_vm2, %v8729_v23, %v8733_v21  ;;  %v15638_v27 = vld [vmem:[%s13246_s10 + $0x104] sm:$0x1]  ;;  %v13163_v48 = vld [vmem:[%s13246_s10 + $0xb8] ss:$8 sps:$4 sm:$0xff]  }
 0x211   : > { %12393 = vmatpush3.bf16.msra.mxu0 %v13153_v58  ;;  %v8738_v58 = vrot.slane %v8736_v63, 4  ;;  %v8752_v3 = vrot.slane %v8750_v28, 4  ;;  %v8755_v17 = vrot.slane %v8753_v2, 5  ;;  %v8787_v20 = vshll.u32 %v15638_v27, 16 }
 0x212   : > { %12410 = vmatprep.subr.bf16.mxu0 %v15579_v50  ;;  %v8766_v5 = vrot.slane %v8764_v57, 4  ;;  %v8769_v59 = vrot.slane %v8767_v15, 5  ;;  %v8783_v63 = vrot.slane %v8781_v46, 5  ;;  %v8794_v53 = vrot.slane %v8792_v45, 4  ;;  %v11041_v46 = vld [vmem:[%s13246_s10 + $0x128] sm:$0xf] }
 0x213   : > { %11977 = vmatpush3.bf16.msra.mxu1 %v13152_v26  ;;  %v15612_v26 = vld [vmem:[%s13246_s10 + $0xe4] sm:$0x1]  ;;  %v8742_v10 = vor.u32 %v8741_v38, %v8738_v58  ;;  %v8756_v29 = vor.u32 %v8755_v17, %v8752_v3  ;;  %v8789_v44 = vrot.slane %v8787_v20, 5  ;;  %v8797_v21 = vrot.slane %v8795_v60, 5  ;;  %v11035_v58 = vld [vmem:[%s13246_s10 + $0x110] sm:$0xf] }
 0x214   : > { %12442 = vmatprep.subr.bf16.mxu1 %v15579_v50  ;;  %v8759_v19 = vshll.u32 %v15612_v26, 16  ;;  %12395 = vmatmul.mubr.bf16.vlgmr.msra.gmra.mrb[0].mxu0 %v11064_v55  ;;  %v15657_v38 = vld [vmem:[%s13246_s10 + $0x114] sm:$0x1]  ;;  %v11037_v55 = vld [vmem:[%s13246_s10 + $0x118] sm:$0xf]  ;;  %v8806_v16 = vshrl.u32 %v11035_v58, 16 }
 0x215   : > { %12411 = vmatpush3.bf16.msra.mxu0 %v15579_v50  ;;  %v8743_v54 = vrot.slane %v8742_v10, 4  ;;  %v8757_v43 = vrot.slane %v8756_v29, 4  ;;  %v8809_v9 = vshll.u32 %v11035_v58, 16  ;;  %v8798_v10 = vor.u32 %v8797_v21, %v8794_v53  ;;  %v15688_v20 = vld [vmem:[%s13246_s10 + $0x12c] sm:$0x1]  ;;  %v13169_v58 = vld [vmem:[%s15863_s1 + $0x6b8] sm:$0xff]  }
 0x216   : > { %11979 = vmatmul.mubr.bf16.vlgmr.msra.gmra.mrb[0].mxu1 %v13155_v8  ;;  %v8761_v0 = vrot.slane %v8759_v19, 5  ;;  %12412 = vmatprep.subr.bf16.mxu0 %v15591_v37  ;;  %v8770_v8 = vor.u32 %v8769_v59, %v8766_v5  ;;  %v8820_v28 = vshrl.u32 %v11037_v55, 16  ;;  %v8823_v2 = vshll.u32 %v11037_v55, 16  ;;  %v13165_v19 = vld [vmem:[%s15863_s1 + $0x6a8] sm:$0xff]  }
 0x217   : > { %12450 = vmatpush3.bf16.msra.mxu1 %v15579_v50  ;;  %11982 = vmatprep.mubr.bf16.mxu1 %v13158_v32  ;;  %v13161_v50 = vld [vmem:[%s15863_s1 + $0x698] sm:$0xff]   ;;  %v8748_v35 = vsel %vm13288_vm2, %v8743_v54, %v8747_v61  ;;  %v15643_v32 = vld [vmem:[%s13246_s10 + $0x10c] sm:$0x1]  ;;  %v8808_v23 = vrot.slane %v8806_v16, 4  ;;  %v8811_v57 = vrot.slane %v8809_v9, 5  ;;  %v8829_v15 = vshll.u32 %v15661_v25, 16 }
 0x218   : > { %12443 = vmatprep.subr.bf16.mxu1 %v15591_v37  ;;  %v11065_v39 = vcombine.low %v8734_v12, %v8748_v35  ;;  %v8771_v13 = vrot.slane %v8770_v8, 4  ;;  %v8762_v30 = vsel %vm13288_vm2, %v8757_v43, %v8761_v0  ;;  %v8801_v33 = vshll.u32 %v15643_v32, 16  ;;  %v11039_v43 = vld [vmem:[%s13246_s10 + $0x120] sm:$0xf]  ;;  %v11043_v16 = vld [vmem:[%s13246_s10 + $0x130] sm:$0xf] }
 0x219   : > { %12413 = vmatpush3.bf16.msra.mxu0 %v15591_v37  ;;  %v8799_v62 = vrot.slane %v8798_v10, 4  ;;  %v8822_v3 = vrot.slane %v8820_v28, 4  ;;  %v8825_v17 = vrot.slane %v8823_v2, 5  ;;  %v8812_v12 = vor.u32 %v8811_v57, %v8808_v23  ;;  %v15703_v9 = vld [vmem:[%s13246_s10 + $0x134] sm:$0x1] }
 0x21a   : > { %12398 = vmatprep.mubr.bf16.mxu0 %v11065_v39  ;;  %12414 = vmatprep.subr.bf16.mxu0 %v13160_v14  ;;  %v8776_v36 = vsel %vm13288_vm2, %v8771_v13, %v8775_v47  ;;  %v8803_v22 = vrot.slane %v8801_v33, 5  ;;  %v8831_v5 = vrot.slane %v8829_v15, 5  ;;  %v9189_v59 = vrot.slane %v15657_v38, 5  ;;  %v15674_v47 = vld [vmem:[%s15863_s1 + $0x6b0] sm:$0xff]   ;;  %v15707_v28 = vld [vmem:[%s13246_s10 + $0x13c] sm:$0x1] }
 0x21b   : > { %12451 = vmatpush3.bf16.msra.mxu1 %v15591_v37  ;;  %v8780_v37 = vrot.slane %v8778_v52, 4  ;;  %v11066_v40 = vcombine.low %v8762_v30, %v8776_v36  ;;  %v8826_v35 = vor.u32 %v8825_v17, %v8822_v3  ;;  %v9193_v29 = vrot.slane %v15661_v25, 5  ;;  %v13166_v39 = vld [vmem:[%s13246_s10 + $0xc8] ss:$8 sps:$4 sm:$0xff]  }
 0x21c   : > { %12444 = vmatprep.subr.bf16.mxu1 %v13160_v14  ;;  %v9149_v8 = vrot.slane %v15552_v11, 5  ;;  %v8813_v7 = vrot.slane %v8812_v12, 4  ;;  %v9153_v52 = vrot.slane %v15556_v31, 5  ;;  %v8834_v45 = vshrl.u32 %v11039_v43, 16 }
 0x21d   : > { %12415 = vmatpush3.bf16.msra.mxu0 %v13160_v14  ;;  %v8784_v61 = vor.u32 %v8783_v63, %v8780_v37  ;;  %v8827_v13 = vrot.slane %v8826_v35, 4  ;;  %v8837_v37 = vshll.u32 %v11039_v43, 16  ;;  %v8843_v60 = vshll.u32 %v15683_v49, 16 }
 0x21e   : > { %11983 = vmatmul.mubr.bf16.gmra.mrb[4].mxu1 %v13159_v56  ;;  %12416 = vmatprep.subr.bf16.mxu0 %v13161_v50  ;;  %v8815_v56 = vshll.u32 %v15657_v38, 16  ;;  %v8848_v33 = vshrl.u32 %v11041_v46, 16  ;;  %v8836_v63 = vrot.slane %v8834_v45, 4  ;;  %v8857_v53 = vshll.u32 %v15688_v20, 16  ;;  %v11080_v45 = vld [vmem:[%s13246_s10 + $0xb8] sm:$0xe] }
 0x21f   : > { %12452 = vmatpush3.bf16.msra.mxu1 %v13160_v14  ;;  %11986 = vmatprep.mubr.bf16.mxu1 %v13162_v51  ;;  %v8785_v14 = vrot.slane %v8784_v61, 4  ;;  %v8832_v36 = vsel %vm13288_vm2, %v8827_v13, %v8831_v5  ;;  %v8862_v2 = vshrl.u32 %v11043_v16, 16  ;;  %v8871_v57 = vshll.u32 %v15703_v9, 16  ;;  %v11093_v38 = vld [vmem:[%s13246_s10 + $0x130] sm:$0xe] }
 0x220   : > { %12445 = vmatprep.subr.bf16.mxu1 %v13161_v50  ;;  %12399 = vmatmul.mubr.bf16.gmra.mrb[4].mxu0 %v11066_v40  ;;  %v8817_v54 = vrot.slane %v8815_v56, 5  ;;  %v8845_v40 = vrot.slane %v8843_v60, 5  ;;  %v8850_v21 = vrot.slane %v8848_v33, 4  ;;  %v8859_v55 = vrot.slane %v8857_v53, 5  ;;  %v11045_v56 = vld [vmem:[%s13246_s10 + $0x138] sm:$0xf] }
 0x221   : > { %12417 = vmatpush3.bf16.msra.mxu0 %v13161_v50  ;;  %v8790_v0 = vsel %vm13288_vm2, %v8785_v14, %v8789_v44  ;;  %v8851_v44 = vshll.u32 %v11041_v46, 16  ;;  %v8865_v14 = vshll.u32 %v11043_v16, 16  ;;  %v8876_v15 = vshrl.u32 %v11045_v56, 16 }
 0x222   : > { %12418 = vmatprep.subr.bf16.mxu0 %v13164_v6  ;;  %v8818_v30 = vsel %vm13288_vm2, %v8813_v7, %v8817_v54  ;;  %v8864_v54 = vrot.slane %v8862_v2, 4  ;;  %v8885_v17 = vshll.u32 %v15707_v28, 16  ;;  %v8873_v12 = vrot.slane %v8871_v57, 5  ;;  %v11079_v7 = vld [vmem:[%s13246_s10 + $0xb0] sm:$0xe] }
 0x223   : > { %12453 = vmatpush3.bf16.msra.mxu1 %v13161_v50  ;;  %v8804_v50 = vsel %vm13288_vm2, %v8799_v62, %v8803_v22  ;;  %v13167_v22 = vld [vmem:[%s13246_s10 + $0xd8] ss:$8 sps:$4 sm:$0xff]   ;;  %v8853_v61 = vrot.slane %v8851_v44, 5  ;;  %v8879_v62 = vshll.u32 %v11045_v56, 16  ;;  %v8867_v3 = vrot.slane %v8865_v14, 5 }
 0x224   : > { %12446 = vmatprep.subr.bf16.mxu1 %v13164_v6  ;;  %v11067_v51 = vcombine.low %v8790_v0, %v8804_v50  ;;  %v8878_v5 = vrot.slane %v8876_v15, 4  ;;  %v9181_v43 = vrot.slane %v15638_v27, 5  ;;  %v9157_v31 = vrot.slane %v15569_v18, 5  ;;  %v11084_v56 = vld [vmem:[%s13246_s10 + $0xd8] sm:$0xe] }
 0x225   : > { %12419 = vmatpush3.bf16.msra.mxu0 %v13164_v6  ;;  %v8854_v23 = vor.u32 %v8853_v61, %v8850_v21  ;;  %v8881_v50 = vrot.slane %v8879_v62, 5  ;;  %v11091_v57 = vld [vmem:[%s13246_s10 + $0x120] sm:$0xe]  ;;  %v9201_v25 = vrot.slane %v15688_v20, 5  ;;  %v9209_v20 = vrot.slane %v15707_v28, 5 }
 0x226   : > { %11987 = vmatmul.mubr.bf16.gmra.mrb[8].mxu1 %v13163_v48  ;;  %12402 = vmatprep.mubr.bf16.mxu0 %v11067_v51  ;;  %v11068_v48 = vcombine.low %v8818_v30, %v8832_v36  ;;  %v8887_v51 = vrot.slane %v8885_v17, 5  ;;  %v11095_v30 = vrot.slane %v11079_v7, 9  ;;  %v11096_v36 = vrot.slane %v11080_v45, 9 }
 0x227   : > { %12454 = vmatpush3.bf16.msra.mxu1 %v13164_v6  ;;  %11990 = vmatprep.mubr.bf16.mxu1 %v13166_v39  ;;  %v8839_v6 = vrot.slane %v8837_v37, 5  ;;  %v8855_v0 = vrot.slane %v8854_v23, 4  ;;  %v8868_v39 = vor.u32 %v8867_v3, %v8864_v54  ;;  %v8882_v46 = vor.u32 %v8881_v50, %v8878_v5  ;;  %v11092_v54 = vld [vmem:[%s13246_s10 + $0x128] sm:$0xe] }
 0x228   : > { %12447 = vmatprep.subr.bf16.mxu1 %v13165_v19  ;;  %12420 = vmatprep.subr.bf16.mxu0 %v13165_v19  ;;  %v9185_v37 = vrot.slane %v15643_v32, 5  ;;  %v9150_v53 = vsel %vm13627_vm5, %v11095_v30, %v9149_v8  ;;  %v9154_v21 = vsel %vm13627_vm5, %v11096_v36, %v9153_v52  ;;  %v11090_v8 = vld [vmem:[%s13246_s10 + $0x118] sm:$0xe]  ;;  %v9161_v23 = vrot.slane %v15573_v34, 5 }
 0x229   : > { %12421 = vmatpush3.bf16.msra.mxu0 %v13165_v19  ;;  %v8840_v10 = vor.u32 %v8839_v6, %v8836_v63  ;;  %v8860_v13 = vsel %vm13288_vm2, %v8855_v0, %v8859_v55  ;;  %v8869_v33 = vrot.slane %v8868_v39, 4  ;;  %v11088_v63 = vld [vmem:[%s13246_s10 + $0x108] sm:$0xe]  ;;  %v8883_v27 = vrot.slane %v8882_v46, 4  ;;  %v11081_v6 = vld [vmem:[%s13246_s10 + $0xc0] sm:$0xe] }
 0x22a   : > { %12403 = vmatmul.mubr.bf16.gmra.mrb[8].mxu0 %v11068_v48  ;;  %12422 = vmatprep.subr.bf16.mxu0 %v15674_v47  ;;  %v11104_v48 = vrot.slane %v11088_v63, 9  ;;  %v11127_v55 = vcombine.low %v9150_v53, %v9154_v21  ;;  %v11106_v62 = vrot.slane %v11090_v8, 9  ;;  %v9165_v3 = vrot.slane %v15595_v1, 5  ;;  %v11085_v0 = vld [vmem:[%s13246_s10 + $0xe0] sm:$0xe] }
 0x22b   : > { %12455 = vmatpush3.bf16.msra.mxu1 %v13165_v19  ;;  %v8841_v19 = vrot.slane %v8840_v10, 4  ;;  %v8874_v32 = vsel %vm13288_vm2, %v8869_v33, %v8873_v12  ;;  %v8888_v61 = vsel %vm13288_vm2, %v8883_v27, %v8887_v51  ;;  %v11083_v10 = vld [vmem:[%s13246_s10 + $0xd0] sm:$0xe]  ;;  %v11100_v17 = vrot.slane %v11084_v56, 9  ;;  %v11086_v39 = vld [vmem:[%s13246_s10 + $0xe8] sm:$0xe] }
 0x22c   : > { %12448 = vmatprep.subr.bf16.mxu1 %v15674_v47  ;;  %v9186_v16 = vsel %vm13627_vm5, %v11104_v48, %v9185_v37  ;;  %v11070_v2 = vcombine.low %v8874_v32, %v8888_v61  ;;  %v9169_v34 = vrot.slane %v15600_v41, 5  ;;  %v9194_v50 = vsel %vm13627_vm5, %v11106_v62, %v9193_v29 }
 0x22d   : > { %12423 = vmatpush3.bf16.msra.mxu0 %v15674_v47  ;;  %v8846_v35 = vsel %vm13288_vm2, %v8841_v19, %v8845_v40  ;;  %v11082_v40 = vld [vmem:[%s13246_s10 + $0xc8] sm:$0xe]  ;;  %v11099_v19 = vrot.slane %v11083_v10, 9  ;;  %v9197_v7 = vrot.slane %v15683_v49, 5  ;;  %v11101_v46 = vrot.slane %v11085_v0, 9 }
 0x22e   : > { %11991 = vmatmul.mubr.bf16.gmra.mrb[12].mxu1 %v13167_v22  ;;  %12424 = vmatprep.subr.bf16.mxu0 %v13169_v58  ;;  %v11069_v60 = vcombine.low %v8846_v35, %v8860_v13  ;;  %v11097_v22 = vrot.slane %v11081_v6, 9  ;;  %v11098_v14 = vrot.slane %v11082_v40, 9  ;;  %v11107_v35 = vrot.slane %v11091_v57, 9 }
 0x22f   : > { %12456 = vmatpush3.bf16.msra.mxu1 %v15674_v47  ;;  %v11087_v47 = vld [vmem:[%s13246_s10 + $0x100] sm:$0xe]  ;;  %v9166_v1 = vsel %vm13627_vm5, %v11099_v19, %v9165_v3  ;;  %v9170_v41 = vsel %vm13627_vm5, %v11100_v17, %v9169_v34  ;;  %v9173_v45 = vrot.slane %v15612_v26, 5  ;;  %v11102_v30 = vrot.slane %v11086_v39, 9 }
 0x230   : > { %12449 = vmatprep.subr.bf16.mxu1 %v13169_v58  ;;  %v11103_v44 = vrot.slane %v11087_v47, 9  ;;  %12406 = vmatprep.mubr.bf16.mxu0 %v11069_v60  ;;  %v9158_v42 = vsel %vm13627_vm5, %v11097_v22, %v9157_v31  ;;  %v9162_v18 = vsel %vm13627_vm5, %v11098_v14, %v9161_v23  ;;  %v11129_v13 = vcombine.low %v9166_v1, %v9170_v41 }
 0x231   : > { %12425 = vmatpush3.bf16.msra.mxu0 %v13169_v58  ;;  %v11128_v12 = vcombine.low %v9158_v42, %v9162_v18  ;;  %v9198_v29 = vsel %vm13627_vm5, %v11107_v35, %v9197_v7  ;;  %v9177_v47 = vrot.slane %v15618_v24, 5  ;;  %v11109_v49 = vrot.slane %v11093_v38, 9 }
 0x232   : > { %v9182_v11 = vsel %vm13627_vm5, %v11103_v44, %v9181_v43  ;;  %12407 = vmatmul.mubr.bf16.gmra.mrb[12].mxu0 %v11070_v2  ;;  %v11094_v43 = vld [vmem:[%s13246_s10 + $0x138] sm:$0xe]  ;;  %v9205_v60 = vrot.slane %v15703_v9, 5  ;;  %v9174_v24 = vsel %vm13627_vm5, %v11101_v46, %v9173_v45 }
 0x233   : > { %12457 = vmatpush3.bf16.msra.mxu1 %v13169_v58  ;;  %v11089_v58 = vld [vmem:[%s13246_s10 + $0x110] sm:$0xe]  ;;  %v11131_v52 = vcombine.low %v9182_v11, %v9186_v16  ;;  %12426 = vmatprep.mubr.bf16.mxu0 %v11127_v55  ;;  %v11110_v33 = vrot.slane %v11094_v43, 9  ;;  %v9178_v44 = vsel %vm13627_vm5, %v11102_v30, %v9177_v47  ;;  %s9615_s10 = sshll.u32 %s13208_s13, 4  ;;  %s15906_s13 = smov (!%p159_p4, %s13208_s13), 3 }
 0x234   : > { %v11105_v15 = vrot.slane %v11089_v58, 9  ;;  %v9206_v63 = vsel %vm13627_vm5, %v11109_v49, %v9205_v60  ;;  %v11130_v27 = vcombine.low %v9174_v24, %v9178_v44  ;;  %p154_p3 = scmp.lt.s32.totalorder %s9615_s10, 63  ;;  %s9617_s21 = sshll.u32 %s15906_s13, 1 }
 0x235   : > { %12434 = vmatprep.mubr.bf16.mxu1 %v11131_v52  ;;  %v9210_v26 = vsel %vm13627_vm5, %v11110_v33, %v9209_v20  ;;  %s162_s24 = scalar_lea.vmem %s15865_s3, %s9617_s21 }
 0x236   : > { %v9190_v5 = vsel %vm13627_vm5, %v11105_v15, %v9189_v59  ;;  %v11108_v59 = vrot.slane %v11092_v54, 9  ;;  %v11134_v9 = vcombine.low %v9206_v63, %v9210_v26  ;;  %s15904_s10 = smov (!%p154_p3, %s9615_s10), 63 }
 0x237   : > { %v11132_v51 = vcombine.low %v9190_v5, %v9194_v50  ;;  %s9616_s17 = sshll.u32 %s15904_s10, 3 }
 0x238   : > { %v9202_v37 = vsel %vm13627_vm5, %v11108_v59, %v9201_v25  ;;  %s15802_s20 = scalar_lea.vmem %s15864_s2, %s9616_s17 }
 0x239   : > { %12435 = vmatmul.mubr.bf16.vlgmr.msra.gmra.mrb[16].mxu1 %v11132_v51  ;;  %v11133_v36 = vcombine.low %v9198_v29, %v9202_v37 }
 0x23a   : > { %12427 = vmatmul.mubr.bf16.vlgmr.msra.gmra.mrb[0].mxu0 %v11128_v12 }
 0x23b   : > { %12438 = vmatprep.mubr.bf16.mxu1 %v11133_v36  ;;  %12430 = vmatprep.mubr.bf16.mxu0 %v11129_v13 }
 0x241   : > { %12439 = vmatmul.mubr.bf16.gmra.mrb[20].mxu1 %v11134_v9 }
 0x242   : > { %12431 = vmatmul.mubr.bf16.gmra.mrb[4].mxu0 %v11130_v27 }
 0x2e9   : > { %v11980_v28 = vpop.f32.mrb[0].mxu1 }
 0x2ea   : > { %v4421_v53 = vpop.f32.mrb[1].mxu1 }
 0x2eb   : > { %v11981_v48 = vpop.f32.mrb[2].mxu1 }
 0x2ec   : > { %v4424_v6 = vpop.f32.mrb[3].mxu1 }
 0x2f1   : > { %v15790_v40 = vpop.f32.mrb[4].mxu1 }
 0x2f2   : > { %v15792_v32 = vpop.f32.mrb[5].mxu1 }
 0x2f3   : > { %v15794_v21 = vpop.f32.mrb[6].mxu1 }
 0x2f4   : > { %v15796_v11 = vpop.f32.mrb[7].mxu1 }
 0x2f9   : > { %v11988_v22 = vpop.f32.mrb[8].mxu1 }
 0x2fa   : > { %v4453_v4 = vpop.f32.mrb[9].mxu1 }
 0x2fb   : > { %v11989_v58 = vpop.f32.mrb[10].mxu1 }
 0x2fc   : > { %v4456_v8 = vpop.f32.mrb[11].mxu1 }
 0x2fd   : > { %v12404_v61 = vpop.f32.mrb[8].mxu0 }
 0x2fe   : > { %v12466_v16 = vadd.f32 %v12404_v61, %v11988_v22  ;;  %v9052_v31 = vpop.f32.mrb[9].mxu0 }
 0x2ff   : > { %v12468_v56 = vadd.f32 %v9052_v31, %v4453_v4  ;;  %v12405_v2 = vpop.f32.mrb[10].mxu0 }
 0x300   : > { %v12470_v14 = vadd.f32 %v12405_v2, %v11989_v58  ;;  %v9055_v23 = vpop.f32.mrb[11].mxu0 }
 0x301   : > { %v11992_v55 = vpop.f32.mrb[12].mxu1  ;;  %v12472_v42 = vadd.f32 %v9055_v23, %v4456_v8 }
 0x302   : > { %v4469_v10 = vpop.f32.mrb[13].mxu1 }
 0x303   : > { %v11993_v52 = vpop.f32.mrb[14].mxu1 }
 0x304   : > { %v4472_v57 = vpop.f32.mrb[15].mxu1 }
 0x305   : > { %v12408_v15 = vpop.f32.mrb[12].mxu0 }
 0x306   : > { %v12474_v62 = vadd.f32 %v12408_v15, %v11992_v55  ;;  %v9068_v19 = vpop.f32.mrb[13].mxu0 }
 0x307   : > { %v12476_v54 = vadd.f32 %v9068_v19, %v4469_v10  ;;  %v12409_v18 = vpop.f32.mrb[14].mxu0 }
 0x308   : > { %v12478_v3 = vadd.f32 %v12409_v18, %v11993_v52  ;;  %v9071_v17 = vpop.f32.mrb[15].mxu0 }
 0x309   : > { %v12480_v34 = vadd.f32 %v9071_v17, %v4472_v57 }
 0x30c   : > { %v12436_v0 = vpop.f32.mrb[16].mxu1 }
 0x30d   : > { %v15804_v12 = vadd.f32 %v12466_v16, %v12436_v0  ;;  %v9374_v5 = vpop.f32.mrb[17].mxu1  ;;  %v12428_v1 = vpop.f32.mrb[0].mxu0 }
 0x30e   : > { %v15806_v50 = vadd.f32 %v12468_v56, %v9374_v5  ;;  %v12437_v35 = vpop.f32.mrb[18].mxu1  ;;  %v12458_v7 = vadd.f32 %v12428_v1, %v11980_v28  ;;  %v9342_v38 = vpop.f32.mrb[1].mxu0 }
 0x30f   : > { %9431 = vst [vmem:[%s15802_s20 + $0x50] sm:$0xff] %v15804_v12  ;;  %v15810_v39 = vadd.f32 %v12470_v14, %v12437_v35  ;;  %v9377_v51 = vpop.f32.mrb[19].mxu1  ;;  %v12459_v43 = vadd.f32 %v9342_v38, %v4421_v53  ;;  %v12429_v13 = vpop.f32.mrb[2].mxu0 }
 0x310   : > { %9429 = vst [vmem:[%s15802_s20 + $0x40] sm:$0xff] %v15806_v50  ;;  %v15814_v41 = vadd.f32 %v12472_v42, %v9377_v51  ;;  %9423 = vst [vmem:[%s15802_s20 + $0x10] sm:$0xff] %v12458_v7  ;;  %v12460_v59 = vadd.f32 %v12429_v13, %v11981_v48  ;;  %v9345_v25 = vpop.f32.mrb[3].mxu0  ;;  %v9460_v63 = vmul.f32 %v12458_v7, %v12458_v7 }
 0x311   : > { %9432 = vst [vmem:[%s15802_s20 + $0x58] sm:$0xff] %v15810_v39  ;;  %9421 = vst [vmem:[%s15802_s20] sm:$0xff] %v12459_v43  ;;  %v12461_v46 = vadd.f32 %v9345_v25, %v4424_v6  ;;  %v9458_v47 = vmul.f32 %v12459_v43, %v12459_v43  ;;  %v9469_v17 = vmul.f32 %v15810_v39, %v15810_v39 }
 0x312   : > { %9430 = vst [vmem:[%s15802_s20 + $0x48] sm:$0xff] %v15814_v41  ;;  %9424 = vst [vmem:[%s15802_s20 + $0x18] sm:$0xff] %v12460_v59  ;;  %v9461_v53 = vmul.f32 %v12460_v59, %v12460_v59 }
 0x313   : > { %9422 = vst [vmem:[%s15802_s20 + $0x8] sm:$0xff] %v12461_v46  ;;  %v9437_v37 = vadd.f32 %v12461_v46, %v12459_v43  ;;  %v9459_v49 = vmul.f32 %v12461_v46, %v12461_v46 }
 0x314   : > { %v12440_v29 = vpop.f32.mrb[20].mxu1 }
 0x315   : > { %v15823_v45 = vadd.f32 %v12474_v62, %v12440_v29  ;;  %v9390_v30 = vpop.f32.mrb[21].mxu1  ;;  %v9438_v26 = vadd.f32 %v12458_v7, %v9437_v37  ;;  %v9474_v24 = vadd.f32 %v9459_v49, %v9458_v47  ;;  %v12432_v44 = vpop.f32.mrb[4].mxu0 }
 0x316   : > { %v12477_v60 = vadd.f32 %v12476_v54, %v9390_v30  ;;  %v12441_v33 = vpop.f32.mrb[22].mxu1  ;;  %v12462_v27 = vadd.f32 %v12432_v44, %v15790_v40  ;;  %v9358_v28 = vpop.f32.mrb[5].mxu0  ;;  %v9468_v54 = vmul.f32 %v15804_v12, %v15804_v12 }
 0x317   : > { %9435 = vst [vmem:[%s15802_s20 + $0x70] sm:$0xff] %v15823_v45  ;;  %v12479_v36 = vadd.f32 %v12478_v3, %v12441_v33  ;;  %v9393_v20 = vpop.f32.mrb[23].mxu1  ;;  %v9475_v48 = vadd.f32 %v9474_v24, %v9460_v63  ;;  %v12463_v6 = vadd.f32 %v9358_v28, %v15792_v32  ;;  %v9439_v22 = vadd.f32 %v12460_v59, %v9438_v26  ;;  %v12433_v4 = vpop.f32.mrb[6].mxu0 }
 0x318   : > { %9433 = vst [vmem:[%s15802_s20 + $0x60] sm:$0xff] %v12477_v60  ;;  %v12481_v9 = vadd.f32 %v12480_v34, %v9393_v20  ;;  %9427 = vst [vmem:[%s15802_s20 + $0x30] sm:$0xff] %v12462_v27  ;;  %v12464_v58 = vadd.f32 %v12433_v4, %v15794_v21  ;;  %v9361_v8 = vpop.f32.mrb[7].mxu0  ;;  %v9464_v2 = vmul.f32 %v12462_v27, %v12462_v27 }
 0x319   : > { %9436 = vst [vmem:[%s15802_s20 + $0x78] sm:$0xff] %v12479_v36  ;;  %9425 = vst [vmem:[%s15802_s20 + $0x20] sm:$0xff] %v12463_v6  ;;  %v9440_v61 = vadd.f32 %v12463_v6, %v9439_v22  ;;  %v9462_v55 = vmul.f32 %v12463_v6, %v12463_v6  ;;  %v9476_v16 = vadd.f32 %v9475_v48, %v9461_v53 }
 0x31a   : > { %9434 = vst [vmem:[%s15802_s20 + $0x68] sm:$0xff] %v12481_v9  ;;  %v12465_v40 = vadd.f32 %v9361_v8, %v15796_v11  ;;  %9428 = vst [vmem:[%s15802_s20 + $0x38] sm:$0xff] %v12464_v58  ;;  %v9465_v14 = vmul.f32 %v12464_v58, %v12464_v58  ;;  %v9466_v21 = vmul.f32 %v15806_v50, %v15806_v50 }
 0x31b   : > { %v9477_v31 = vadd.f32 %v9476_v16, %v9462_v55  ;;  %v9467_v11 = vmul.f32 %v15814_v41, %v15814_v41  ;;  %v9470_v5 = vmul.f32 %v12477_v60, %v12477_v60  ;;  %v9471_v1 = vmul.f32 %v12481_v9, %v12481_v9 }
 0x31c   : > { %9426 = vst [vmem:[%s15802_s20 + $0x28] sm:$0xff] %v12465_v40  ;;  %v9441_v10 = vadd.f32 %v12465_v40, %v9440_v61  ;;  %v9463_v56 = vmul.f32 %v12465_v40, %v12465_v40  ;;  %v9472_v7 = vmul.f32 %v15823_v45, %v15823_v45  ;;  %v9473_v43 = vmul.f32 %v12479_v36, %v12479_v36 }
 0x31e   : > { %v9442_v32 = vadd.f32 %v12462_v27, %v9441_v10  ;;  %v9478_v52 = vadd.f32 %v9477_v31, %v9463_v56 }
 0x320   : > { %v9443_v23 = vadd.f32 %v12464_v58, %v9442_v32  ;;  %v9479_v57 = vadd.f32 %v9478_v52, %v9464_v2 }
 0x322   : > { %v9444_v42 = vadd.f32 %v15806_v50, %v9443_v23  ;;  %v9480_v15 = vadd.f32 %v9479_v57, %v9465_v14 }
 0x324   : > { %v9481_v62 = vadd.f32 %v9480_v15, %v9466_v21  ;;  %v9445_v19 = vadd.f32 %v15814_v41, %v9444_v42 }
 0x326   : > { %v9446_v18 = vadd.f32 %v15804_v12, %v9445_v19  ;;  %v9482_v3 = vadd.f32 %v9481_v62, %v9467_v11 }
 0x328   : > { %v9447_v34 = vadd.f32 %v15810_v39, %v9446_v18  ;;  %v9483_v0 = vadd.f32 %v9482_v3, %v9468_v54 }
 0x32a   : > { %v9448_v50 = vadd.f32 %v12477_v60, %v9447_v34  ;;  %v9484_v35 = vadd.f32 %v9483_v0, %v9469_v17 }
 0x32c   : > { %v9449_v51 = vadd.f32 %v12481_v9, %v9448_v50  ;;  %v9485_v41 = vadd.f32 %v9484_v35, %v9470_v5 }
 0x32e   : > { %v9450_v12 = vadd.f32 %v15823_v45, %v9449_v51  ;;  %v9486_v38 = vadd.f32 %v9485_v41, %v9471_v1 }
 0x330   : > { %v9451_v13 = vadd.f32 %v12479_v36, %v9450_v12  ;;  %v9487_v59 = vadd.f32 %v9486_v38, %v9472_v7 }
 0x332   : > { %v9452_v25 = vrot.slane %v9451_v13, 4  ;;  %v9488_v39 = vadd.f32 %v9487_v59, %v9473_v43 }
 0x334   : > { %v9453_v46 = vadd.f32 %v9452_v25, %v9451_v13  ;;  %v9489_v29 = vrot.slane %v9488_v39, 4 }
 0x336   : > { %v9454_v30 = vrot.slane %v9453_v46, 2  ;;  %v9490_v47 = vadd.f32 %v9489_v29, %v9488_v39 }
 0x338   : > { %v9455_v37 = vadd.f32 %v9454_v30, %v9453_v46  ;;  %v9491_v49 = vrot.slane %v9490_v47, 2 }
 0x33a   : > { %v9456_v60 = vrot.slane %v9455_v37, 1  ;;  %v9492_v33 = vadd.f32 %v9491_v49, %v9490_v47 }
 0x33c   : > { %v9493_v20 = vrot.slane %v9492_v33, 1  ;;  %v9457_v45 = vadd.f32 %v9456_v60, %v9455_v37 }
 0x33e   : > { %v9494_v36 = vadd.f32 %v9493_v20, %v9492_v33 }
 0x340   : > { %v9496_v63 = vsel %vm9495_vm6, %v9457_v45, %v9494_v36 }
 0x341   : > { %9497 = vst [vmem:[%s162_s24] sm:$0x3] %v9496_v63 }
 0x342 PF: > { %s14_s12 = sadd.s32 1, %s13180_s12  }
 0x343   : > { %p11_p5 = scmp.ge.s32.totalorder %s14_s12, 6  }
 0x345   :  { %13 = sbr.rel (!%p11_p5) target bundleno = 1 (0x1), region = 102 }

</bundles_post_ra>
